<compile_context>
chip_gen: v6e
topology: v6e:2x2x1
jax: 0.10.0
libtpu: 0.0.40
codegen_flags: <defaults>
</compile_context>

<pallas_src>
import jax
import jax.numpy as jnp
from jax.experimental import pallas as pl
from jax.experimental.pallas import tpu as pltpu

C_OUT = 20                 # conv out channels
C_PAD = 32                 # conv channel block padded to a sublane-aligned size
HW = 28                    # input spatial size (fc1 = 14*14*20 requires 28x28 input)
POOLED = 14
CELLS = POOLED * POOLED    # 196
TAPS = 9                   # 3x3 conv taps
NPOOL = 4                  # 2x2 max-pool window offsets
KCONV = NPOOL * TAPS       # 36  (conv matmul K)
MCONV = NPOOL * C_PAD      # 128 (conv matmul M: 4 offset blocks of 32 rows, 20 used)
FEAT = CELLS * C_OUT       # 3920
HID = 128
CLS = 10

BT_CONV = 32               # images / conv grid step (BT_CONV*196 must be % 128 == 0)


def _round_up(n, m):
    return (n + m - 1) // m * m


# ----------------------------- Pallas kernels ------------------------------ #

def conv_pool_relu_kernel(p_ref, w_ref, b_ref, o_ref):
    # p_ref: (36, BT*196)  bf16  transposed im2col patches, row = pool_offset*9 + tap,
    #                            lane = img*196 + cell (img within this batch tile)
    # w_ref: (128, 36)     bf16  conv weight: 4 offset blocks of 32 rows (20 real + 12 zero)
    # b_ref: (20, 1)       f32   conv bias (per channel)
    # o_ref: (20, BT*196)  bf16  relu(maxpool(conv)); rows = channel, lanes = (img, cell)
    y = jnp.dot(w_ref[...], p_ref[...], preferred_element_type=jnp.float32)  # (128, N)
    # 2x2 max-pool = max over the four sublane-aligned 32-row offset blocks.
    m = jnp.maximum(jnp.maximum(y[0:32], y[32:64]),
                    jnp.maximum(y[64:96], y[96:128]))[:C_OUT]                # (20, N)
    # bias is constant per channel, so max(conv + b) == max(conv) + b
    o_ref[...] = jnp.maximum(m + b_ref[...], 0.0).astype(o_ref.dtype)


def mlp_softmax_kernel(x_ref, w1_ref, b1_ref, w2_ref, b2_ref, o_ref):
    # x_ref: (BT, 3920) bf16; w1_ref: (3920, 128) bf16; b1_ref: (1, 128) f32
    # w2_ref: (128, 10) bf16; b2_ref: (1, 10) f32; o_ref: (BT, 10) f32
    h = jnp.dot(x_ref[...], w1_ref[...], preferred_element_type=jnp.float32) + b1_ref[...]
    h = jnp.maximum(h, 0.0)
    logits = jnp.dot(h.astype(w2_ref.dtype), w2_ref[...],
                     preferred_element_type=jnp.float32) + b2_ref[...]
    z = logits - jnp.max(logits, axis=-1, keepdims=True)
    e = jnp.exp(z)
    # exp / lane-sum / approx reciprocal all run off the VALU critical slot (EUP/XLU).
    o_ref[...] = e * pl.reciprocal(jnp.sum(e, axis=-1, keepdims=True), approx=True)


# --------------------- one-time weight prep (NOT jitted) -------------------- #

def prep_kernel_params(params):
    """One-time conversion of PyTorch-shaped params into kernel-ready layout.

    Hoisted out of the jitted forward per the perf review: the fc1 transpose/cast and
    the block conv-weight build are paid once at init, not on every call."""
    wc, bc, w1, b1, w2, b2 = params
    wk = wc.reshape(C_OUT, TAPS)                       # (20, 9): (channel, tap)
    w128 = jnp.zeros((MCONV, KCONV), jnp.float32)      # 4 offset-diagonal (32, 9) blocks
    for o in range(NPOOL):
        w128 = w128.at[o * C_PAD:o * C_PAD + C_OUT, o * TAPS:(o + 1) * TAPS].set(wk)
    w128 = w128.astype(jnp.bfloat16)
    bck = bc.reshape(C_OUT, 1).astype(jnp.float32)
    w1k = w1.T.astype(jnp.bfloat16)                    # (3920, 128), PyTorch flatten order
    b1k = b1.reshape(1, HID).astype(jnp.float32)
    w2k = w2.T.astype(jnp.bfloat16)                    # (128, 10)
    b2k = b2.reshape(1, CLS).astype(jnp.float32)
    return w128, bck, w1k, b1k, w2k, b2k


# ------------------------------- glue (JAX) -------------------------------- #

def im2col_pool_layout_T(x):
    # x: (B, 1, 28, 28) -> (36, B*196) bf16, row = pool_offset*9 + tap, lane = b*196 + cell.
    # bf16 from the start: the stacked patch array is half the bytes and lane-dense.
    B = x.shape[0]
    xp = jnp.pad(x[:, 0], ((0, 0), (1, 1), (1, 1))).astype(jnp.bfloat16)  # (B, 30, 30)
    rows = []
    for py in range(2):            # pool-window row offset
        for px in range(2):        # pool-window col offset
            for ky in range(3):    # conv tap row
                for kx in range(3):
                    s = xp[:, py + ky: py + ky + 2 * POOLED: 2,
                           px + kx: px + kx + 2 * POOLED: 2]   # (B, 14, 14)
                    rows.append(s.reshape(B * CELLS))
    return jnp.stack(rows, axis=0)                             # (36, B*196) bf16
    # TODO(synk): moving patch extraction fully in-kernel needs double-strided
    # (step-2) ref slices over 28/30-sized dims; left to XLA for robustness.


def _pick_mlp_tile(b_pad):
    # Largest MLP row tile <= 256 dividing the padded batch; prefer >= 2 grid steps so
    # the "parallel" batch axis can be split across v7x's two TensorCores.
    for d in (256, 128, 64, 32, 16, 8):
        if b_pad % d == 0 and b_pad // d >= 2:
            return d
    return b_pad


@jax.jit
def my_cnn_forward(x, kparams):
    w128, bck, w1k, b1k, w2k, b2k = kparams
    B = x.shape[0]
    x = x.astype(jnp.float32)
    B_pad = _round_up(max(B, BT_CONV), BT_CONV)
    if B_pad != B:
        x = jnp.pad(x, ((0, B_pad - B), (0, 0), (0, 0), (0, 0)))

    patches = im2col_pool_layout_T(x)                  # (36, B_pad*196) bf16
    n_conv = B_pad // BT_CONV

    featT = pl.pallas_call(
        conv_pool_relu_kernel,
        out_shape=jax.ShapeDtypeStruct((C_OUT, B_pad * CELLS), jnp.bfloat16),
        grid_spec=pltpu.PrefetchScalarGridSpec(
            num_scalar_prefetch=0,
            grid=(n_conv,),
            in_specs=[
                pl.BlockSpec((KCONV, BT_CONV * CELLS), lambda b: (0, b)),
                pl.BlockSpec((MCONV, KCONV), lambda b: (0, 0)),
                pl.BlockSpec((C_OUT, 1), lambda b: (0, 0)),
            ],
            out_specs=pl.BlockSpec((C_OUT, BT_CONV * CELLS), lambda b: (0, b)),
        ),
        compiler_params=pltpu.CompilerParams(dimension_semantics=("parallel",)),
    )(patches, w128, bck)

    # Single dense bf16 relayout to PyTorch flatten order (ch*196 + cell). Both sides are
    # lane-dense, so this costs ~B*3920*2 bytes each way instead of the old 6.4x-padded
    # feature-map round trip.
    flat = featT.reshape(C_OUT, B_pad, CELLS).transpose(1, 0, 2).reshape(B_pad, FEAT)

    bt_mlp = _pick_mlp_tile(B_pad)
    n_mlp = B_pad // bt_mlp

    out = pl.pallas_call(
        mlp_softmax_kernel,
        out_shape=jax.ShapeDtypeStruct((B_pad, CLS), jnp.float32),
        grid_spec=pltpu.PrefetchScalarGridSpec(
            num_scalar_prefetch=0,
            grid=(n_mlp,),
            in_specs=[
                pl.BlockSpec((bt_mlp, FEAT), lambda b: (b, 0)),
                pl.BlockSpec((FEAT, HID), lambda b: (0, 0)),
                pl.BlockSpec((1, HID), lambda b: (0, 0)),
                pl.BlockSpec((HID, CLS), lambda b: (0, 0)),
                pl.BlockSpec((1, CLS), lambda b: (0, 0)),
            ],
            out_specs=pl.BlockSpec((bt_mlp, CLS), lambda b: (b, 0)),
        ),
        compiler_params=pltpu.CompilerParams(dimension_semantics=("parallel",)),
    )(flat, w1k, b1k, w2k, b2k)
    return out[:B]


# --------------------------- params / reference ---------------------------- #

def init_params(key):
    ks = jax.random.split(key, 6)
    wc = 0.1 * jax.random.normal(ks[0], (C_OUT, 1, 3, 3), jnp.float32)   # conv1.weight
    bc = 0.1 * jax.random.normal(ks[1], (C_OUT,), jnp.float32)           # conv1.bias
    w1 = 0.02 * jax.random.normal(ks[2], (HID, FEAT), jnp.float32)       # fc1.weight
    b1 = 0.02 * jax.random.normal(ks[3], (HID,), jnp.float32)            # fc1.bias
    w2 = 0.1 * jax.random.normal(ks[4], (CLS, HID), jnp.float32)         # fc2.weight
    b2 = 0.1 * jax.random.normal(ks[5], (CLS,), jnp.float32)             # fc2.bias
    return wc, bc, w1, b1, w2, b2


def reference_forward(x, params):
    # Pure-JAX f32 reference mirroring the PyTorch module (NCHW).
    wc, bc, w1, b1, w2, b2 = params
    y = jax.lax.conv_general_dilated(
        x, wc, window_strides=(1, 1), padding=((1, 1), (1, 1)),
        dimension_numbers=("NCHW", "OIHW", "NCHW"))
    y = y + bc[None, :, None, None]
    y = jax.lax.reduce_window(y, -jnp.inf, jax.lax.max,
                              (1, 1, 2, 2), (1, 1, 2, 2), "VALID")
    y = jnp.maximum(y, 0.0)
    y = y.reshape(y.shape[0], -1)
    y = jnp.maximum(y @ w1.T + b1, 0.0)
    logits = y @ w2.T + b2
    return jax.nn.softmax(logits, axis=1)


if __name__ == "__main__":
    key = jax.random.PRNGKey(0)
    kx, kp = jax.random.split(key)
    params = init_params(kp)
    kparams = prep_kernel_params(params)       # one-time weight prep, outside the jit
    x = jax.random.normal(kx, (2, 1, HW, HW), jnp.float32)

    out = my_cnn_forward(x, kparams)
    out = jax.block_until_ready(out)

    assert out.shape == (2, CLS)
    assert bool(jnp.all(jnp.isfinite(out)))
    ref = reference_forward(x, params)
    assert bool(jnp.allclose(out, ref, atol=1e-2, rtol=1e-2))
    print("KERNEL_OK")
</pallas_src>

<mosaic_0001>
module attributes {stable_mosaic.version = 11 : i64} {
  func.func @conv_pool_relu_kernel(%arg0: i32, %arg1: memref<36x6272xbf16, #tpu.memory_space<vmem>>, %arg2: memref<128x36xbf16, #tpu.memory_space<vmem>>, %arg3: memref<20x1xf32, #tpu.memory_space<vmem>>, %arg4: memref<20x6272xbf16, #tpu.memory_space<vmem>>) attributes {dimension_semantics = [#tpu.dimension_semantics<parallel>], iteration_bounds = array<i64: 1>, scalar_prefetch = 0 : i64, scratch_operands = 0 : i64, tpu.core_type = #tpu.core_type<tc>, window_params = [{transform_indices = @transform_0, window_bounds = array<i64: 36, 6272>}, {pipeline_mode = #tpu.pipeline_mode<synchronous>, transform_indices = @transform_1, window_bounds = array<i64: 128, 36>}, {pipeline_mode = #tpu.pipeline_mode<synchronous>, transform_indices = @transform_2, window_bounds = array<i64: 20, 1>}, {transform_indices = @transform_3, window_bounds = array<i64: 20, 6272>}]} {
    %c0 = arith.constant 0 : index
    %c0_0 = arith.constant 0 : index
    %0 = vector.load %arg2[%c0, %c0_0] : memref<128x36xbf16, #tpu.memory_space<vmem>>, vector<128x36xbf16>
    %c0_1 = arith.constant 0 : index
    %c0_2 = arith.constant 0 : index
    %1 = vector.load %arg1[%c0_1, %c0_2] : memref<36x6272xbf16, #tpu.memory_space<vmem>>, vector<36x6272xbf16>
    %cst = arith.constant dense<0.000000e+00> : vector<128x6272xf32>
    %2 = tpu.matmul %0, %1, %cst {dimension_numbers = #tpu.dot_dimension_numbers<[1], [0], [0], [1], [0, 0, 1, 1], [], []>} : vector<128x36xbf16>, vector<36x6272xbf16>, vector<128x6272xf32> -> vector<128x6272xf32>
    %3 = vector.extract_strided_slice %2 {offsets = [0, 0], sizes = [32, 6272], strides = [1, 1]} : vector<128x6272xf32> to vector<32x6272xf32>
    %4 = vector.extract_strided_slice %2 {offsets = [32, 0], sizes = [32, 6272], strides = [1, 1]} : vector<128x6272xf32> to vector<32x6272xf32>
    %5 = arith.maximumf %3, %4 : vector<32x6272xf32>
    %6 = vector.extract_strided_slice %2 {offsets = [64, 0], sizes = [32, 6272], strides = [1, 1]} : vector<128x6272xf32> to vector<32x6272xf32>
    %7 = vector.extract_strided_slice %2 {offsets = [96, 0], sizes = [32, 6272], strides = [1, 1]} : vector<128x6272xf32> to vector<32x6272xf32>
    %8 = arith.maximumf %6, %7 : vector<32x6272xf32>
    %9 = arith.maximumf %5, %8 : vector<32x6272xf32>
    %10 = vector.extract_strided_slice %9 {offsets = [0, 0], sizes = [20, 6272], strides = [1, 1]} : vector<32x6272xf32> to vector<20x6272xf32>
    %c0_3 = arith.constant 0 : index
    %c0_4 = arith.constant 0 : index
    %11 = vector.load %arg3[%c0_3, %c0_4] : memref<20x1xf32, #tpu.memory_space<vmem>>, vector<20x1xf32>
    %12 = vector.broadcast %11 : vector<20x1xf32> to vector<20x6272xf32>
    %13 = arith.addf %10, %12 : vector<20x6272xf32>
    %cst_5 = arith.constant 0.000000e+00 : f32
    %14 = vector.broadcast %cst_5 : f32 to vector<20x6272xf32>
    %15 = arith.maximumf %13, %14 : vector<20x6272xf32>
    %16 = arith.truncf %15 : vector<20x6272xf32> to vector<20x6272xbf16>
    %c0_6 = arith.constant 0 : index
    %c0_7 = arith.constant 0 : index
    %17 = vector.load %arg4[%c0_6, %c0_7] : memref<20x6272xbf16, #tpu.memory_space<vmem>>, vector<20x6272xbf16>
    tpu.vector_store %arg4[%c0_6, %c0_7], %16 {strides = array<i32>} : memref<20x6272xbf16, #tpu.memory_space<vmem>>, vector<20x6272xbf16>,
    return
  }
  func.func @transform_0(%arg0: i32) -> (i32, i32) {
    %c0_i32 = arith.constant 0 : i32
    %c0_i32_0 = arith.constant 0 : i32
    return %c0_i32, %arg0 : i32, i32
  }
  func.func @transform_1(%arg0: i32) -> (i32, i32) {
    %c0_i32 = arith.constant 0 : i32
    %c0_i32_0 = arith.constant 0 : i32
    %c0_i32_1 = arith.constant 0 : i32
    return %c0_i32, %c0_i32_0 : i32, i32
  }
  func.func @transform_2(%arg0: i32) -> (i32, i32) {
    %c0_i32 = arith.constant 0 : i32
    %c0_i32_0 = arith.constant 0 : i32
    %c0_i32_1 = arith.constant 0 : i32
    return %c0_i32, %c0_i32_0 : i32, i32
  }
  func.func @transform_3(%arg0: i32) -> (i32, i32) {
    %c0_i32 = arith.constant 0 : i32
    %c0_i32_0 = arith.constant 0 : i32
    return %c0_i32, %arg0 : i32, i32
  }
}

module attributes {stable_mosaic.version = 11 : i64} {
  func.func @mlp_softmax_kernel(%arg0: i32, %arg1: memref<16x3920xbf16, #tpu.memory_space<vmem>>, %arg2: memref<3920x128xbf16, #tpu.memory_space<vmem>>, %arg3: memref<1x128xf32, #tpu.memory_space<vmem>>, %arg4: memref<128x10xbf16, #tpu.memory_space<vmem>>, %arg5: memref<1x10xf32, #tpu.memory_space<vmem>>, %arg6: memref<16x10xf32, #tpu.memory_space<vmem>>) attributes {dimension_semantics = [#tpu.dimension_semantics<parallel>], iteration_bounds = array<i64: 2>, scalar_prefetch = 0 : i64, scratch_operands = 0 : i64, tpu.core_type = #tpu.core_type<tc>, window_params = [{transform_indices = @transform_0, window_bounds = array<i64: 16, 3920>}, {pipeline_mode = #tpu.pipeline_mode<synchronous>, transform_indices = @transform_1, window_bounds = array<i64: 3920, 128>}, {pipeline_mode = #tpu.pipeline_mode<synchronous>, transform_indices = @transform_2, window_bounds = array<i64: 1, 128>}, {pipeline_mode = #tpu.pipeline_mode<synchronous>, transform_indices = @transform_3, window_bounds = array<i64: 128, 10>}, {pipeline_mode = #tpu.pipeline_mode<synchronous>, transform_indices = @transform_4, window_bounds = array<i64: 1, 10>}, {transform_indices = @transform_5, window_bounds = array<i64: 16, 10>}]} {
    %c0 = arith.constant 0 : index
    %c0_0 = arith.constant 0 : index
    %0 = vector.load %arg1[%c0, %c0_0] : memref<16x3920xbf16, #tpu.memory_space<vmem>>, vector<16x3920xbf16>
    %c0_1 = arith.constant 0 : index
    %c0_2 = arith.constant 0 : index
    %1 = vector.load %arg2[%c0_1, %c0_2] : memref<3920x128xbf16, #tpu.memory_space<vmem>>, vector<3920x128xbf16>
    %cst = arith.constant dense<0.000000e+00> : vector<16x128xf32>
    %2 = tpu.matmul %0, %1, %cst {dimension_numbers = #tpu.dot_dimension_numbers<[1], [0], [0], [1], [0, 0, 1, 1], [], []>} : vector<16x3920xbf16>, vector<3920x128xbf16>, vector<16x128xf32> -> vector<16x128xf32>
    %c0_3 = arith.constant 0 : index
    %c0_4 = arith.constant 0 : index
    %3 = vector.load %arg3[%c0_3, %c0_4] : memref<1x128xf32, #tpu.memory_space<vmem>>, vector<1x128xf32>
    %4 = vector.broadcast %3 : vector<1x128xf32> to vector<16x128xf32>
    %5 = arith.addf %2, %4 : vector<16x128xf32>
    %cst_5 = arith.constant 0.000000e+00 : f32
    %6 = vector.broadcast %cst_5 : f32 to vector<16x128xf32>
    %7 = arith.maximumf %5, %6 : vector<16x128xf32>
    %8 = arith.truncf %7 : vector<16x128xf32> to vector<16x128xbf16>
    %c0_6 = arith.constant 0 : index
    %c0_7 = arith.constant 0 : index
    %9 = vector.load %arg4[%c0_6, %c0_7] : memref<128x10xbf16, #tpu.memory_space<vmem>>, vector<128x10xbf16>
    %cst_8 = arith.constant dense<0.000000e+00> : vector<16x10xf32>
    %10 = tpu.matmul %8, %9, %cst_8 {dimension_numbers = #tpu.dot_dimension_numbers<[1], [0], [0], [1], [0, 0, 1, 1], [], []>} : vector<16x128xbf16>, vector<128x10xbf16>, vector<16x10xf32> -> vector<16x10xf32>
    %c0_9 = arith.constant 0 : index
    %c0_10 = arith.constant 0 : index
    %11 = vector.load %arg5[%c0_9, %c0_10] : memref<1x10xf32, #tpu.memory_space<vmem>>, vector<1x10xf32>
    %12 = vector.broadcast %11 : vector<1x10xf32> to vector<16x10xf32>
    %13 = arith.addf %10, %12 : vector<16x10xf32>
    %cst_11 = arith.constant dense<0xFF800000> : vector<16xf32>
    %14 = vector.multi_reduction <maximumf>, %13, %cst_11 [1] : vector<16x10xf32> to vector<16xf32>
    %15 = vector.shape_cast %14 : vector<16xf32> to vector<16x1xf32>
    %16 = vector.broadcast %15 : vector<16x1xf32> to vector<16x10xf32>
    %17 = arith.subf %13, %16 : vector<16x10xf32>
    %18 = math.exp %17 : vector<16x10xf32>
    %cst_12 = arith.constant dense<0.000000e+00> : vector<16xf32>
    %19 = vector.multi_reduction <add>, %18, %cst_12 [1] : vector<16x10xf32> to vector<16xf32>
    %20 = vector.shape_cast %19 : vector<16xf32> to vector<16x1xf32>
    %21 = tpu.reciprocal %20 {approx = true} : vector<16x1xf32> -> vector<16x1xf32>
    %22 = vector.broadcast %21 : vector<16x1xf32> to vector<16x10xf32>
    %23 = arith.mulf %18, %22 : vector<16x10xf32>
    %c0_13 = arith.constant 0 : index
    %c0_14 = arith.constant 0 : index
    %24 = vector.load %arg6[%c0_13, %c0_14] : memref<16x10xf32, #tpu.memory_space<vmem>>, vector<16x10xf32>
    tpu.vector_store %arg6[%c0_13, %c0_14], %23 {strides = array<i32>} : memref<16x10xf32, #tpu.memory_space<vmem>>, vector<16x10xf32>,
    return
  }
  func.func @transform_0(%arg0: i32) -> (i32, i32) {
    %c0_i32 = arith.constant 0 : i32
    %c0_i32_0 = arith.constant 0 : i32
    return %arg0, %c0_i32 : i32, i32
  }
  func.func @transform_1(%arg0: i32) -> (i32, i32) {
    %c0_i32 = arith.constant 0 : i32
    %c0_i32_0 = arith.constant 0 : i32
    %c0_i32_1 = arith.constant 0 : i32
    return %c0_i32, %c0_i32_0 : i32, i32
  }
  func.func @transform_2(%arg0: i32) -> (i32, i32) {
    %c0_i32 = arith.constant 0 : i32
    %c0_i32_0 = arith.constant 0 : i32
    %c0_i32_1 = arith.constant 0 : i32
    return %c0_i32, %c0_i32_0 : i32, i32
  }
  func.func @transform_3(%arg0: i32) -> (i32, i32) {
    %c0_i32 = arith.constant 0 : i32
    %c0_i32_0 = arith.constant 0 : i32
    %c0_i32_1 = arith.constant 0 : i32
    return %c0_i32, %c0_i32_0 : i32, i32
  }
  func.func @transform_4(%arg0: i32) -> (i32, i32) {
    %c0_i32 = arith.constant 0 : i32
    %c0_i32_0 = arith.constant 0 : i32
    %c0_i32_1 = arith.constant 0 : i32
    return %c0_i32, %c0_i32_0 : i32, i32
  }
  func.func @transform_5(%arg0: i32) -> (i32, i32) {
    %c0_i32 = arith.constant 0 : i32
    %c0_i32_0 = arith.constant 0 : i32
    return %arg0, %c0_i32 : i32, i32
  }
}

</mosaic_0001>

<bundles_post_ra>
// kernel: my_cnn_forward.2
= control target key start
LH: loop header
LB: loop body
LE: loop exit
PB: predicated region body
PF: predicated region fallthrough
CT: control target
= control target key end

     0   :  { %vm836_vm0 = vcmask 1041408   ;;  %v5721_v1 = vmov 0   ;;  %vm811_vm1 = vcmask 293888   ;;  %s8276_s0 = inlined_call_operand.vmem [shape: bf16[36,6272], index: 0, kind: input, shape index: {}]   ;;  %s8277_s1 = inlined_call_operand.vmem [shape: bf16[128,36], index: 1, kind: input, shape index: {}]   ;;  %s8278_s2 = inlined_call_operand.vmem [shape: f32[20,1], index: 2, kind: input, shape index: {}]   ;;  %s8279_s3 = inlined_call_operand.vmem [shape: bf16[20,6272], index: 3, kind: output, shape index: {}]  }
   0x1   :  { %v131_v0 = vld [vmem:[%s8276_s0 + $0x310] sm:$0x33]  ;;  %1016 = vmatprep.mubr.bf16.mxu0 %v5721_v1  ;;  %1070 = vmatprep.mubr.bf16.mxu1 %v5721_v1  ;;  %v5498_v5 = vld [vmem:[%s8276_s0 + $0x188] ss:$196 sps:$4 sm:$0xff]   ;;  %v133_v8 = vld [vmem:[%s8276_s0 + $0x320] sm:$0x33] }
   0x2   :  { %v5029_v2 = vcombine.high %v131_v0, %v131_v0  ;;  %v5028_v3 = vcombine.low %v131_v0, %v131_v0  ;;  %v5496_v4 = vld [vmem:[%s8276_s0 + $0x18c] ss:$196 sps:$4 sm:$0xff]   ;;  %5492 = vset.pattern.permute.xlu0 %v5721_v1  ;;  %5493 = vset.pattern.permute.xlu1 %v5721_v1  ;;  %v5499_v7 = vld [vmem:[%s8276_s0 + $0x4] ss:$196 sps:$4 sm:$0xff]   ;;  %v132_v9 = vld [vmem:[%s8276_s0 + $0x318] sm:$0x33]  ;;  %v5032_v11 = vcombine.low %v133_v8, %v133_v8 }
   0x3   :  { %v5501_v10 = vld [vmem:[%s8276_s0] ss:$196 sps:$4 sm:$0xff]   ;;  %v5030_v12 = vcombine.low %v132_v9, %v132_v9  ;;  %v5033_v13 = vcombine.high %v133_v8, %v133_v8  ;;  %v5031_v14 = vcombine.high %v132_v9, %v132_v9  ;;  %v5778_v16 = vld [vmem:[%s8277_s1 + $0x30] sm:$0xff]   ;;  %v5517_v23 = vld [vmem:[%s8276_s0 + $0x198] ss:$196 sps:$4 sm:$0xff]  }
   0x4   :  { %5077 = vmatprep.subr.msk.bf16.mxu0 %vm836_vm0, %v5029_v2  ;;  %5484 = vmatprep.subr.msk.bf16.mxu1 %vm836_vm0, %v5029_v2  ;;  %v838_v6 = vsel %vm836_vm0, %v5028_v3, 0  ;;  %v5773_v15 = vld [vmem:[%s8277_s1] sm:$0xff]   ;;  %v850_v17 = vsel %vm836_vm0, %v5032_v11, 0  ;;  %v5512_v19 = vld [vmem:[%s8276_s0 + $0x194] ss:$196 sps:$4 sm:$0xff]   ;;  %v5811_v25 = vld [vmem:[%s8277_s1 + $0x8] sm:$0xff]  }
   0x5   :  { %995 = vmatpush1.bf16.msra.mxu0 %v838_v6  ;;  %5487 = vmatpush1.bf16.msra.mxu1 %v838_v6  ;;  %v844_v18 = vsel %vm836_vm0, %v5030_v12, 0  ;;  %v5510_v20 = vld [vmem:[%s8276_s0 + $0x190] ss:$196 sps:$4 sm:$0xff]   ;;  %v5519_v21 = vld [vmem:[%s8276_s0 + $0x19c] ss:$196 sps:$4 sm:$0xff]   ;;  %v4039_v37 = vld [vmem:[%s8278_s2 + $0x8] sm:$0xff] }
   0x6   :  { %996 = vmatprep.subr.bf16.mxu0 %v5496_v4  ;;  %5485 = vmatprep.subr.bf16.mxu1 %v5496_v4  ;;  %v5515_v22 = vld [vmem:[%s8276_s0 + $0xc] ss:$196 sps:$4 sm:$0xff]   ;;  %v5526_v24 = vld [vmem:[%s8276_s0 + $0x14] ss:$196 sps:$4 sm:$0xff]   ;;  %v4038_v33 = vld [vmem:[%s8278_s2] sm:$0xff] }
   0x7   :  { %v5816_v26 = vld [vmem:[%s8277_s1 + $0x38] sm:$0xff]   ;;  %v134_v27 = vld [vmem:[%s8276_s0 + $0x328] sm:$0x33]  ;;  %v135_v29 = vld [vmem:[%s8276_s0 + $0x330] sm:$0x33]  ;;  %4043 = vperm.xlu0 %5492, %v4038_v33  }
   0x8   :  { %v5513_v28 = vld [vmem:[%s8276_s0 + $0x8] ss:$196 sps:$4 sm:$0xff]   ;;  %v5035_v30 = vcombine.high %v134_v27, %v134_v27  ;;  %v5524_v31 = vld [vmem:[%s8276_s0 + $0x10] ss:$196 sps:$4 sm:$0xff]   ;;  %v5037_v32 = vcombine.high %v135_v29, %v135_v29  ;;  %v5034_v34 = vcombine.low %v134_v27, %v134_v27  ;;  %v5528_v40 = vld [vmem:[%s8276_s0 + $0x1a0] ss:$196 sps:$4 sm:$0xff]   ;;  %v5036_v48 = vcombine.low %v135_v29, %v135_v29 }
   0x9   :  { %997 = vmatpush1.bf16.msra.mxu0 %v5498_v5  ;;  %5488 = vmatpush1.bf16.msra.mxu1 %v5498_v5  ;;  %v4040_v35 = vld [vmem:[%s8278_s2 + $0x10] sm:$0xf]  ;;  %v5530_v38 = vld [vmem:[%s8276_s0 + $0x1a4] ss:$196 sps:$4 sm:$0xff]   ;;  %v5535_v41 = vld [vmem:[%s8276_s0 + $0x1c] ss:$196 sps:$4 sm:$0xff]  }
   0xa   :  { %998 = vmatprep.subr.bf16.mxu0 %v5499_v7  ;;  %5486 = vmatprep.subr.bf16.mxu1 %v5499_v7  ;;  %v5846_v36 = vld [vmem:[%s8277_s1 + $0x10] sm:$0xff]   ;;  %v856_v39 = vsel %vm836_vm0, %v5034_v34, 0  ;;  %v5871_v42 = vld [vmem:[%s8277_s1 + $0x18] sm:$0xff]   ;;  %v5888_v46 = vld [vmem:[%s8277_s1 + $0x20] sm:$0xff]   ;;  %v862_v49 = vsel %vm836_vm0, %v5036_v48, 0 }
   0xb   :  { %4053 = vperm.xlu1 %5493, %v4040_v35   ;;  %4048 = vperm.xlu0 %5492, %v4039_v37   ;;  %v136_v43 = vld [vmem:[%s8276_s0 + $0x338] sm:$0x33]  ;;  %v5900_v47 = vld [vmem:[%s8277_s1 + $0x28] sm:$0xff]   ;;  %v137_v53 = vld [vmem:[%s8276_s0 + $0x340] sm:$0x33] }
   0xc   :  { %v5533_v44 = vld [vmem:[%s8276_s0 + $0x18] ss:$196 sps:$4 sm:$0xff]   ;;  %v5039_v45 = vcombine.high %v136_v43, %v136_v43  ;;  %v5538_v50 = vld [vmem:[%s8276_s0 + $0x1ac] ss:$196 sps:$4 sm:$0xff]   ;;  %v5543_v52 = vld [vmem:[%s8276_s0 + $0x24] ss:$196 sps:$4 sm:$0xff]   ;;  %v5041_v55 = vcombine.high %v137_v53, %v137_v53  ;;  %v5038_v56 = vcombine.low %v136_v43, %v136_v43  ;;  %v5040_v0 = vcombine.low %v137_v53, %v137_v53 }
   0xd   :  { %999 = vmatpush1.bf16.msra.mxu0 %v5501_v10  ;;  %5489 = vmatpush1.bf16.msra.mxu1 %v5501_v10  ;;  %v5536_v51 = vld [vmem:[%s8276_s0 + $0x1a8] ss:$196 sps:$4 sm:$0xff]   ;;  %v5541_v54 = vld [vmem:[%s8276_s0 + $0x20] ss:$196 sps:$4 sm:$0xff]   ;;  %v5546_v58 = vld [vmem:[%s8276_s0 + $0x1b4] ss:$196 sps:$4 sm:$0xff]  }
   0xe   :  { %5095 = vmatprep.subr.msk.bf16.mxu0 %vm836_vm0, %v5033_v13  ;;  %5086 = vmatprep.subr.msk.bf16.mxu1 %vm836_vm0, %v5031_v14  ;;  %v868_v57 = vsel %vm836_vm0, %v5038_v56, 0  ;;  %v5544_v59 = vld [vmem:[%s8276_s0 + $0x1b0] ss:$196 sps:$4 sm:$0xff]   ;;  %v138_v61 = vld [vmem:[%s8276_s0 + $0x348] sm:$0x33]  ;;  %v874_v2 = vsel %vm836_vm0, %v5040_v0, 0 }
   0xf   :  { %v5551_v60 = vld [vmem:[%s8276_s0 + $0x2c] ss:$196 sps:$4 sm:$0xff]   ;;  %v5043_v63 = vcombine.high %v138_v61, %v138_v61  ;;  %v5554_v3 = vld [vmem:[%s8276_s0 + $0x1bc] ss:$196 sps:$4 sm:$0xff]   ;;  %v5559_v5 = vld [vmem:[%s8276_s0 + $0x34] ss:$196 sps:$4 sm:$0xff]   ;;  %v5042_v9 = vcombine.low %v138_v61, %v138_v61 }
  0x10   :  { %5078 = vmatmul.mubr.msk.bf16.vlgmr.msra.gmra.mxu0 %vm811_vm1, %v5773_v15  ;;  %5084 = vmatmul.mubr.msk.bf16.vlgmr.msra.gmra.mxu1 %vm811_vm1, %v5778_v16  ;;  %v5549_v62 = vld [vmem:[%s8276_s0 + $0x28] ss:$196 sps:$4 sm:$0xff]   ;;  %v5552_v4 = vld [vmem:[%s8276_s0 + $0x1b8] ss:$196 sps:$4 sm:$0xff]   ;;  %v139_v6 = vld [vmem:[%s8276_s0 + $0x350] sm:$0x33] }
  0x11   :  { %1205 = vmatpush1.bf16.msra.mxu0 %v850_v17  ;;  %1100 = vmatpush1.bf16.msra.mxu1 %v844_v18  ;;  %v5557_v7 = vld [vmem:[%s8276_s0 + $0x30] ss:$196 sps:$4 sm:$0xff]   ;;  %v5045_v8 = vcombine.high %v139_v6, %v139_v6  ;;  %v880_v10 = vsel %vm836_vm0, %v5042_v9, 0  ;;  %v5562_v11 = vld [vmem:[%s8276_s0 + $0x1c4] ss:$196 sps:$4 sm:$0xff]  }
  0x12   :  { %1026 = vmatprep.mubr.bf16.mxu0 %v5721_v1  ;;  %1080 = vmatprep.mubr.bf16.mxu1 %v5721_v1  ;;  %v5560_v12 = vld [vmem:[%s8276_s0 + $0x1c0] ss:$196 sps:$4 sm:$0xff]   ;;  %v6050_v14 = vld [vmem:[%s8276_s0 + $0x358] sm:$0x33] }
  0x13   :  { %1101 = vmatprep.subr.bf16.mxu1 %v5512_v19  ;;  %1206 = vmatprep.subr.bf16.mxu0 %v5519_v21  ;;  %v5567_v13 = vld [vmem:[%s8276_s0 + $0x3c] ss:$196 sps:$4 sm:$0xff]   ;;  %v5047_v18 = vcombine.high %v6050_v14, %v6050_v14  ;;  %v5044_v19 = vcombine.low %v139_v6, %v139_v6  ;;  %v5570_v21 = vld [vmem:[%s8276_s0 + $0x1cc] ss:$196 sps:$4 sm:$0xff]   ;;  %v5046_v43 = vcombine.low %v6050_v14, %v6050_v14 }
  0x14   :  { %v5565_v17 = vld [vmem:[%s8276_s0 + $0x38] ss:$196 sps:$4 sm:$0xff]   ;;  %v5573_v27 = vld [vmem:[%s8276_s0 + $0x40] ss:$196 sps:$4 sm:$0xff]  }
  0x15   :  { %1102 = vmatpush1.bf16.msra.mxu1 %v5510_v20  ;;  %1207 = vmatpush1.bf16.msra.mxu0 %v5517_v23  ;;  %v886_v20 = vsel %vm836_vm0, %v5044_v19, 0  ;;  %v5575_v23 = vld [vmem:[%s8276_s0 + $0x44] ss:$196 sps:$4 sm:$0xff]  }
  0x16   :  { %1103 = vmatprep.subr.bf16.mxu1 %v5515_v22  ;;  %1208 = vmatprep.subr.bf16.mxu0 %v5526_v24  ;;  %v5568_v22 = vld [vmem:[%s8276_s0 + $0x1c8] ss:$196 sps:$4 sm:$0xff]   ;;  %v6095_v24 = vld [vmem:[%s8276_s0 + $0x360] sm:$0x33] }
  0x18   :  { %5079 = vmatmul.mubr.msk.bf16.gmra.mxu0 %vm811_vm1, %v5811_v25  ;;  %5085 = vmatmul.mubr.msk.bf16.gmra.mxu1 %vm811_vm1, %v5816_v26 }
  0x19   :  { %1104 = vmatpush1.bf16.msra.mxu1 %v5513_v28  ;;  %1034 = vmatprep.mubr.bf16.mxu0 %v5721_v1  ;;  %v5049_v28 = vcombine.high %v6095_v24, %v6095_v24 }
  0x1a   :  { %1121 = vmatprep.mubr.bf16.mxu1 %v5721_v1  ;;  %5104 = vmatprep.subr.msk.bf16.mxu1 %vm836_vm0, %v5035_v30 }
  0x1b   :  { %1209 = vmatpush1.bf16.msra.mxu0 %v5524_v31 }
  0x1c   :  { %5113 = vmatprep.subr.msk.bf16.mxu0 %vm836_vm0, %v5037_v32 }
  0x20   :  { %5080 = vmatmul.mubr.msk.bf16.gmra.mxu0 %vm811_vm1, %v5846_v36  ;;  %5087 = vmatmul.mubr.msk.bf16.vlgmr.msra.gmra.mxu1 %vm811_vm1, %v5773_v15 }
  0x21   :  { %1310 = vmatpush1.bf16.msra.mxu1 %v856_v39  ;;  %1044 = vmatprep.mubr.bf16.mxu0 %v5721_v1 }
  0x22   :  { %1131 = vmatprep.mubr.bf16.mxu1 %v5721_v1  ;;  %1311 = vmatprep.subr.bf16.mxu1 %v5530_v38 }
  0x25   :  { %1312 = vmatpush1.bf16.msra.mxu1 %v5528_v40 }
  0x26   :  { %1313 = vmatprep.subr.bf16.mxu1 %v5535_v41 }
  0x28   :  { %5081 = vmatmul.mubr.msk.bf16.gmra.mxu0 %vm811_vm1, %v5871_v42  ;;  %5088 = vmatmul.mubr.msk.bf16.gmra.mxu1 %vm811_vm1, %v5811_v25 }
  0x29   :  { %1052 = vmatprep.mubr.bf16.mxu0 %v5721_v1  ;;  %1139 = vmatprep.mubr.bf16.mxu1 %v5721_v1 }
  0x2a   :  { %1314 = vmatpush1.bf16.msra.mxu1 %v5533_v44 }
  0x2b   :  { %5122 = vmatprep.subr.msk.bf16.mxu1 %vm836_vm0, %v5039_v45 }
  0x30   :  { %5082 = vmatmul.mubr.msk.bf16.gmra.mxu0 %vm811_vm1, %v5888_v46  ;;  %5089 = vmatmul.mubr.msk.bf16.gmra.mxu1 %vm811_vm1, %v5846_v36 }
  0x31   :  { %1062 = vmatprep.mubr.bf16.mxu0 %v5721_v1  ;;  %1149 = vmatprep.mubr.bf16.mxu1 %v5721_v1 }
  0x38   :  { %5083 = vmatmul.mubr.msk.bf16.gmra.mxu0 %vm811_vm1, %v5900_v47  ;;  %5090 = vmatmul.mubr.msk.bf16.gmra.mxu1 %vm811_vm1, %v5871_v42 }
  0x39   :  { %1157 = vmatprep.mubr.bf16.mxu1 %v5721_v1  ;;  %1226 = vmatprep.mubr.bf16.mxu0 %v5721_v1 }
  0x40   :  { %5091 = vmatmul.mubr.msk.bf16.gmra.mxu1 %vm811_vm1, %v5888_v46  ;;  %5096 = vmatmul.mubr.msk.bf16.vlgmr.msra.gmra.mxu0 %vm811_vm1, %v5773_v15 }
  0x41   :  { %1415 = vmatpush1.bf16.msra.mxu0 %v862_v49  ;;  %1167 = vmatprep.mubr.bf16.mxu1 %v5721_v1 }
  0x42   :  { %1236 = vmatprep.mubr.bf16.mxu0 %v5721_v1  ;;  %1416 = vmatprep.subr.bf16.mxu0 %v5538_v50  ;;  %v892_v50 = vsel %vm836_vm0, %v5046_v43, 0 }
  0x45   :  { %1417 = vmatpush1.bf16.msra.mxu0 %v5536_v51  ;;  %v5578_v51 = vld [vmem:[%s8276_s0 + $0x1d4] ss:$196 sps:$4 sm:$0xff]  }
  0x46   :  { %1418 = vmatprep.subr.bf16.mxu0 %v5543_v52 }
  0x48   :  { %5092 = vmatmul.mubr.msk.bf16.gmra.mxu1 %vm811_vm1, %v5900_v47  ;;  %5097 = vmatmul.mubr.msk.bf16.gmra.mxu0 %vm811_vm1, %v5811_v25 }
  0x49   :  { %1175 = vmatprep.mubr.bf16.mxu1 %v5721_v1  ;;  %1244 = vmatprep.mubr.bf16.mxu0 %v5721_v1 }
  0x4a   :  { %1419 = vmatpush1.bf16.msra.mxu0 %v5541_v54  ;;  %v5576_v54 = vld [vmem:[%s8276_s0 + $0x1d0] ss:$196 sps:$4 sm:$0xff]  }
  0x4b   :  { %5131 = vmatprep.subr.msk.bf16.mxu0 %vm836_vm0, %v5041_v55 }
  0x50   :  { %5093 = vmatmul.mubr.msk.bf16.gmra.mxu1 %vm811_vm1, %v5778_v16  ;;  %5098 = vmatmul.mubr.msk.bf16.gmra.mxu0 %vm811_vm1, %v5846_v36 }
  0x51   :  { %1185 = vmatprep.mubr.bf16.mxu1 %v5721_v1  ;;  %1254 = vmatprep.mubr.bf16.mxu0 %v5721_v1 }
  0x58   :  { %5094 = vmatmul.mubr.msk.bf16.gmra.mxu1 %vm811_vm1, %v5816_v26  ;;  %5099 = vmatmul.mubr.msk.bf16.gmra.mxu0 %vm811_vm1, %v5871_v42 }
  0x59   :  { %1262 = vmatprep.mubr.bf16.mxu0 %v5721_v1  ;;  %1331 = vmatprep.mubr.bf16.mxu1 %v5721_v1 }
  0x60   :  { %5100 = vmatmul.mubr.msk.bf16.gmra.mxu0 %vm811_vm1, %v5888_v46  ;;  %5105 = vmatmul.mubr.msk.bf16.vlgmr.msra.gmra.mxu1 %vm811_vm1, %v5773_v15 }
  0x61   :  { %1520 = vmatpush1.bf16.msra.mxu1 %v868_v57  ;;  %1272 = vmatprep.mubr.bf16.mxu0 %v5721_v1  ;;  %v5583_v57 = vld [vmem:[%s8276_s0 + $0x4c] ss:$196 sps:$4 sm:$0xff]  }
  0x62   :  { %1341 = vmatprep.mubr.bf16.mxu1 %v5721_v1  ;;  %1521 = vmatprep.subr.bf16.mxu1 %v5546_v58 }
  0x65   :  { %1522 = vmatpush1.bf16.msra.mxu1 %v5544_v59 }
  0x66   :  { %1523 = vmatprep.subr.bf16.mxu1 %v5551_v60  ;;  %v6172_v60 = vld [vmem:[%s8276_s0 + $0x368] sm:$0x33] }
  0x67   :  { %v5051_v0 = vcombine.high %v6172_v60, %v6172_v60 }
  0x68   :  { %5101 = vmatmul.mubr.msk.bf16.gmra.mxu0 %vm811_vm1, %v5900_v47  ;;  %5106 = vmatmul.mubr.msk.bf16.gmra.mxu1 %vm811_vm1, %v5811_v25 }
  0x69   :  { %1280 = vmatprep.mubr.bf16.mxu0 %v5721_v1  ;;  %1349 = vmatprep.mubr.bf16.mxu1 %v5721_v1 }
  0x6a   :  { %1524 = vmatpush1.bf16.msra.mxu1 %v5549_v62 }
  0x6b   :  { %5140 = vmatprep.subr.msk.bf16.mxu1 %vm836_vm0, %v5043_v63  ;;  %v5581_v63 = vld [vmem:[%s8276_s0 + $0x48] ss:$196 sps:$4 sm:$0xff]  }
  0x70   :  { %5102 = vmatmul.mubr.msk.bf16.gmra.mxu0 %vm811_vm1, %v5778_v16  ;;  %5107 = vmatmul.mubr.msk.bf16.gmra.mxu1 %vm811_vm1, %v5846_v36 }
  0x71   :  { %1290 = vmatprep.mubr.bf16.mxu0 %v5721_v1  ;;  %1359 = vmatprep.mubr.bf16.mxu1 %v5721_v1 }
  0x78   :  { %5103 = vmatmul.mubr.msk.bf16.gmra.mxu0 %vm811_vm1, %v5816_v26  ;;  %5108 = vmatmul.mubr.msk.bf16.gmra.mxu1 %vm811_vm1, %v5871_v42 }
  0x79   :  { %1367 = vmatprep.mubr.bf16.mxu1 %v5721_v1  ;;  %1436 = vmatprep.mubr.bf16.mxu0 %v5721_v1 }
  0x80   :  { %5109 = vmatmul.mubr.msk.bf16.gmra.mxu1 %vm811_vm1, %v5888_v46  ;;  %5114 = vmatmul.mubr.msk.bf16.vlgmr.msra.gmra.mxu0 %vm811_vm1, %v5773_v15 }
  0x81   :  { %1625 = vmatpush1.bf16.msra.mxu0 %v874_v2  ;;  %1377 = vmatprep.mubr.bf16.mxu1 %v5721_v1 }
  0x82   :  { %1446 = vmatprep.mubr.bf16.mxu0 %v5721_v1  ;;  %1626 = vmatprep.subr.bf16.mxu0 %v5554_v3 }
  0x85   :  { %1627 = vmatpush1.bf16.msra.mxu0 %v5552_v4 }
  0x86   :  { %1628 = vmatprep.subr.bf16.mxu0 %v5559_v5 }
  0x88   :  { %5110 = vmatmul.mubr.msk.bf16.gmra.mxu1 %vm811_vm1, %v5900_v47  ;;  %5115 = vmatmul.mubr.msk.bf16.gmra.mxu0 %vm811_vm1, %v5811_v25 }
  0x89   :  { %1385 = vmatprep.mubr.bf16.mxu1 %v5721_v1  ;;  %1454 = vmatprep.mubr.bf16.mxu0 %v5721_v1 }
  0x8a   :  { %1629 = vmatpush1.bf16.msra.mxu0 %v5557_v7 }
  0x8b   :  { %5149 = vmatprep.subr.msk.bf16.mxu0 %vm836_vm0, %v5045_v8 }
  0x90   :  { %5111 = vmatmul.mubr.msk.bf16.gmra.mxu1 %vm811_vm1, %v5778_v16  ;;  %5116 = vmatmul.mubr.msk.bf16.gmra.mxu0 %vm811_vm1, %v5846_v36 }
  0x91   :  { %1395 = vmatprep.mubr.bf16.mxu1 %v5721_v1  ;;  %1464 = vmatprep.mubr.bf16.mxu0 %v5721_v1 }
  0x98   :  { %5112 = vmatmul.mubr.msk.bf16.gmra.mxu1 %vm811_vm1, %v5816_v26  ;;  %5117 = vmatmul.mubr.msk.bf16.gmra.mxu0 %vm811_vm1, %v5871_v42 }
  0x99   :  { %1472 = vmatprep.mubr.bf16.mxu0 %v5721_v1  ;;  %1541 = vmatprep.mubr.bf16.mxu1 %v5721_v1 }
  0xa0   :  { %5118 = vmatmul.mubr.msk.bf16.gmra.mxu0 %vm811_vm1, %v5888_v46  ;;  %5123 = vmatmul.mubr.msk.bf16.vlgmr.msra.gmra.mxu1 %vm811_vm1, %v5773_v15 }
  0xa1   :  { %1730 = vmatpush1.bf16.msra.mxu1 %v880_v10  ;;  %1482 = vmatprep.mubr.bf16.mxu0 %v5721_v1  ;;  %v6194_v10 = vpop.permute.xlu0 %4043 }
  0xa2   :  { %1551 = vmatprep.mubr.bf16.mxu1 %v5721_v1  ;;  %1731 = vmatprep.subr.bf16.mxu1 %v5562_v11 }
  0xa5   :  { %1732 = vmatpush1.bf16.msra.mxu1 %v5560_v12  ;;  %v6215_v43 = vpop.permute.xlu0 %4048 }
  0xa6   :  { %1733 = vmatprep.subr.bf16.mxu1 %v5567_v13 }
  0xa8   :  { %5119 = vmatmul.mubr.msk.bf16.gmra.mxu0 %vm811_vm1, %v5900_v47  ;;  %5124 = vmatmul.mubr.msk.bf16.gmra.mxu1 %vm811_vm1, %v5811_v25 }
  0xa9   :  { %1490 = vmatprep.mubr.bf16.mxu0 %v5721_v1  ;;  %1559 = vmatprep.mubr.bf16.mxu1 %v5721_v1 }
  0xaa   :  { %1734 = vmatpush1.bf16.msra.mxu1 %v5565_v17 }
  0xab   :  { %5158 = vmatprep.subr.msk.bf16.mxu1 %vm836_vm0, %v5047_v18 }
  0xb0   :  { %5120 = vmatmul.mubr.msk.bf16.gmra.mxu0 %vm811_vm1, %v5778_v16  ;;  %5125 = vmatmul.mubr.msk.bf16.gmra.mxu1 %vm811_vm1, %v5846_v36 }
  0xb1   :  { %1500 = vmatprep.mubr.bf16.mxu0 %v5721_v1  ;;  %1569 = vmatprep.mubr.bf16.mxu1 %v5721_v1 }
  0xb8   :  { %5121 = vmatmul.mubr.msk.bf16.gmra.mxu0 %vm811_vm1, %v5816_v26  ;;  %5126 = vmatmul.mubr.msk.bf16.gmra.mxu1 %vm811_vm1, %v5871_v42 }
  0xb9   :  { %1577 = vmatprep.mubr.bf16.mxu1 %v5721_v1  ;;  %1646 = vmatprep.mubr.bf16.mxu0 %v5721_v1 }
  0xc0   :  { %5127 = vmatmul.mubr.msk.bf16.gmra.mxu1 %vm811_vm1, %v5888_v46  ;;  %5132 = vmatmul.mubr.msk.bf16.vlgmr.msra.gmra.mxu0 %vm811_vm1, %v5773_v15 }
  0xc1   :  { %1835 = vmatpush1.bf16.msra.mxu0 %v886_v20  ;;  %1587 = vmatprep.mubr.bf16.mxu1 %v5721_v1 }
  0xc2   :  { %1656 = vmatprep.mubr.bf16.mxu0 %v5721_v1  ;;  %1836 = vmatprep.subr.bf16.mxu0 %v5570_v21 }
  0xc5   :  { %1837 = vmatpush1.bf16.msra.mxu0 %v5568_v22 }
  0xc6   :  { %1838 = vmatprep.subr.bf16.mxu0 %v5575_v23 }
  0xc8   :  { %5128 = vmatmul.mubr.msk.bf16.gmra.mxu1 %vm811_vm1, %v5900_v47  ;;  %5133 = vmatmul.mubr.msk.bf16.gmra.mxu0 %vm811_vm1, %v5811_v25 }
  0xc9   :  { %1595 = vmatprep.mubr.bf16.mxu1 %v5721_v1  ;;  %1664 = vmatprep.mubr.bf16.mxu0 %v5721_v1 }
  0xca   :  { %1839 = vmatpush1.bf16.msra.mxu0 %v5573_v27 }
  0xcb   :  { %5167 = vmatprep.subr.msk.bf16.mxu0 %vm836_vm0, %v5049_v28 }
  0xd0   :  { %v6109_v29 = vpop.f32.mrf.mxu0  ;;  %v6111_v30 = vpop.f32.mrf.mxu1  ;;  %5129 = vmatmul.mubr.msk.bf16.gmra.mxu1 %vm811_vm1, %v5778_v16  ;;  %5134 = vmatmul.mubr.msk.bf16.gmra.mxu0 %vm811_vm1, %v5846_v36 }
  0xd1   :  { %1605 = vmatprep.mubr.bf16.mxu1 %v5721_v1  ;;  %1674 = vmatprep.mubr.bf16.mxu0 %v5721_v1 }
  0xd2   :  { %v6119_v31 = vpop.f32.mrf.mxu0  ;;  %v6121_v32 = vpop.f32.mrf.mxu1 }
  0xd4   :  { %v6123_v33 = vpop.f32.mrf.mxu0  ;;  %v6125_v34 = vpop.f32.mrf.mxu1 }
  0xd6   :  { %v6127_v35 = vpop.f32.mrf.mxu0  ;;  %v6129_v37 = vpop.f32.mrf.mxu1 }
  0xd8   :  { %v6131_v38 = vpop.f32.mrf.mxu0  ;;  %v6133_v39 = vpop.f32.mrf.mxu1  ;;  %5130 = vmatmul.mubr.msk.bf16.gmra.mxu1 %vm811_vm1, %v5816_v26  ;;  %5135 = vmatmul.mubr.msk.bf16.gmra.mxu0 %vm811_vm1, %v5871_v42 }
  0xd9   :  { %1682 = vmatprep.mubr.bf16.mxu0 %v5721_v1  ;;  %1751 = vmatprep.mubr.bf16.mxu1 %v5721_v1 }
  0xda   :  { %v6141_v40 = vpop.f32.mrf.mxu0  ;;  %v6143_v41 = vpop.f32.mrf.mxu1 }
  0xdc   :  { %v1032_v44 = vpop.f32.mrf.mxu0  ;;  %v1086_v45 = vpop.f32.mrf.mxu1 }
  0xde   :  { %v1033_v48 = vpop.f32.mrf.mxu0  ;;  %v1087_v49 = vpop.f32.mrf.mxu1 }
  0xe0   :  { %v1036_v52 = vpop.f32.mrf.mxu0  ;;  %v6151_v53 = vpop.f32.mrf.mxu1  ;;  %5136 = vmatmul.mubr.msk.bf16.gmra.mxu0 %vm811_vm1, %v5888_v46  ;;  %5141 = vmatmul.mubr.msk.bf16.vlgmr.msra.gmra.mxu1 %vm811_vm1, %v5773_v15 }
  0xe1   :  { %1940 = vmatpush1.bf16.msra.mxu1 %v892_v50  ;;  %1692 = vmatprep.mubr.bf16.mxu0 %v5721_v1  ;;  %v3597_v13 = vmax.f32 %v6109_v29, %v1036_v52 }
  0xe2   :  { %v1038_v55 = vpop.f32.mrf.mxu0  ;;  %v6161_v56 = vpop.f32.mrf.mxu1  ;;  %1761 = vmatprep.mubr.bf16.mxu1 %v5721_v1  ;;  %1941 = vmatprep.subr.bf16.mxu1 %v5578_v51 }
  0xe3   :  { %v3598_v19 = vmax.f32 %v6119_v31, %v1038_v55 }
  0xe4   :  { %v1040_v58 = vpop.f32.mrf.mxu0  ;;  %v6167_v59 = vpop.f32.mrf.mxu1 }
  0xe5   :  { %1942 = vmatpush1.bf16.msra.mxu1 %v5576_v54  ;;  %v3646_v27 = vmax.f32 %v6123_v33, %v1040_v58 }
  0xe6   :  { %v1042_v61 = vpop.f32.mrf.mxu0  ;;  %v6174_v62 = vpop.f32.mrf.mxu1  ;;  %1943 = vmatprep.subr.bf16.mxu1 %v5583_v57  ;;  %v5048_v57 = vcombine.low %v6095_v24, %v6095_v24 }
  0xe7   :  { %v3647_v31 = vmax.f32 %v6127_v35, %v1042_v61 }
  0xe8   :  { %v1046_v2 = vpop.f32.mrf.mxu0  ;;  %v6181_v3 = vpop.f32.mrf.mxu1  ;;  %5137 = vmatmul.mubr.msk.bf16.gmra.mxu0 %vm811_vm1, %v5900_v47  ;;  %5142 = vmatmul.mubr.msk.bf16.gmra.mxu1 %vm811_vm1, %v5811_v25 }
  0xe9   :  { %1700 = vmatprep.mubr.bf16.mxu0 %v5721_v1  ;;  %1769 = vmatprep.mubr.bf16.mxu1 %v5721_v1  ;;  %v3695_v50 = vmax.f32 %v6131_v38, %v1046_v2 }
  0xea   :  { %v6189_v4 = vpop.f32.mrf.mxu0  ;;  %v6191_v5 = vpop.f32.mrf.mxu1  ;;  %1944 = vmatpush1.bf16.msra.mxu1 %v5581_v63 }
  0xeb   :  { %5176 = vmatprep.subr.msk.bf16.mxu1 %vm836_vm0, %v5051_v0  ;;  %v6238_v0 = vpop.permute.xlu1 %4053  ;;  %v3696_v2 = vmax.f32 %v6141_v40, %v6189_v4  ;;  %v5586_v40 = vld [vmem:[%s8276_s0 + $0x1dc] ss:$196 sps:$4 sm:$0xff]  }
  0xec   :  { %v1050_v6 = vpop.f32.mrf.mxu0  ;;  %v1137_v7 = vpop.f32.mrf.mxu1 }
  0xee   :  { %v1051_v8 = vpop.f32.mrf.mxu0  ;;  %v1138_v9 = vpop.f32.mrf.mxu1 }
  0xf0   :  { %v1054_v11 = vpop.f32.mrf.mxu0  ;;  %v6196_v12 = vpop.f32.mrf.mxu1  ;;  %5138 = vmatmul.mubr.msk.bf16.gmra.mxu0 %vm811_vm1, %v5778_v16  ;;  %5143 = vmatmul.mubr.msk.bf16.gmra.mxu1 %vm811_vm1, %v5846_v36 }
  0xf1   :  { %v3744_v14 = vmax.f32 %v1054_v11, %v6111_v30  ;;  %1710 = vmatprep.mubr.bf16.mxu0 %v5721_v1  ;;  %1779 = vmatprep.mubr.bf16.mxu1 %v5721_v1 }
  0xf2   :  { %v1056_v17 = vpop.f32.mrf.mxu0  ;;  %v6206_v18 = vpop.f32.mrf.mxu1 }
  0xf3   :  { %v3891_v20 = vmax.f32 %v3597_v13, %v3744_v14  ;;  %v3745_v21 = vmax.f32 %v1056_v17, %v6121_v32  ;;  %v898_v17 = vsel %vm836_vm0, %v5048_v57, 0 }
  0xf4   :  { %v1058_v22 = vpop.f32.mrf.mxu0  ;;  %v6210_v23 = vpop.f32.mrf.mxu1 }
  0xf5   :  { %v3892_v28 = vmax.f32 %v3598_v19, %v3745_v21  ;;  %v4056_v29 = vadd.f32 %v6194_v10, %v3891_v20  ;;  %v3793_v30 = vmax.f32 %v1058_v22, %v6125_v34  ;;  %v5584_v21 = vld [vmem:[%s8276_s0 + $0x1d8] ss:$196 sps:$4 sm:$0xff]  }
  0xf6   :  { %v1060_v44 = vpop.f32.mrf.mxu0  ;;  %v6217_v45 = vpop.f32.mrf.mxu1 }
  0xf7   :  { %v4057_v48 = vadd.f32 %v6194_v10, %v3892_v28  ;;  %v3940_v32 = vmax.f32 %v3646_v27, %v3793_v30  ;;  %v3794_v49 = vmax.f32 %v1060_v44, %v6129_v37  ;;  %v4203_v33 = vmax.f32 %v4056_v29, 0.0 }
  0xf8   :  { %v1064_v51 = vpop.f32.mrf.mxu0  ;;  %v6223_v52 = vpop.f32.mrf.mxu1  ;;  %5139 = vmatmul.mubr.msk.bf16.gmra.mxu0 %vm811_vm1, %v5816_v26  ;;  %5144 = vmatmul.mubr.msk.bf16.gmra.mxu1 %vm811_vm1, %v5871_v42 }
  0xf9   :  { %v4204_v34 = vmax.f32 %v4057_v48, 0.0  ;;  %v3941_v54 = vmax.f32 %v3647_v31, %v3794_v49  ;;  %v4105_v35 = vadd.f32 %v6215_v43, %v3940_v32  ;;  %v3842_v55 = vmax.f32 %v1064_v51, %v6133_v39  ;;  %1787 = vmatprep.mubr.bf16.mxu1 %v5721_v1  ;;  %1856 = vmatprep.mubr.bf16.mxu0 %v5721_v1  ;;  %v6276_v48 = vld [vmem:[%s8276_s0 + $0x370] sm:$0x33] }
  0xfa   :  { %v1066_v37 = vpop.f32.mrf.mxu0  ;;  %v6233_v38 = vpop.f32.mrf.mxu1 }
  0xfb   :  { %v5376_v58 = vpack.c.bf16 %v4204_v34, %v4203_v33  ;;  %v4106_v61 = vadd.f32 %v6215_v43, %v3941_v54  ;;  %v3989_v63 = vmax.f32 %v3695_v50, %v3842_v55  ;;  %v3843_v39 = vmax.f32 %v1066_v37, %v6143_v41  ;;  %v5589_v50 = vld [vmem:[%s8276_s0 + $0x50] ss:$196 sps:$4 sm:$0xff]  }
  0xfc   :  { %v1068_v6 = vpop.f32.mrf.mxu0  ;;  %v1155_v7 = vpop.f32.mrf.mxu1  ;;  %v4252_v8 = vmax.f32 %v4105_v35, 0.0  ;;  %v5053_v33 = vcombine.high %v6276_v48, %v6276_v48 }
  0xfd   :  { %4843 = vst [vmem:[%s8279_s3] sm:$0xff] %v5376_v58  ;;  %v4253_v9 = vmax.f32 %v4106_v61, 0.0  ;;  %v3990_v24 = vmax.f32 %v3696_v2, %v3843_v39  ;;  %v4154_v11 = vadd.f32 %v6238_v0, %v3989_v63  ;;  %v3600_v7 = vmax.f32 %v6161_v56, %v6206_v18 }
  0xfe   :  { %v1069_v13 = vpop.f32.mrf.mxu0  ;;  %v1156_v14 = vpop.f32.mrf.mxu1 }
  0xff   :  { %v5401_v41 = vpack.c.bf16 %v4253_v9, %v4252_v8  ;;  %v4155_v4 = vadd.f32 %v6238_v0, %v3990_v24  ;;  %v4301_v22 = vmax.f32 %v4154_v11, 0.0 }
 0x100   :  { %v1159_v19 = vpop.f32.mrf.mxu1  ;;  %v6252_v20 = vpop.f32.mrf.mxu0  ;;  %5145 = vmatmul.mubr.msk.bf16.gmra.mxu1 %vm811_vm1, %v5888_v46  ;;  %5150 = vmatmul.mubr.msk.bf16.vlgmr.msra.gmra.mxu0 %vm811_vm1, %v5773_v15  ;;  %v5591_v15 = vld [vmem:[%s8276_s0 + $0x54] ss:$196 sps:$4 sm:$0xff]  }
 0x101   :  { %4868 = vst [vmem:[%s8279_s3 + $0xc4] sm:$0xff] %v5401_v41  ;;  %2045 = vmatpush1.bf16.msra.mxu0 %v898_v17  ;;  %1797 = vmatprep.mubr.bf16.mxu1 %v5721_v1  ;;  %v4302_v27 = vmax.f32 %v4155_v4, 0.0  ;;  %v3649_v17 = vmax.f32 %v6174_v62, %v6217_v45  ;;  %v3697_v41 = vmax.f32 %v6181_v3, %v6223_v52 }
 0x102   :  { %v1161_v28 = vpop.f32.mrf.mxu1  ;;  %v6265_v29 = vpop.f32.mrf.mxu0  ;;  %1866 = vmatprep.mubr.bf16.mxu0 %v5721_v1  ;;  %2046 = vmatprep.subr.bf16.mxu0 %v5586_v40 }
 0x103   :  { %v5426_v30 = vpack.c.bf16 %v4302_v27, %v4301_v22  ;;  %v5050_v22 = vcombine.low %v6172_v60, %v6172_v60 }
 0x104   :  { %v1163_v44 = vpop.f32.mrf.mxu1  ;;  %v6271_v31 = vpop.f32.mrf.mxu0 }
 0x105   :  { %2047 = vmatpush1.bf16.msra.mxu0 %v5584_v21  ;;  %4893 = vst [vmem:[%s8279_s3 + $0x188] sm:$0x33] %v5426_v30 }
 0x106   :  { %v1165_v32 = vpop.f32.mrf.mxu1  ;;  %v6281_v49 = vpop.f32.mrf.mxu0  ;;  %2048 = vmatprep.subr.bf16.mxu0 %v5591_v15 }
 0x108   :  { %v1169_v51 = vpop.f32.mrf.mxu1  ;;  %v6288_v34 = vpop.f32.mrf.mxu0  ;;  %5146 = vmatmul.mubr.msk.bf16.gmra.mxu1 %vm811_vm1, %v5900_v47  ;;  %5151 = vmatmul.mubr.msk.bf16.gmra.mxu0 %vm811_vm1, %v5811_v25  ;;  %v3599_v25 = vmax.f32 %v6151_v53, %v6196_v12 }
 0x109   :  { %1805 = vmatprep.mubr.bf16.mxu1 %v5721_v1  ;;  %1874 = vmatprep.mubr.bf16.mxu0 %v5721_v1 }
 0x10a   :  { %v1171_v54 = vpop.f32.mrf.mxu1  ;;  %v6296_v35 = vpop.f32.mrf.mxu0  ;;  %2049 = vmatpush1.bf16.msra.mxu0 %v5589_v50 }
 0x10b   :  { %5185 = vmatprep.subr.msk.bf16.mxu0 %vm836_vm0, %v5053_v33 }
 0x10c   :  { %v1173_v55 = vpop.f32.mrf.mxu1  ;;  %v1242_v37 = vpop.f32.mrf.mxu0 }
 0x10d   :  { %v904_v37 = vsel %vm836_vm0, %v5050_v22, 0  ;;  %v6421_v22 = vld [vmem:[%s8277_s1 + $0x10] sm:$0xff]  }
 0x10e   :  { %v1174_v57 = vpop.f32.mrf.mxu1  ;;  %v1243_v58 = vpop.f32.mrf.mxu0 }
 0x110   :  { %v1177_v61 = vpop.f32.mrf.mxu1  ;;  %v6299_v63 = vpop.f32.mrf.mxu0  ;;  %5147 = vmatmul.mubr.msk.bf16.gmra.mxu1 %vm811_vm1, %v5778_v16  ;;  %5152 = vmatmul.mubr.msk.bf16.gmra.mxu0 %vm811_vm1, %v5846_v36  ;;  %v3648_v36 = vmax.f32 %v6167_v59, %v6210_v23 }
 0x111   :  { %v3746_v2 = vmax.f32 %v1159_v19, %v1177_v61  ;;  %1815 = vmatprep.mubr.bf16.mxu1 %v5721_v1  ;;  %1884 = vmatprep.mubr.bf16.mxu0 %v5721_v1  ;;  %v6357_v61 = vld [vmem:[%s8277_s1] sm:$0xff]  }
 0x112   :  { %v1179_v39 = vpop.f32.mrf.mxu1  ;;  %v6309_v6 = vpop.f32.mrf.mxu0 }
 0x113   :  { %v3893_v8 = vmax.f32 %v3599_v25, %v3746_v2  ;;  %v3747_v9 = vmax.f32 %v1161_v28, %v1179_v39  ;;  %v5592_v25 = vld [vmem:[%s8276_s0 + $0x1e0] ss:$196 sps:$4 sm:$0xff]  }
 0x114   :  { %v1181_v16 = vpop.f32.mrf.mxu1  ;;  %v6313_v24 = vpop.f32.mrf.mxu0 }
 0x115   :  { %v4058_v53 = vadd.f32 %v6194_v10, %v3893_v8  ;;  %v3894_v12 = vmax.f32 %v3600_v7, %v3747_v9  ;;  %v3795_v11 = vmax.f32 %v1163_v44, %v1181_v16  ;;  %v5599_v8 = vld [vmem:[%s8276_s0 + $0x5c] ss:$196 sps:$4 sm:$0xff]  }
 0x116   :  { %v1183_v13 = vpop.f32.mrf.mxu1  ;;  %v6318_v14 = vpop.f32.mrf.mxu0 }
 0x117   :  { %v4059_v56 = vadd.f32 %v6194_v10, %v3894_v12  ;;  %v3942_v18 = vmax.f32 %v3648_v36, %v3795_v11  ;;  %v3796_v40 = vmax.f32 %v1165_v32, %v1183_v13  ;;  %v4205_v4 = vmax.f32 %v4058_v53, 0.0  ;;  %v6379_v53 = vld [vmem:[%s8276_s0 + $0x378] sm:$0x33] }
 0x118   :  { %v1187_v19 = vpop.f32.mrf.mxu1  ;;  %v6325_v59 = vpop.f32.mrf.mxu0  ;;  %5148 = vmatmul.mubr.msk.bf16.gmra.mxu1 %vm811_vm1, %v5816_v26  ;;  %5153 = vmatmul.mubr.msk.bf16.gmra.mxu0 %vm811_vm1, %v5871_v42  ;;  %v3698_v42 = vmax.f32 %v6191_v5, %v6233_v38  ;;  %v5594_v5 = vld [vmem:[%s8276_s0 + $0x1e4] ss:$196 sps:$4 sm:$0xff]   ;;  %v5597_v13 = vld [vmem:[%s8276_s0 + $0x58] ss:$196 sps:$4 sm:$0xff]  }
 0x119   :  { %v4206_v23 = vmax.f32 %v4059_v56, 0.0  ;;  %v4107_v62 = vadd.f32 %v6215_v43, %v3942_v18  ;;  %v3943_v45 = vmax.f32 %v3649_v17, %v3796_v40  ;;  %v3844_v21 = vmax.f32 %v1169_v51, %v1187_v19  ;;  %1892 = vmatprep.mubr.bf16.mxu0 %v5721_v1  ;;  %1961 = vmatprep.mubr.bf16.mxu1 %v5721_v1  ;;  %v6398_v40 = vld [vmem:[%s8277_s1 + $0x8] sm:$0xff]  }
 0x11a   :  { %v1189_v3 = vpop.f32.mrf.mxu1  ;;  %v6334_v52 = vpop.f32.mrf.mxu0  ;;  %v5055_v17 = vcombine.high %v6379_v53, %v6379_v53 }
 0x11b   :  { %v5377_v27 = vpack.c.bf16 %v4206_v23, %v4205_v4  ;;  %v4108_v26 = vadd.f32 %v6215_v43, %v3943_v45  ;;  %v3991_v28 = vmax.f32 %v3697_v41, %v3844_v21  ;;  %v3845_v15 = vmax.f32 %v1171_v54, %v1189_v3  ;;  %v6414_v3 = vld [vmem:[%s8277_s1 + $0x30] sm:$0xff]  }
 0x11c   :  { %v1191_v30 = vpop.f32.mrf.mxu1  ;;  %v1260_v44 = vpop.f32.mrf.mxu0  ;;  %v4254_v32 = vmax.f32 %v4107_v62, 0.0 }
 0x11d   :  { %4844 = vst [vmem:[%s8279_s3 + $0x8] sm:$0xff] %v5377_v27  ;;  %v4255_v50 = vmax.f32 %v4108_v26, 0.0  ;;  %v4156_v33 = vadd.f32 %v6238_v0, %v3991_v28  ;;  %v3992_v51 = vmax.f32 %v3698_v42, %v3845_v15  ;;  %v3601_v27 = vmax.f32 %v6252_v20, %v6299_v63 }
 0x11e   :  { %v1192_v60 = vpop.f32.mrf.mxu1  ;;  %v1261_v55 = vpop.f32.mrf.mxu0  ;;  %v3602_v15 = vmax.f32 %v6265_v29, %v6309_v6 }
 0x11f   :  { %v5402_v38 = vpack.c.bf16 %v4255_v50, %v4254_v32  ;;  %v4157_v54 = vadd.f32 %v6238_v0, %v3992_v51 }
 0x120   :  { %v1264_v57 = vpop.f32.mrf.mxu0  ;;  %v6350_v58 = vpop.f32.mrf.mxu1  ;;  %5154 = vmatmul.mubr.msk.bf16.gmra.mxu0 %vm811_vm1, %v5888_v46  ;;  %5159 = vmatmul.mubr.msk.bf16.vlgmr.msra.gmra.mxu1 %vm811_vm1, %v6357_v61  ;;  %v4303_v46 = vmax.f32 %v4156_v33, 0.0  ;;  %v3650_v33 = vmax.f32 %v6271_v31, %v6313_v24  ;;  %v6450_v24 = vld [vmem:[%s8277_s1 + $0x38] sm:$0xff]  }
 0x121   :  { %4869 = vst [vmem:[%s8279_s3 + $0xcc] sm:$0xff] %v5402_v38  ;;  %2150 = vmatpush1.bf16.msra.mxu1 %v904_v37  ;;  %1902 = vmatprep.mubr.bf16.mxu0 %v5721_v1  ;;  %v4304_v2 = vmax.f32 %v4157_v54, 0.0  ;;  %v3651_v37 = vmax.f32 %v6281_v49, %v6318_v14  ;;  %v3699_v38 = vmax.f32 %v6288_v34, %v6325_v59  ;;  %v6457_v49 = vld [vmem:[%s8277_s1 + $0x18] sm:$0xff]  }
 0x122   :  { %v1266_v39 = vpop.f32.mrf.mxu0  ;;  %v6368_v7 = vpop.f32.mrf.mxu1  ;;  %1971 = vmatprep.mubr.bf16.mxu1 %v5721_v1  ;;  %2151 = vmatprep.subr.bf16.mxu1 %v5594_v5 }
 0x123   :  { %v5427_v9 = vpack.c.bf16 %v4304_v2, %v4303_v46 }
 0x124   :  { %v1268_v16 = vpop.f32.mrf.mxu0  ;;  %v6374_v36 = vpop.f32.mrf.mxu1 }
 0x125   :  { %2152 = vmatpush1.bf16.msra.mxu1 %v5592_v25  ;;  %4894 = vst [vmem:[%s8279_s3 + $0x190] sm:$0x33] %v5427_v9 }
 0x126   :  { %v1270_v12 = vpop.f32.mrf.mxu0  ;;  %v6384_v11 = vpop.f32.mrf.mxu1  ;;  %2153 = vmatprep.subr.bf16.mxu1 %v5599_v8 }
 0x128   :  { %v1274_v56 = vpop.f32.mrf.mxu0  ;;  %v6391_v18 = vpop.f32.mrf.mxu1  ;;  %5155 = vmatmul.mubr.msk.bf16.gmra.mxu0 %vm811_vm1, %v5900_v47  ;;  %5160 = vmatmul.mubr.msk.bf16.gmra.mxu1 %vm811_vm1, %v6398_v40 }
 0x129   :  { %1910 = vmatprep.mubr.bf16.mxu0 %v5721_v1  ;;  %1979 = vmatprep.mubr.bf16.mxu1 %v5721_v1 }
 0x12a   :  { %v6404_v41 = vpop.f32.mrf.mxu0  ;;  %v6406_v4 = vpop.f32.mrf.mxu1  ;;  %2154 = vmatpush1.bf16.msra.mxu1 %v5597_v13 }
 0x12b   :  { %5194 = vmatprep.subr.msk.bf16.mxu1 %vm836_vm0, %v5055_v17 }
 0x12c   :  { %v1278_v47 = vpop.f32.mrf.mxu0  ;;  %v1347_v19 = vpop.f32.mrf.mxu1 }
 0x12e   :  { %v1279_v23 = vpop.f32.mrf.mxu0  ;;  %v1348_v62 = vpop.f32.mrf.mxu1 }
 0x130   :  { %v1282_v45 = vpop.f32.mrf.mxu0  ;;  %v6409_v21 = vpop.f32.mrf.mxu1  ;;  %5156 = vmatmul.mubr.msk.bf16.gmra.mxu0 %vm811_vm1, %v6414_v3  ;;  %5161 = vmatmul.mubr.msk.bf16.gmra.mxu1 %vm811_vm1, %v6421_v22 }
 0x131   :  { %v3748_v26 = vmax.f32 %v1264_v57, %v1282_v45  ;;  %1920 = vmatprep.mubr.bf16.mxu0 %v5721_v1  ;;  %1989 = vmatprep.mubr.bf16.mxu1 %v5721_v1 }
 0x132   :  { %v1284_v28 = vpop.f32.mrf.mxu0  ;;  %v6429_v42 = vpop.f32.mrf.mxu1 }
 0x133   :  { %v3895_v30 = vmax.f32 %v3601_v27, %v3748_v26  ;;  %v3749_v44 = vmax.f32 %v1266_v39, %v1284_v28  ;;  %v5052_v39 = vcombine.low %v6276_v48, %v6276_v48 }
 0x134   :  { %v1286_v32 = vpop.f32.mrf.mxu0  ;;  %v6433_v50 = vpop.f32.mrf.mxu1 }
 0x135   :  { %v4060_v20 = vadd.f32 %v6194_v10, %v3895_v30  ;;  %v3896_v63 = vmax.f32 %v3602_v15, %v3749_v44  ;;  %v3797_v51 = vmax.f32 %v1268_v16, %v1286_v32  ;;  %v910_v27 = vsel %vm836_vm0, %v5052_v39, 0  ;;  %v6486_v15 = vld [vmem:[%s8277_s1 + $0x20] sm:$0xff]   ;;  %v5600_v30 = vld [vmem:[%s8276_s0 + $0x1e8] ss:$196 sps:$4 sm:$0xff]  }
 0x136   :  { %v1288_v60 = vpop.f32.mrf.mxu0  ;;  %v6438_v55 = vpop.f32.mrf.mxu1 }
 0x137   :  { %v4061_v29 = vadd.f32 %v6194_v10, %v3896_v63  ;;  %v3944_v6 = vmax.f32 %v3650_v33, %v3797_v51  ;;  %v3798_v5 = vmax.f32 %v1270_v12, %v1288_v60  ;;  %v4207_v54 = vmax.f32 %v4060_v20, 0.0  ;;  %v5607_v63 = vld [vmem:[%s8276_s0 + $0x64] ss:$196 sps:$4 sm:$0xff]  }
 0x138   :  { %v1292_v57 = vpop.f32.mrf.mxu0  ;;  %v6445_v31 = vpop.f32.mrf.mxu1  ;;  %5157 = vmatmul.mubr.msk.bf16.gmra.mxu0 %vm811_vm1, %v6450_v24  ;;  %5162 = vmatmul.mubr.msk.bf16.gmra.mxu1 %vm811_vm1, %v6457_v49  ;;  %v3700_v12 = vmax.f32 %v6296_v35, %v6334_v52  ;;  %v5602_v35 = vld [vmem:[%s8276_s0 + $0x1ec] ss:$196 sps:$4 sm:$0xff]  }
 0x139   :  { %v4208_v34 = vmax.f32 %v4061_v29, 0.0  ;;  %v4109_v14 = vadd.f32 %v6215_v43, %v3944_v6  ;;  %v3945_v59 = vmax.f32 %v3651_v37, %v3798_v5  ;;  %v3846_v25 = vmax.f32 %v1274_v56, %v1292_v57  ;;  %1997 = vmatprep.mubr.bf16.mxu1 %v5721_v1  ;;  %2066 = vmatprep.mubr.bf16.mxu0 %v5721_v1  ;;  %v6510_v29 = vld [vmem:[%s8276_s0 + $0x380] sm:$0x33] }
 0x13a   :  { %v1294_v46 = vpop.f32.mrf.mxu0  ;;  %v6464_v2 = vpop.f32.mrf.mxu1 }
 0x13b   :  { %v5378_v8 = vpack.c.bf16 %v4208_v34, %v4207_v54  ;;  %v4110_v9 = vadd.f32 %v6215_v43, %v3945_v59  ;;  %v3993_v16 = vmax.f32 %v3699_v38, %v3846_v25  ;;  %v3847_v13 = vmax.f32 %v6404_v41, %v1294_v46  ;;  %v5605_v38 = vld [vmem:[%s8276_s0 + $0x60] ss:$196 sps:$4 sm:$0xff]  }
 0x13c   :  { %v1296_v17 = vpop.f32.mrf.mxu0  ;;  %v1365_v56 = vpop.f32.mrf.mxu1  ;;  %v4256_v47 = vmax.f32 %v4109_v14, 0.0  ;;  %v5057_v54 = vcombine.high %v6510_v29, %v6510_v29  ;;  %v6527_v14 = vld [vmem:[%s8277_s1 + $0x28] sm:$0xff]  }
 0x13d   :  { %4845 = vst [vmem:[%s8279_s3 + $0x10] sm:$0xff] %v5378_v8  ;;  %v4257_v19 = vmax.f32 %v4110_v9, 0.0  ;;  %v4158_v23 = vadd.f32 %v6238_v0, %v3993_v16  ;;  %v3994_v48 = vmax.f32 %v3700_v12, %v3847_v13  ;;  %v3603_v13 = vmax.f32 %v6350_v58, %v6409_v21 }
 0x13e   :  { %v1297_v62 = vpop.f32.mrf.mxu0  ;;  %v1366_v45 = vpop.f32.mrf.mxu1 }
 0x13f   :  { %v5403_v52 = vpack.c.bf16 %v4257_v19, %v4256_v47  ;;  %v4159_v41 = vadd.f32 %v6238_v0, %v3994_v48  ;;  %v4305_v44 = vmax.f32 %v4158_v23, 0.0  ;;  %v3604_v19 = vmax.f32 %v6368_v7, %v6429_v42 }
 0x140   :  { %v1369_v26 = vpop.f32.mrf.mxu1  ;;  %v6481_v28 = vpop.f32.mrf.mxu0  ;;  %5163 = vmatmul.mubr.msk.bf16.gmra.mxu1 %vm811_vm1, %v6486_v15  ;;  %5168 = vmatmul.mubr.msk.bf16.vlgmr.msra.gmra.mxu0 %vm811_vm1, %v6357_v61 }
 0x141   :  { %4870 = vst [vmem:[%s8279_s3 + $0xd4] sm:$0xff] %v5403_v52  ;;  %2255 = vmatpush1.bf16.msra.mxu0 %v910_v27  ;;  %2007 = vmatprep.mubr.bf16.mxu1 %v5721_v1  ;;  %v4306_v32 = vmax.f32 %v4159_v41, 0.0  ;;  %v3652_v27 = vmax.f32 %v6374_v36, %v6433_v50 }
 0x142   :  { %v1371_v33 = vpop.f32.mrf.mxu1  ;;  %v6499_v20 = vpop.f32.mrf.mxu0  ;;  %2076 = vmatprep.mubr.bf16.mxu0 %v5721_v1  ;;  %2256 = vmatprep.subr.bf16.mxu0 %v5602_v35 }
 0x143   :  { %v5428_v51 = vpack.c.bf16 %v4306_v32, %v4305_v44  ;;  %v3701_v44 = vmax.f32 %v6391_v18, %v6445_v31 }
 0x144   :  { %v1373_v60 = vpop.f32.mrf.mxu1  ;;  %v6505_v37 = vpop.f32.mrf.mxu0 }
 0x145   :  { %2257 = vmatpush1.bf16.msra.mxu0 %v5600_v30  ;;  %4895 = vst [vmem:[%s8279_s3 + $0x198] sm:$0x33] %v5428_v51  ;;  %v5054_v51 = vcombine.low %v6379_v53, %v6379_v53 }
 0x146   :  { %v1375_v6 = vpop.f32.mrf.mxu1  ;;  %v6515_v5 = vpop.f32.mrf.mxu0  ;;  %2258 = vmatprep.subr.bf16.mxu0 %v5607_v63 }
 0x148   :  { %v1379_v57 = vpop.f32.mrf.mxu1  ;;  %v6522_v34 = vpop.f32.mrf.mxu0  ;;  %5164 = vmatmul.mubr.msk.bf16.gmra.mxu1 %vm811_vm1, %v6527_v14  ;;  %5169 = vmatmul.mubr.msk.bf16.gmra.mxu0 %vm811_vm1, %v6398_v40 }
 0x149   :  { %2015 = vmatprep.mubr.bf16.mxu1 %v5721_v1  ;;  %2084 = vmatprep.mubr.bf16.mxu0 %v5721_v1 }
 0x14a   :  { %v1381_v59 = vpop.f32.mrf.mxu1  ;;  %v6535_v25 = vpop.f32.mrf.mxu0  ;;  %2259 = vmatpush1.bf16.msra.mxu0 %v5605_v38 }
 0x14b   :  { %5203 = vmatprep.subr.msk.bf16.mxu0 %vm836_vm0, %v5057_v54  ;;  %v3702_v54 = vmax.f32 %v6406_v4, %v6464_v2  ;;  %v5610_v4 = vld [vmem:[%s8276_s0 + $0x1f4] ss:$196 sps:$4 sm:$0xff]  }
 0x14c   :  { %v1383_v46 = vpop.f32.mrf.mxu1  ;;  %v1452_v39 = vpop.f32.mrf.mxu0 }
 0x14e   :  { %v1384_v8 = vpop.f32.mrf.mxu1  ;;  %v1453_v9 = vpop.f32.mrf.mxu0 }
 0x150   :  { %v1387_v16 = vpop.f32.mrf.mxu1  ;;  %v6538_v12 = vpop.f32.mrf.mxu0  ;;  %5165 = vmatmul.mubr.msk.bf16.gmra.mxu1 %vm811_vm1, %v6414_v3  ;;  %5170 = vmatmul.mubr.msk.bf16.gmra.mxu0 %vm811_vm1, %v6421_v22 }
 0x151   :  { %v3750_v17 = vmax.f32 %v1369_v26, %v1387_v16  ;;  %2025 = vmatprep.mubr.bf16.mxu1 %v5721_v1  ;;  %2094 = vmatprep.mubr.bf16.mxu0 %v5721_v1  ;;  %v3653_v26 = vmax.f32 %v6384_v11, %v6438_v55 }
 0x152   :  { %v1389_v56 = vpop.f32.mrf.mxu1  ;;  %v6548_v47 = vpop.f32.mrf.mxu0 }
 0x153   :  { %v3897_v23 = vmax.f32 %v3603_v13, %v3750_v17  ;;  %v3751_v48 = vmax.f32 %v1371_v33, %v1389_v56  ;;  %v916_v56 = vsel %vm836_vm0, %v5054_v51, 0 }
 0x154   :  { %v1391_v62 = vpop.f32.mrf.mxu1  ;;  %v6552_v45 = vpop.f32.mrf.mxu0 }
 0x155   :  { %v4062_v58 = vadd.f32 %v6194_v10, %v3897_v23  ;;  %v3898_v21 = vmax.f32 %v3604_v19, %v3751_v48  ;;  %v3799_v35 = vmax.f32 %v1373_v60, %v1391_v62  ;;  %v5608_v48 = vld [vmem:[%s8276_s0 + $0x1f0] ss:$196 sps:$4 sm:$0xff]  }
 0x156   :  { %v1393_v52 = vpop.f32.mrf.mxu1  ;;  %v6557_v41 = vpop.f32.mrf.mxu0 }
 0x157   :  { %v4063_v7 = vadd.f32 %v6194_v10, %v3898_v21  ;;  %v3946_v42 = vmax.f32 %v3652_v27, %v3799_v35  ;;  %v3800_v30 = vmax.f32 %v1375_v6, %v1393_v52  ;;  %v4209_v32 = vmax.f32 %v4062_v58, 0.0  ;;  %v5615_v35 = vld [vmem:[%s8276_s0 + $0x6c] ss:$196 sps:$4 sm:$0xff]  }
 0x158   :  { %v1397_v33 = vpop.f32.mrf.mxu1  ;;  %v6564_v36 = vpop.f32.mrf.mxu0  ;;  %5166 = vmatmul.mubr.msk.bf16.gmra.mxu1 %vm811_vm1, %v6450_v24  ;;  %5171 = vmatmul.mubr.msk.bf16.gmra.mxu0 %vm811_vm1, %v6457_v49 }
 0x159   :  { %v4210_v50 = vmax.f32 %v4063_v7, 0.0  ;;  %v4111_v11 = vadd.f32 %v6215_v43, %v3946_v42  ;;  %v3947_v55 = vmax.f32 %v3653_v26, %v3800_v30  ;;  %v3848_v63 = vmax.f32 %v1379_v57, %v1397_v33  ;;  %2102 = vmatprep.mubr.bf16.mxu0 %v5721_v1  ;;  %2171 = vmatprep.mubr.bf16.mxu1 %v5721_v1  ;;  %v6613_v42 = vld [vmem:[%s8276_s0 + $0x388] sm:$0x33] }
 0x15a   :  { %v1399_v18 = vpop.f32.mrf.mxu1  ;;  %v6573_v31 = vpop.f32.mrf.mxu0  ;;  %v5059_v33 = vcombine.high %v6613_v42, %v6613_v42 }
 0x15b   :  { %v5379_v60 = vpack.c.bf16 %v4210_v50, %v4209_v32  ;;  %v4112_v6 = vadd.f32 %v6215_v43, %v3947_v55  ;;  %v3995_v38 = vmax.f32 %v3701_v44, %v3848_v63  ;;  %v3849_v46 = vmax.f32 %v1381_v59, %v1399_v18  ;;  %v5613_v32 = vld [vmem:[%s8276_s0 + $0x68] ss:$196 sps:$4 sm:$0xff]  }
 0x15c   :  { %v1401_v39 = vpop.f32.mrf.mxu1  ;;  %v1470_v57 = vpop.f32.mrf.mxu0  ;;  %v4258_v8 = vmax.f32 %v4111_v11, 0.0 }
 0x15d   :  { %4846 = vst [vmem:[%s8279_s3 + $0x18] sm:$0xff] %v5379_v60  ;;  %v4259_v9 = vmax.f32 %v4112_v6, 0.0  ;;  %v4160_v16 = vadd.f32 %v6238_v0, %v3995_v38  ;;  %v3996_v13 = vmax.f32 %v3702_v54, %v3849_v46  ;;  %v3605_v46 = vmax.f32 %v6481_v28, %v6538_v12 }
 0x15e   :  { %v1402_v53 = vpop.f32.mrf.mxu1  ;;  %v1471_v17 = vpop.f32.mrf.mxu0 }
 0x15f   :  { %v5404_v2 = vpack.c.bf16 %v4259_v9, %v4258_v8  ;;  %v4161_v59 = vadd.f32 %v6238_v0, %v3996_v13  ;;  %v4307_v62 = vmax.f32 %v4160_v16, 0.0  ;;  %v3606_v9 = vmax.f32 %v6499_v20, %v6548_v47 }
 0x160   :  { %v1474_v19 = vpop.f32.mrf.mxu0  ;;  %v6589_v23 = vpop.f32.mrf.mxu1  ;;  %5172 = vmatmul.mubr.msk.bf16.gmra.mxu0 %vm811_vm1, %v6486_v15  ;;  %5177 = vmatmul.mubr.msk.bf16.vlgmr.msra.gmra.mxu1 %vm811_vm1, %v6357_v61 }
 0x161   :  { %4871 = vst [vmem:[%s8279_s3 + $0xdc] sm:$0xff] %v5404_v2  ;;  %2360 = vmatpush1.bf16.msra.mxu1 %v916_v56  ;;  %2112 = vmatprep.mubr.bf16.mxu0 %v5721_v1  ;;  %v4308_v27 = vmax.f32 %v4161_v59, 0.0  ;;  %v3654_v56 = vmax.f32 %v6505_v37, %v6552_v45 }
 0x162   :  { %v1476_v58 = vpop.f32.mrf.mxu0  ;;  %v6602_v21 = vpop.f32.mrf.mxu1  ;;  %2181 = vmatprep.mubr.bf16.mxu1 %v5721_v1  ;;  %2361 = vmatprep.subr.bf16.mxu1 %v5610_v4 }
 0x163   :  { %v5429_v52 = vpack.c.bf16 %v4308_v27, %v4307_v62  ;;  %v3703_v62 = vmax.f32 %v6522_v34, %v6564_v36 }
 0x164   :  { %v1478_v26 = vpop.f32.mrf.mxu0  ;;  %v6608_v7 = vpop.f32.mrf.mxu1 }
 0x165   :  { %2362 = vmatpush1.bf16.msra.mxu1 %v5608_v48  ;;  %4896 = vst [vmem:[%s8279_s3 + $0x1a0] sm:$0x33] %v5429_v52  ;;  %v5056_v52 = vcombine.low %v6510_v29, %v6510_v29 }
 0x166   :  { %v1480_v30 = vpop.f32.mrf.mxu0  ;;  %v6618_v44 = vpop.f32.mrf.mxu1  ;;  %2363 = vmatprep.subr.bf16.mxu1 %v5615_v35 }
 0x168   :  { %v1484_v50 = vpop.f32.mrf.mxu0  ;;  %v6625_v11 = vpop.f32.mrf.mxu1  ;;  %5173 = vmatmul.mubr.msk.bf16.gmra.mxu0 %vm811_vm1, %v6527_v14  ;;  %5178 = vmatmul.mubr.msk.bf16.gmra.mxu1 %vm811_vm1, %v6398_v40 }
 0x169   :  { %2120 = vmatprep.mubr.bf16.mxu0 %v5721_v1  ;;  %2189 = vmatprep.mubr.bf16.mxu1 %v5721_v1 }
 0x16a   :  { %v1486_v55 = vpop.f32.mrf.mxu0  ;;  %v6633_v63 = vpop.f32.mrf.mxu1  ;;  %2364 = vmatpush1.bf16.msra.mxu1 %v5613_v32 }
 0x16b   :  { %5212 = vmatprep.subr.msk.bf16.mxu1 %vm836_vm0, %v5059_v33  ;;  %v3704_v33 = vmax.f32 %v6535_v25, %v6573_v31  ;;  %v5618_v25 = vld [vmem:[%s8276_s0 + $0x1fc] ss:$196 sps:$4 sm:$0xff]  }
 0x16c   :  { %v1488_v18 = vpop.f32.mrf.mxu0  ;;  %v1557_v51 = vpop.f32.mrf.mxu1 }
 0x16e   :  { %v1489_v60 = vpop.f32.mrf.mxu0  ;;  %v1558_v6 = vpop.f32.mrf.mxu1 }
 0x170   :  { %v1492_v38 = vpop.f32.mrf.mxu0  ;;  %v6636_v54 = vpop.f32.mrf.mxu1  ;;  %5174 = vmatmul.mubr.msk.bf16.gmra.mxu0 %vm811_vm1, %v6414_v3  ;;  %5179 = vmatmul.mubr.msk.bf16.gmra.mxu1 %vm811_vm1, %v6421_v22 }
 0x171   :  { %v3752_v39 = vmax.f32 %v1474_v19, %v1492_v38  ;;  %2130 = vmatprep.mubr.bf16.mxu0 %v5721_v1  ;;  %2199 = vmatprep.mubr.bf16.mxu1 %v5721_v1  ;;  %v3655_v19 = vmax.f32 %v6515_v5, %v6557_v41 }
 0x172   :  { %v1494_v57 = vpop.f32.mrf.mxu0  ;;  %v6646_v8 = vpop.f32.mrf.mxu1 }
 0x173   :  { %v3899_v16 = vmax.f32 %v3605_v46, %v3752_v39  ;;  %v3753_v13 = vmax.f32 %v1476_v58, %v1494_v57  ;;  %v922_v57 = vsel %vm836_vm0, %v5056_v52, 0 }
 0x174   :  { %v1496_v53 = vpop.f32.mrf.mxu0  ;;  %v6650_v17 = vpop.f32.mrf.mxu1 }
 0x175   :  { %v4064_v28 = vadd.f32 %v6194_v10, %v3899_v16  ;;  %v3900_v12 = vmax.f32 %v3606_v9, %v3753_v13  ;;  %v3801_v4 = vmax.f32 %v1478_v26, %v1496_v53  ;;  %v5616_v13 = vld [vmem:[%s8276_s0 + $0x1f8] ss:$196 sps:$4 sm:$0xff]  }
 0x176   :  { %v1498_v2 = vpop.f32.mrf.mxu0  ;;  %v6655_v59 = vpop.f32.mrf.mxu1 }
 0x177   :  { %v4065_v20 = vadd.f32 %v6194_v10, %v3900_v12  ;;  %v3948_v47 = vmax.f32 %v3654_v56, %v3801_v4  ;;  %v3802_v48 = vmax.f32 %v1480_v30, %v1498_v2  ;;  %v4211_v27 = vmax.f32 %v4064_v28, 0.0  ;;  %v5623_v4 = vld [vmem:[%s8276_s0 + $0x74] ss:$196 sps:$4 sm:$0xff]  }
 0x178   :  { %v1502_v58 = vpop.f32.mrf.mxu0  ;;  %v6662_v37 = vpop.f32.mrf.mxu1  ;;  %5175 = vmatmul.mubr.msk.bf16.gmra.mxu0 %vm811_vm1, %v6450_v24  ;;  %5180 = vmatmul.mubr.msk.bf16.gmra.mxu1 %vm811_vm1, %v6457_v49 }
 0x179   :  { %v4212_v45 = vmax.f32 %v4065_v20, 0.0  ;;  %v4113_v5 = vadd.f32 %v6215_v43, %v3948_v47  ;;  %v3949_v41 = vmax.f32 %v3655_v19, %v3802_v48  ;;  %v3850_v35 = vmax.f32 %v1484_v50, %v1502_v58  ;;  %2207 = vmatprep.mubr.bf16.mxu1 %v5721_v1  ;;  %2276 = vmatprep.mubr.bf16.mxu0 %v5721_v1  ;;  %v6711_v47 = vld [vmem:[%s8276_s0 + $0x390] sm:$0x33] }
 0x17a   :  { %v1504_v34 = vpop.f32.mrf.mxu0  ;;  %v6671_v36 = vpop.f32.mrf.mxu1  ;;  %v5061_v58 = vcombine.high %v6711_v47, %v6711_v47 }
 0x17b   :  { %v5380_v26 = vpack.c.bf16 %v4212_v45, %v4211_v27  ;;  %v4114_v30 = vadd.f32 %v6215_v43, %v3949_v41  ;;  %v3997_v32 = vmax.f32 %v3703_v62, %v3850_v35  ;;  %v3851_v18 = vmax.f32 %v1486_v55, %v1504_v34  ;;  %v5621_v27 = vld [vmem:[%s8276_s0 + $0x70] ss:$196 sps:$4 sm:$0xff]  }
 0x17c   :  { %v1506_v51 = vpop.f32.mrf.mxu0  ;;  %v1575_v50 = vpop.f32.mrf.mxu1  ;;  %v4260_v60 = vmax.f32 %v4113_v5, 0.0 }
 0x17d   :  { %4847 = vst [vmem:[%s8279_s3 + $0x20] sm:$0xff] %v5380_v26  ;;  %v4261_v6 = vmax.f32 %v4114_v30, 0.0  ;;  %v4162_v38 = vadd.f32 %v6238_v0, %v3997_v32  ;;  %v3998_v46 = vmax.f32 %v3704_v33, %v3851_v18  ;;  %v3607_v18 = vmax.f32 %v6589_v23, %v6636_v54 }
 0x17e   :  { %v1507_v29 = vpop.f32.mrf.mxu0  ;;  %v1576_v39 = vpop.f32.mrf.mxu1 }
 0x17f   :  { %v5405_v31 = vpack.c.bf16 %v4261_v6, %v4260_v60  ;;  %v4163_v55 = vadd.f32 %v6238_v0, %v3998_v46  ;;  %v4309_v53 = vmax.f32 %v4162_v38, 0.0  ;;  %v3608_v6 = vmax.f32 %v6602_v21, %v6646_v8 }
 0x180   :  { %v1579_v9 = vpop.f32.mrf.mxu1  ;;  %v6687_v16 = vpop.f32.mrf.mxu0  ;;  %5181 = vmatmul.mubr.msk.bf16.gmra.mxu1 %vm811_vm1, %v6486_v15  ;;  %5186 = vmatmul.mubr.msk.bf16.vlgmr.msra.gmra.mxu0 %vm811_vm1, %v6357_v61 }
 0x181   :  { %4872 = vst [vmem:[%s8279_s3 + $0xe4] sm:$0xff] %v5405_v31  ;;  %2465 = vmatpush1.bf16.msra.mxu0 %v922_v57  ;;  %2217 = vmatprep.mubr.bf16.mxu1 %v5721_v1  ;;  %v4310_v56 = vmax.f32 %v4163_v55, 0.0  ;;  %v3656_v57 = vmax.f32 %v6608_v7, %v6650_v17 }
 0x182   :  { %v1581_v28 = vpop.f32.mrf.mxu1  ;;  %v6700_v12 = vpop.f32.mrf.mxu0  ;;  %2286 = vmatprep.mubr.bf16.mxu0 %v5721_v1  ;;  %2466 = vmatprep.subr.bf16.mxu0 %v5618_v25 }
 0x183   :  { %v5430_v2 = vpack.c.bf16 %v4310_v56, %v4309_v53  ;;  %v3705_v53 = vmax.f32 %v6625_v11, %v6662_v37 }
 0x184   :  { %v1583_v19 = vpop.f32.mrf.mxu1  ;;  %v6706_v20 = vpop.f32.mrf.mxu0 }
 0x185   :  { %2467 = vmatpush1.bf16.msra.mxu0 %v5616_v13  ;;  %4897 = vst [vmem:[%s8279_s3 + $0x1a8] sm:$0x33] %v5430_v2  ;;  %v5058_v2 = vcombine.low %v6613_v42, %v6613_v42 }
 0x186   :  { %v1585_v48 = vpop.f32.mrf.mxu1  ;;  %v6716_v62 = vpop.f32.mrf.mxu0  ;;  %2468 = vmatprep.subr.bf16.mxu0 %v5623_v4 }
 0x188   :  { %v1589_v45 = vpop.f32.mrf.mxu1  ;;  %v6723_v5 = vpop.f32.mrf.mxu0  ;;  %5182 = vmatmul.mubr.msk.bf16.gmra.mxu1 %vm811_vm1, %v6527_v14  ;;  %5187 = vmatmul.mubr.msk.bf16.gmra.mxu0 %vm811_vm1, %v6398_v40 }
 0x189   :  { %2225 = vmatprep.mubr.bf16.mxu1 %v5721_v1  ;;  %2294 = vmatprep.mubr.bf16.mxu0 %v5721_v1 }
 0x18a   :  { %v1591_v41 = vpop.f32.mrf.mxu1  ;;  %v6731_v35 = vpop.f32.mrf.mxu0  ;;  %2469 = vmatpush1.bf16.msra.mxu0 %v5621_v27 }
 0x18b   :  { %5221 = vmatprep.subr.msk.bf16.mxu0 %vm836_vm0, %v5061_v58  ;;  %v3706_v58 = vmax.f32 %v6633_v63, %v6671_v36  ;;  %v5626_v63 = vld [vmem:[%s8276_s0 + $0x204] ss:$196 sps:$4 sm:$0xff]  }
 0x18c   :  { %v1593_v34 = vpop.f32.mrf.mxu1  ;;  %v1662_v52 = vpop.f32.mrf.mxu0 }
 0x18e   :  { %v1594_v26 = vpop.f32.mrf.mxu1  ;;  %v1663_v30 = vpop.f32.mrf.mxu0 }
 0x190   :  { %v1597_v32 = vpop.f32.mrf.mxu1  ;;  %v6734_v33 = vpop.f32.mrf.mxu0  ;;  %5183 = vmatmul.mubr.msk.bf16.gmra.mxu1 %vm811_vm1, %v6414_v3  ;;  %5188 = vmatmul.mubr.msk.bf16.gmra.mxu0 %vm811_vm1, %v6421_v22 }
 0x191   :  { %v3754_v51 = vmax.f32 %v1579_v9, %v1597_v32  ;;  %2235 = vmatprep.mubr.bf16.mxu1 %v5721_v1  ;;  %2304 = vmatprep.mubr.bf16.mxu0 %v5721_v1  ;;  %v3657_v9 = vmax.f32 %v6618_v44, %v6655_v59 }
 0x192   :  { %v1599_v50 = vpop.f32.mrf.mxu1  ;;  %v6744_v60 = vpop.f32.mrf.mxu0 }
 0x193   :  { %v3901_v38 = vmax.f32 %v3607_v18, %v3754_v51  ;;  %v3755_v46 = vmax.f32 %v1581_v28, %v1599_v50  ;;  %v928_v50 = vsel %vm836_vm0, %v5058_v2, 0 }
 0x194   :  { %v1601_v29 = vpop.f32.mrf.mxu1  ;;  %v6748_v39 = vpop.f32.mrf.mxu0 }
 0x195   :  { %v4066_v23 = vadd.f32 %v6194_v10, %v3901_v38  ;;  %v3902_v54 = vmax.f32 %v3608_v6, %v3755_v46  ;;  %v3803_v25 = vmax.f32 %v1583_v19, %v1601_v29  ;;  %v5624_v46 = vld [vmem:[%s8276_s0 + $0x200] ss:$196 sps:$4 sm:$0xff]  }
 0x196   :  { %v1603_v31 = vpop.f32.mrf.mxu1  ;;  %v6753_v55 = vpop.f32.mrf.mxu0 }
 0x197   :  { %v4067_v21 = vadd.f32 %v6194_v10, %v3902_v54  ;;  %v3950_v8 = vmax.f32 %v3656_v57, %v3803_v25  ;;  %v3804_v13 = vmax.f32 %v1585_v48, %v1603_v31  ;;  %v4213_v56 = vmax.f32 %v4066_v23, 0.0  ;;  %v5631_v25 = vld [vmem:[%s8276_s0 + $0x7c] ss:$196 sps:$4 sm:$0xff]  }
 0x198   :  { %v1607_v28 = vpop.f32.mrf.mxu1  ;;  %v6760_v7 = vpop.f32.mrf.mxu0  ;;  %5184 = vmatmul.mubr.msk.bf16.gmra.mxu1 %vm811_vm1, %v6450_v24  ;;  %5189 = vmatmul.mubr.msk.bf16.gmra.mxu0 %vm811_vm1, %v6457_v49 }
 0x199   :  { %v4214_v17 = vmax.f32 %v4067_v21, 0.0  ;;  %v4115_v44 = vadd.f32 %v6215_v43, %v3950_v8  ;;  %v3951_v59 = vmax.f32 %v3657_v9, %v3804_v13  ;;  %v3852_v4 = vmax.f32 %v1589_v45, %v1607_v28  ;;  %2312 = vmatprep.mubr.bf16.mxu0 %v5721_v1  ;;  %2381 = vmatprep.mubr.bf16.mxu1 %v5721_v1  ;;  %v6809_v8 = vld [vmem:[%s8276_s0 + $0x398] sm:$0x33] }
 0x19a   :  { %v1609_v11 = vpop.f32.mrf.mxu1  ;;  %v6769_v37 = vpop.f32.mrf.mxu0  ;;  %v5063_v28 = vcombine.high %v6809_v8, %v6809_v8 }
 0x19b   :  { %v5381_v19 = vpack.c.bf16 %v4214_v17, %v4213_v56  ;;  %v4116_v48 = vadd.f32 %v6215_v43, %v3951_v59  ;;  %v3999_v27 = vmax.f32 %v3705_v53, %v3852_v4  ;;  %v3853_v34 = vmax.f32 %v1591_v41, %v1609_v11  ;;  %v5629_v56 = vld [vmem:[%s8276_s0 + $0x78] ss:$196 sps:$4 sm:$0xff]  }
 0x19c   :  { %v1611_v52 = vpop.f32.mrf.mxu1  ;;  %v1680_v45 = vpop.f32.mrf.mxu0  ;;  %v4262_v26 = vmax.f32 %v4115_v44, 0.0 }
 0x19d   :  { %4848 = vst [vmem:[%s8279_s3 + $0x28] sm:$0xff] %v5381_v19  ;;  %v4263_v30 = vmax.f32 %v4116_v48, 0.0  ;;  %v4164_v32 = vadd.f32 %v6238_v0, %v3999_v27  ;;  %v4000_v18 = vmax.f32 %v3706_v58, %v3853_v34  ;;  %v3609_v34 = vmax.f32 %v6687_v16, %v6734_v33 }
 0x19e   :  { %v1612_v42 = vpop.f32.mrf.mxu1  ;;  %v1681_v51 = vpop.f32.mrf.mxu0 }
 0x19f   :  { %v5406_v36 = vpack.c.bf16 %v4263_v30, %v4262_v26  ;;  %v4165_v41 = vadd.f32 %v6238_v0, %v4000_v18  ;;  %v4311_v29 = vmax.f32 %v4164_v32, 0.0  ;;  %v3610_v30 = vmax.f32 %v6700_v12, %v6744_v60 }
 0x1a0   :  { %v1684_v6 = vpop.f32.mrf.mxu0  ;;  %v6785_v38 = vpop.f32.mrf.mxu1  ;;  %5190 = vmatmul.mubr.msk.bf16.gmra.mxu0 %vm811_vm1, %v6486_v15  ;;  %5195 = vmatmul.mubr.msk.bf16.vlgmr.msra.gmra.mxu1 %vm811_vm1, %v6357_v61 }
 0x1a1   :  { %4873 = vst [vmem:[%s8279_s3 + $0xec] sm:$0xff] %v5406_v36  ;;  %2570 = vmatpush1.bf16.msra.mxu1 %v928_v50  ;;  %2322 = vmatprep.mubr.bf16.mxu0 %v5721_v1  ;;  %v4312_v57 = vmax.f32 %v4165_v41, 0.0  ;;  %v3658_v50 = vmax.f32 %v6706_v20, %v6748_v39 }
 0x1a2   :  { %v1686_v23 = vpop.f32.mrf.mxu0  ;;  %v6798_v54 = vpop.f32.mrf.mxu1  ;;  %2391 = vmatprep.mubr.bf16.mxu1 %v5721_v1  ;;  %2571 = vmatprep.subr.bf16.mxu1 %v5626_v63 }
 0x1a3   :  { %v5431_v31 = vpack.c.bf16 %v4312_v57, %v4311_v29  ;;  %v3707_v29 = vmax.f32 %v6723_v5, %v6760_v7 }
 0x1a4   :  { %v1688_v9 = vpop.f32.mrf.mxu0  ;;  %v6804_v21 = vpop.f32.mrf.mxu1 }
 0x1a5   :  { %2572 = vmatpush1.bf16.msra.mxu1 %v5624_v46  ;;  %4898 = vst [vmem:[%s8279_s3 + $0x1b0] sm:$0x33] %v5431_v31  ;;  %v5060_v31 = vcombine.low %v6711_v47, %v6711_v47 }
 0x1a6   :  { %v1690_v13 = vpop.f32.mrf.mxu0  ;;  %v6814_v53 = vpop.f32.mrf.mxu1  ;;  %2573 = vmatprep.subr.bf16.mxu1 %v5631_v25 }
 0x1a8   :  { %v1694_v17 = vpop.f32.mrf.mxu0  ;;  %v6821_v44 = vpop.f32.mrf.mxu1  ;;  %5191 = vmatmul.mubr.msk.bf16.gmra.mxu0 %vm811_vm1, %v6527_v14  ;;  %5196 = vmatmul.mubr.msk.bf16.gmra.mxu1 %vm811_vm1, %v6398_v40 }
 0x1a9   :  { %2330 = vmatprep.mubr.bf16.mxu0 %v5721_v1  ;;  %2399 = vmatprep.mubr.bf16.mxu1 %v5721_v1 }
 0x1aa   :  { %v1696_v59 = vpop.f32.mrf.mxu0  ;;  %v6829_v4 = vpop.f32.mrf.mxu1  ;;  %2574 = vmatpush1.bf16.msra.mxu1 %v5629_v56 }
 0x1ab   :  { %5230 = vmatprep.subr.msk.bf16.mxu1 %vm836_vm0, %v5063_v28  ;;  %v3708_v28 = vmax.f32 %v6731_v35, %v6769_v37  ;;  %v5634_v35 = vld [vmem:[%s8276_s0 + $0x20c] ss:$196 sps:$4 sm:$0xff]  }
 0x1ac   :  { %v1698_v11 = vpop.f32.mrf.mxu0  ;;  %v1767_v2 = vpop.f32.mrf.mxu1 }
 0x1ae   :  { %v1699_v19 = vpop.f32.mrf.mxu0  ;;  %v1768_v48 = vpop.f32.mrf.mxu1 }
 0x1b0   :  { %v1702_v27 = vpop.f32.mrf.mxu0  ;;  %v6832_v58 = vpop.f32.mrf.mxu1  ;;  %5192 = vmatmul.mubr.msk.bf16.gmra.mxu0 %vm811_vm1, %v6414_v3  ;;  %5197 = vmatmul.mubr.msk.bf16.gmra.mxu1 %vm811_vm1, %v6421_v22 }
 0x1b1   :  { %v3756_v52 = vmax.f32 %v1684_v6, %v1702_v27  ;;  %2340 = vmatprep.mubr.bf16.mxu0 %v5721_v1  ;;  %2409 = vmatprep.mubr.bf16.mxu1 %v5721_v1  ;;  %v3659_v6 = vmax.f32 %v6716_v62, %v6753_v55 }
 0x1b2   :  { %v1704_v45 = vpop.f32.mrf.mxu0  ;;  %v6842_v26 = vpop.f32.mrf.mxu1 }
 0x1b3   :  { %v3903_v32 = vmax.f32 %v3609_v34, %v3756_v52  ;;  %v3757_v18 = vmax.f32 %v1686_v23, %v1704_v45  ;;  %v934_v45 = vsel %vm836_vm0, %v5060_v31, 0 }
 0x1b4   :  { %v1706_v42 = vpop.f32.mrf.mxu0  ;;  %v6846_v51 = vpop.f32.mrf.mxu1 }
 0x1b5   :  { %v4068_v16 = vadd.f32 %v6194_v10, %v3903_v32  ;;  %v3904_v33 = vmax.f32 %v3610_v30, %v3757_v18  ;;  %v3805_v63 = vmax.f32 %v1688_v9, %v1706_v42  ;;  %v5632_v18 = vld [vmem:[%s8276_s0 + $0x208] ss:$196 sps:$4 sm:$0xff]  }
 0x1b6   :  { %v1708_v36 = vpop.f32.mrf.mxu0  ;;  %v6851_v41 = vpop.f32.mrf.mxu1 }
 0x1b7   :  { %v4069_v12 = vadd.f32 %v6194_v10, %v3904_v33  ;;  %v3952_v60 = vmax.f32 %v3658_v50, %v3805_v63  ;;  %v3806_v46 = vmax.f32 %v1690_v13, %v1708_v36  ;;  %v4215_v57 = vmax.f32 %v4068_v16, 0.0 }
 0x1b8   :  { %v1712_v23 = vpop.f32.mrf.mxu0  ;;  %v6858_v20 = vpop.f32.mrf.mxu1  ;;  %5193 = vmatmul.mubr.msk.bf16.gmra.mxu0 %vm811_vm1, %v6450_v24  ;;  %5198 = vmatmul.mubr.msk.bf16.gmra.mxu1 %vm811_vm1, %v6457_v49 }
 0x1b9   :  { %v4216_v39 = vmax.f32 %v4069_v12, 0.0  ;;  %v4117_v62 = vadd.f32 %v6215_v43, %v3952_v60  ;;  %v3953_v55 = vmax.f32 %v3659_v6, %v3806_v46  ;;  %v3854_v25 = vmax.f32 %v1694_v17, %v1712_v23  ;;  %2417 = vmatprep.mubr.bf16.mxu1 %v5721_v1  ;;  %2486 = vmatprep.mubr.bf16.mxu0 %v5721_v1  ;;  %v6907_v12 = vld [vmem:[%s8276_s0 + $0x3a0] sm:$0x33] }
 0x1ba   :  { %v1714_v5 = vpop.f32.mrf.mxu0  ;;  %v6867_v7 = vpop.f32.mrf.mxu1 }
 0x1bb   :  { %v5382_v9 = vpack.c.bf16 %v4216_v39, %v4215_v57  ;;  %v4118_v13 = vadd.f32 %v6215_v43, %v3953_v55  ;;  %v4001_v56 = vmax.f32 %v3707_v29, %v3854_v25  ;;  %v3855_v11 = vmax.f32 %v1696_v59, %v1714_v5  ;;  %v5637_v29 = vld [vmem:[%s8276_s0 + $0x80] ss:$196 sps:$4 sm:$0xff]  }
 0x1bc   :  { %v1716_v2 = vpop.f32.mrf.mxu0  ;;  %v1785_v17 = vpop.f32.mrf.mxu1  ;;  %v4264_v19 = vmax.f32 %v4117_v62, 0.0  ;;  %v5065_v57 = vcombine.high %v6907_v12, %v6907_v12 }
 0x1bd   :  { %4849 = vst [vmem:[%s8279_s3 + $0x30] sm:$0xff] %v5382_v9  ;;  %v4265_v48 = vmax.f32 %v4118_v13, 0.0  ;;  %v4166_v27 = vadd.f32 %v6238_v0, %v4001_v56  ;;  %v4002_v34 = vmax.f32 %v3708_v28, %v3855_v11  ;;  %v3612_v17 = vmax.f32 %v6798_v54, %v6842_v26 }
 0x1be   :  { %v1717_v47 = vpop.f32.mrf.mxu0  ;;  %v1786_v52 = vpop.f32.mrf.mxu1 }
 0x1bf   :  { %v5407_v37 = vpack.c.bf16 %v4265_v48, %v4264_v19  ;;  %v4167_v59 = vadd.f32 %v6238_v0, %v4002_v34  ;;  %v4313_v42 = vmax.f32 %v4166_v27, 0.0 }
 0x1c0   :  { %v1789_v30 = vpop.f32.mrf.mxu1  ;;  %v6883_v32 = vpop.f32.mrf.mxu0  ;;  %5199 = vmatmul.mubr.msk.bf16.gmra.mxu1 %vm811_vm1, %v6486_v15  ;;  %5204 = vmatmul.mubr.msk.bf16.vlgmr.msra.gmra.mxu0 %vm811_vm1, %v6357_v61  ;;  %v5639_v61 = vld [vmem:[%s8276_s0 + $0x84] ss:$196 sps:$4 sm:$0xff]  }
 0x1c1   :  { %4874 = vst [vmem:[%s8279_s3 + $0xf4] sm:$0xff] %v5407_v37  ;;  %2675 = vmatpush1.bf16.msra.mxu0 %v934_v45  ;;  %2427 = vmatprep.mubr.bf16.mxu1 %v5721_v1  ;;  %v4314_v50 = vmax.f32 %v4167_v59, 0.0  ;;  %v3661_v45 = vmax.f32 %v6814_v53, %v6851_v41  ;;  %v3709_v37 = vmax.f32 %v6821_v44, %v6858_v20 }
 0x1c2   :  { %v1791_v16 = vpop.f32.mrf.mxu1  ;;  %v6896_v33 = vpop.f32.mrf.mxu0  ;;  %2496 = vmatprep.mubr.bf16.mxu0 %v5721_v1  ;;  %2676 = vmatprep.subr.bf16.mxu0 %v5634_v35 }
 0x1c3   :  { %v5432_v63 = vpack.c.bf16 %v4314_v50, %v4313_v42  ;;  %v5062_v42 = vcombine.low %v6809_v8, %v6809_v8 }
 0x1c4   :  { %v1793_v36 = vpop.f32.mrf.mxu1  ;;  %v6902_v6 = vpop.f32.mrf.mxu0 }
 0x1c5   :  { %2677 = vmatpush1.bf16.msra.mxu0 %v5632_v18  ;;  %4899 = vst [vmem:[%s8279_s3 + $0x1b8] sm:$0x33] %v5432_v63 }
 0x1c6   :  { %v1795_v60 = vpop.f32.mrf.mxu1  ;;  %v6912_v46 = vpop.f32.mrf.mxu0  ;;  %2678 = vmatprep.subr.bf16.mxu0 %v5639_v61 }
 0x1c8   :  { %v1799_v23 = vpop.f32.mrf.mxu1  ;;  %v6919_v39 = vpop.f32.mrf.mxu0  ;;  %5200 = vmatmul.mubr.msk.bf16.gmra.mxu1 %vm811_vm1, %v6527_v14  ;;  %5205 = vmatmul.mubr.msk.bf16.gmra.mxu0 %vm811_vm1, %v6398_v40  ;;  %v3611_v40 = vmax.f32 %v6785_v38, %v6832_v58 }
 0x1c9   :  { %2435 = vmatprep.mubr.bf16.mxu1 %v5721_v1  ;;  %2504 = vmatprep.mubr.bf16.mxu0 %v5721_v1 }
 0x1ca   :  { %v1801_v62 = vpop.f32.mrf.mxu1  ;;  %v6927_v55 = vpop.f32.mrf.mxu0  ;;  %2679 = vmatpush1.bf16.msra.mxu0 %v5637_v29 }
 0x1cb   :  { %5239 = vmatprep.subr.msk.bf16.mxu0 %vm836_vm0, %v5065_v57 }
 0x1cc   :  { %v1803_v25 = vpop.f32.mrf.mxu1  ;;  %v1872_v5 = vpop.f32.mrf.mxu0 }
 0x1cd   :  { %v940_v5 = vsel %vm836_vm0, %v5062_v42, 0  ;;  %v7052_v42 = vld [vmem:[%s8277_s1 + $0x10] sm:$0xff]  }
 0x1ce   :  { %v1804_v31 = vpop.f32.mrf.mxu1  ;;  %v1873_v9 = vpop.f32.mrf.mxu0 }
 0x1d0   :  { %v1807_v13 = vpop.f32.mrf.mxu1  ;;  %v6930_v56 = vpop.f32.mrf.mxu0  ;;  %5201 = vmatmul.mubr.msk.bf16.gmra.mxu1 %vm811_vm1, %v6414_v3  ;;  %5206 = vmatmul.mubr.msk.bf16.gmra.mxu0 %vm811_vm1, %v6421_v22  ;;  %v3660_v22 = vmax.f32 %v6804_v21, %v6846_v51 }
 0x1d1   :  { %v3758_v28 = vmax.f32 %v1789_v30, %v1807_v13  ;;  %2445 = vmatprep.mubr.bf16.mxu1 %v5721_v1  ;;  %2514 = vmatprep.mubr.bf16.mxu0 %v5721_v1  ;;  %v6988_v13 = vld [vmem:[%s8277_s1] sm:$0xff]  }
 0x1d2   :  { %v1809_v11 = vpop.f32.mrf.mxu1  ;;  %v6940_v2 = vpop.f32.mrf.mxu0 }
 0x1d3   :  { %v3905_v19 = vmax.f32 %v3611_v40, %v3758_v28  ;;  %v3759_v48 = vmax.f32 %v1791_v16, %v1809_v11  ;;  %v5640_v40 = vld [vmem:[%s8276_s0 + $0x210] ss:$196 sps:$4 sm:$0xff]  }
 0x1d4   :  { %v1811_v3 = vpop.f32.mrf.mxu1  ;;  %v6944_v27 = vpop.f32.mrf.mxu0 }
 0x1d5   :  { %v4070_v38 = vadd.f32 %v6194_v10, %v3905_v19  ;;  %v3906_v58 = vmax.f32 %v3612_v17, %v3759_v48  ;;  %v3807_v34 = vmax.f32 %v1793_v36, %v1811_v3  ;;  %v5647_v19 = vld [vmem:[%s8276_s0 + $0x8c] ss:$196 sps:$4 sm:$0xff]  }
 0x1d6   :  { %v1813_v47 = vpop.f32.mrf.mxu1  ;;  %v6949_v52 = vpop.f32.mrf.mxu0 }
 0x1d7   :  { %v4071_v54 = vadd.f32 %v6194_v10, %v3906_v58  ;;  %v3954_v26 = vmax.f32 %v3660_v22, %v3807_v34  ;;  %v3808_v35 = vmax.f32 %v1795_v60, %v1813_v47  ;;  %v4217_v59 = vmax.f32 %v4070_v38, 0.0  ;;  %v7010_v38 = vld [vmem:[%s8276_s0 + $0x3a8] sm:$0x33] }
 0x1d8   :  { %v1817_v30 = vpop.f32.mrf.mxu1  ;;  %v6956_v21 = vpop.f32.mrf.mxu0  ;;  %5202 = vmatmul.mubr.msk.bf16.gmra.mxu1 %vm811_vm1, %v6450_v24  ;;  %5207 = vmatmul.mubr.msk.bf16.gmra.mxu0 %vm811_vm1, %v6457_v49  ;;  %v3710_v49 = vmax.f32 %v6829_v4, %v6867_v7  ;;  %v5642_v4 = vld [vmem:[%s8276_s0 + $0x214] ss:$196 sps:$4 sm:$0xff]   ;;  %v5645_v47 = vld [vmem:[%s8276_s0 + $0x88] ss:$196 sps:$4 sm:$0xff]  }
 0x1d9   :  { %v4218_v51 = vmax.f32 %v4071_v54, 0.0  ;;  %v4119_v53 = vadd.f32 %v6215_v43, %v3954_v26  ;;  %v3955_v41 = vmax.f32 %v3661_v45, %v3808_v35  ;;  %v3856_v18 = vmax.f32 %v1799_v23, %v1817_v30  ;;  %2522 = vmatprep.mubr.bf16.mxu0 %v5721_v1  ;;  %2591 = vmatprep.mubr.bf16.mxu1 %v5721_v1  ;;  %v7029_v35 = vld [vmem:[%s8277_s1 + $0x8] sm:$0xff]  }
 0x1da   :  { %v1819_v44 = vpop.f32.mrf.mxu1  ;;  %v6965_v20 = vpop.f32.mrf.mxu0  ;;  %v5067_v45 = vcombine.high %v7010_v38, %v7010_v38 }
 0x1db   :  { %v5383_v50 = vpack.c.bf16 %v4218_v51, %v4217_v59  ;;  %v4120_v24 = vadd.f32 %v6215_v43, %v3955_v41  ;;  %v4003_v16 = vmax.f32 %v3709_v37, %v3856_v18  ;;  %v3857_v61 = vmax.f32 %v1801_v62, %v1819_v44  ;;  %v7045_v44 = vld [vmem:[%s8277_s1 + $0x30] sm:$0xff]  }
 0x1dc   :  { %v1821_v63 = vpop.f32.mrf.mxu1  ;;  %v1890_v36 = vpop.f32.mrf.mxu0  ;;  %v4266_v60 = vmax.f32 %v4119_v53, 0.0 }
 0x1dd   :  { %4850 = vst [vmem:[%s8279_s3 + $0x38] sm:$0xff] %v5383_v50  ;;  %v4267_v29 = vmax.f32 %v4120_v24, 0.0  ;;  %v4168_v57 = vadd.f32 %v6238_v0, %v4003_v16  ;;  %v4004_v23 = vmax.f32 %v3710_v49, %v3857_v61  ;;  %v3613_v50 = vmax.f32 %v6883_v32, %v6930_v56 }
 0x1de   :  { %v1822_v8 = vpop.f32.mrf.mxu1  ;;  %v1891_v25 = vpop.f32.mrf.mxu0  ;;  %v3614_v61 = vmax.f32 %v6896_v33, %v6940_v2 }
 0x1df   :  { %v5408_v7 = vpack.c.bf16 %v4267_v29, %v4266_v60  ;;  %v4169_v62 = vadd.f32 %v6238_v0, %v4004_v23 }
 0x1e0   :  { %v1894_v31 = vpop.f32.mrf.mxu0  ;;  %v6981_v9 = vpop.f32.mrf.mxu1  ;;  %5208 = vmatmul.mubr.msk.bf16.gmra.mxu0 %vm811_vm1, %v6486_v15  ;;  %5213 = vmatmul.mubr.msk.bf16.vlgmr.msra.gmra.mxu1 %vm811_vm1, %v6988_v13  ;;  %v4315_v15 = vmax.f32 %v4168_v57, 0.0  ;;  %v3662_v57 = vmax.f32 %v6902_v6, %v6944_v27  ;;  %v7081_v27 = vld [vmem:[%s8277_s1 + $0x38] sm:$0xff]  }
 0x1e1   :  { %4875 = vst [vmem:[%s8279_s3 + $0xfc] sm:$0xff] %v5408_v7  ;;  %2780 = vmatpush1.bf16.msra.mxu1 %v940_v5  ;;  %2532 = vmatprep.mubr.bf16.mxu0 %v5721_v1  ;;  %v4316_v28 = vmax.f32 %v4169_v62, 0.0  ;;  %v3663_v5 = vmax.f32 %v6912_v46, %v6949_v52  ;;  %v3711_v7 = vmax.f32 %v6919_v39, %v6956_v21  ;;  %v7088_v46 = vld [vmem:[%s8277_s1 + $0x18] sm:$0xff]  }
 0x1e2   :  { %v1896_v11 = vpop.f32.mrf.mxu0  ;;  %v6999_v17 = vpop.f32.mrf.mxu1  ;;  %2601 = vmatprep.mubr.bf16.mxu1 %v5721_v1  ;;  %2781 = vmatprep.subr.bf16.mxu1 %v5642_v4 }
 0x1e3   :  { %v5433_v48 = vpack.c.bf16 %v4316_v28, %v4315_v15 }
 0x1e4   :  { %v1898_v3 = vpop.f32.mrf.mxu0  ;;  %v7005_v22 = vpop.f32.mrf.mxu1 }
 0x1e5   :  { %2782 = vmatpush1.bf16.msra.mxu1 %v5640_v40  ;;  %4900 = vst [vmem:[%s8279_s3 + $0x1c0] sm:$0x33] %v5433_v48 }
 0x1e6   :  { %v1900_v58 = vpop.f32.mrf.mxu0  ;;  %v7015_v34 = vpop.f32.mrf.mxu1  ;;  %2783 = vmatprep.subr.bf16.mxu1 %v5647_v19 }
 0x1e8   :  { %v1904_v54 = vpop.f32.mrf.mxu0  ;;  %v7022_v26 = vpop.f32.mrf.mxu1  ;;  %5209 = vmatmul.mubr.msk.bf16.gmra.mxu0 %vm811_vm1, %v6527_v14  ;;  %5214 = vmatmul.mubr.msk.bf16.gmra.mxu1 %vm811_vm1, %v7029_v35 }
 0x1e9   :  { %2540 = vmatprep.mubr.bf16.mxu0 %v5721_v1  ;;  %2609 = vmatprep.mubr.bf16.mxu1 %v5721_v1 }
 0x1ea   :  { %v7035_v37 = vpop.f32.mrf.mxu0  ;;  %v7037_v59 = vpop.f32.mrf.mxu1  ;;  %2784 = vmatpush1.bf16.msra.mxu1 %v5645_v47 }
 0x1eb   :  { %5248 = vmatprep.subr.msk.bf16.mxu1 %vm836_vm0, %v5067_v45 }
 0x1ec   :  { %v1908_v14 = vpop.f32.mrf.mxu0  ;;  %v1977_v30 = vpop.f32.mrf.mxu1 }
 0x1ee   :  { %v1909_v51 = vpop.f32.mrf.mxu0  ;;  %v1978_v53 = vpop.f32.mrf.mxu1 }
 0x1f0   :  { %v1912_v41 = vpop.f32.mrf.mxu0  ;;  %v7040_v18 = vpop.f32.mrf.mxu1  ;;  %5210 = vmatmul.mubr.msk.bf16.gmra.mxu0 %vm811_vm1, %v7045_v44  ;;  %5215 = vmatmul.mubr.msk.bf16.gmra.mxu1 %vm811_vm1, %v7052_v42 }
 0x1f1   :  { %v3760_v24 = vmax.f32 %v1894_v31, %v1912_v41  ;;  %2550 = vmatprep.mubr.bf16.mxu0 %v5721_v1  ;;  %2619 = vmatprep.mubr.bf16.mxu1 %v5721_v1 }
 0x1f2   :  { %v1914_v16 = vpop.f32.mrf.mxu0  ;;  %v7060_v49 = vpop.f32.mrf.mxu1 }
 0x1f3   :  { %v3907_v63 = vmax.f32 %v3613_v50, %v3760_v24  ;;  %v3761_v36 = vmax.f32 %v1896_v11, %v1914_v16  ;;  %v5064_v11 = vcombine.low %v6907_v12, %v6907_v12 }
 0x1f4   :  { %v1916_v60 = vpop.f32.mrf.mxu0  ;;  %v7064_v29 = vpop.f32.mrf.mxu1 }
 0x1f5   :  { %v4072_v32 = vadd.f32 %v6194_v10, %v3907_v63  ;;  %v3908_v56 = vmax.f32 %v3614_v61, %v3761_v36  ;;  %v3809_v23 = vmax.f32 %v1898_v3, %v1916_v60  ;;  %v946_v50 = vsel %vm836_vm0, %v5064_v11, 0  ;;  %v7117_v61 = vld [vmem:[%s8277_s1 + $0x20] sm:$0xff]   ;;  %v5648_v63 = vld [vmem:[%s8276_s0 + $0x218] ss:$196 sps:$4 sm:$0xff]  }
 0x1f6   :  { %v1918_v8 = vpop.f32.mrf.mxu0  ;;  %v7069_v25 = vpop.f32.mrf.mxu1 }
 0x1f7   :  { %v4073_v33 = vadd.f32 %v6194_v10, %v3908_v56  ;;  %v3956_v2 = vmax.f32 %v3662_v57, %v3809_v23  ;;  %v3810_v4 = vmax.f32 %v1900_v58, %v1918_v8  ;;  %v4219_v62 = vmax.f32 %v4072_v32, 0.0  ;;  %v5655_v56 = vld [vmem:[%s8276_s0 + $0x94] ss:$196 sps:$4 sm:$0xff]  }
 0x1f8   :  { %v1922_v31 = vpop.f32.mrf.mxu0  ;;  %v7076_v6 = vpop.f32.mrf.mxu1  ;;  %5211 = vmatmul.mubr.msk.bf16.gmra.mxu0 %vm811_vm1, %v7081_v27  ;;  %5216 = vmatmul.mubr.msk.bf16.gmra.mxu1 %vm811_vm1, %v7088_v46  ;;  %v3712_v58 = vmax.f32 %v6927_v55, %v6965_v20  ;;  %v5650_v55 = vld [vmem:[%s8276_s0 + $0x21c] ss:$196 sps:$4 sm:$0xff]  }
 0x1f9   :  { %v4220_v39 = vmax.f32 %v4073_v33, 0.0  ;;  %v4121_v52 = vadd.f32 %v6215_v43, %v3956_v2  ;;  %v3957_v21 = vmax.f32 %v3663_v5, %v3810_v4  ;;  %v3858_v40 = vmax.f32 %v1904_v54, %v1922_v31  ;;  %2627 = vmatprep.mubr.bf16.mxu1 %v5721_v1  ;;  %2696 = vmatprep.mubr.bf16.mxu0 %v5721_v1  ;;  %v7141_v33 = vld [vmem:[%s8276_s0 + $0x3b0] sm:$0x33] }
 0x1fa   :  { %v1924_v15 = vpop.f32.mrf.mxu0  ;;  %v7095_v28 = vpop.f32.mrf.mxu1 }
 0x1fb   :  { %v5384_v19 = vpack.c.bf16 %v4220_v39, %v4219_v62  ;;  %v4122_v48 = vadd.f32 %v6215_v43, %v3957_v21  ;;  %v4005_v3 = vmax.f32 %v3711_v7, %v3858_v40  ;;  %v3859_v47 = vmax.f32 %v7035_v37, %v1924_v15  ;;  %v5653_v7 = vld [vmem:[%s8276_s0 + $0x90] ss:$196 sps:$4 sm:$0xff]  }
 0x1fc   :  { %v1926_v45 = vpop.f32.mrf.mxu0  ;;  %v1995_v54 = vpop.f32.mrf.mxu1  ;;  %v4268_v14 = vmax.f32 %v4121_v52, 0.0  ;;  %v5069_v62 = vcombine.high %v7141_v33, %v7141_v33  ;;  %v7158_v52 = vld [vmem:[%s8277_s1 + $0x28] sm:$0xff]  }
 0x1fd   :  { %4851 = vst [vmem:[%s8279_s3 + $0x40] sm:$0xff] %v5384_v19  ;;  %v4269_v30 = vmax.f32 %v4122_v48, 0.0  ;;  %v4170_v51 = vadd.f32 %v6238_v0, %v4005_v3  ;;  %v4006_v12 = vmax.f32 %v3712_v58, %v3859_v47  ;;  %v3615_v47 = vmax.f32 %v6981_v9, %v7040_v18 }
 0x1fe   :  { %v1927_v53 = vpop.f32.mrf.mxu0  ;;  %v1996_v41 = vpop.f32.mrf.mxu1 }
 0x1ff   :  { %v5409_v20 = vpack.c.bf16 %v4269_v30, %v4268_v14  ;;  %v4171_v37 = vadd.f32 %v6238_v0, %v4006_v12  ;;  %v4317_v36 = vmax.f32 %v4170_v51, 0.0  ;;  %v3616_v30 = vmax.f32 %v6999_v17, %v7060_v49 }
 0x200   :  { %v1999_v24 = vpop.f32.mrf.mxu1  ;;  %v7112_v16 = vpop.f32.mrf.mxu0  ;;  %5217 = vmatmul.mubr.msk.bf16.gmra.mxu1 %vm811_vm1, %v7117_v61  ;;  %5222 = vmatmul.mubr.msk.bf16.vlgmr.msra.gmra.mxu0 %vm811_vm1, %v6988_v13 }
 0x201   :  { %4876 = vst [vmem:[%s8279_s3 + $0x104] sm:$0xff] %v5409_v20  ;;  %2885 = vmatpush1.bf16.msra.mxu0 %v946_v50  ;;  %2637 = vmatprep.mubr.bf16.mxu1 %v5721_v1  ;;  %v4318_v60 = vmax.f32 %v4171_v37, 0.0  ;;  %v3664_v50 = vmax.f32 %v7005_v22, %v7064_v29 }
 0x202   :  { %v2001_v57 = vpop.f32.mrf.mxu1  ;;  %v7130_v32 = vpop.f32.mrf.mxu0  ;;  %2706 = vmatprep.mubr.bf16.mxu0 %v5721_v1  ;;  %2886 = vmatprep.subr.bf16.mxu0 %v5650_v55 }
 0x203   :  { %v5434_v23 = vpack.c.bf16 %v4318_v60, %v4317_v36  ;;  %v3713_v36 = vmax.f32 %v7022_v26, %v7076_v6 }
 0x204   :  { %v2003_v8 = vpop.f32.mrf.mxu1  ;;  %v7136_v5 = vpop.f32.mrf.mxu0 }
 0x205   :  { %2887 = vmatpush1.bf16.msra.mxu0 %v5648_v63  ;;  %4901 = vst [vmem:[%s8279_s3 + $0x1c8] sm:$0x33] %v5434_v23  ;;  %v5066_v23 = vcombine.low %v7010_v38, %v7010_v38 }
 0x206   :  { %v2005_v2 = vpop.f32.mrf.mxu1  ;;  %v7146_v4 = vpop.f32.mrf.mxu0  ;;  %2888 = vmatprep.subr.bf16.mxu0 %v5655_v56 }
 0x208   :  { %v2009_v31 = vpop.f32.mrf.mxu1  ;;  %v7153_v39 = vpop.f32.mrf.mxu0  ;;  %5218 = vmatmul.mubr.msk.bf16.gmra.mxu1 %vm811_vm1, %v7158_v52  ;;  %5223 = vmatmul.mubr.msk.bf16.gmra.mxu0 %vm811_vm1, %v7029_v35 }
 0x209   :  { %2645 = vmatprep.mubr.bf16.mxu1 %v5721_v1  ;;  %2714 = vmatprep.mubr.bf16.mxu0 %v5721_v1 }
 0x20a   :  { %v2011_v21 = vpop.f32.mrf.mxu1  ;;  %v7166_v40 = vpop.f32.mrf.mxu0  ;;  %2889 = vmatpush1.bf16.msra.mxu0 %v5653_v7 }
 0x20b   :  { %5257 = vmatprep.subr.msk.bf16.mxu0 %vm836_vm0, %v5069_v62  ;;  %v3714_v62 = vmax.f32 %v7037_v59, %v7095_v28  ;;  %v5658_v59 = vld [vmem:[%s8276_s0 + $0x224] ss:$196 sps:$4 sm:$0xff]  }
 0x20c   :  { %v2013_v15 = vpop.f32.mrf.mxu1  ;;  %v2082_v11 = vpop.f32.mrf.mxu0 }
 0x20e   :  { %v2014_v19 = vpop.f32.mrf.mxu1  ;;  %v2083_v48 = vpop.f32.mrf.mxu0 }
 0x210   :  { %v2017_v3 = vpop.f32.mrf.mxu1  ;;  %v7169_v58 = vpop.f32.mrf.mxu0  ;;  %5219 = vmatmul.mubr.msk.bf16.gmra.mxu1 %vm811_vm1, %v7045_v44  ;;  %5224 = vmatmul.mubr.msk.bf16.gmra.mxu0 %vm811_vm1, %v7052_v42 }
 0x211   :  { %v3762_v45 = vmax.f32 %v1999_v24, %v2017_v3  ;;  %2655 = vmatprep.mubr.bf16.mxu1 %v5721_v1  ;;  %2724 = vmatprep.mubr.bf16.mxu0 %v5721_v1  ;;  %v3665_v24 = vmax.f32 %v7015_v34, %v7069_v25 }
 0x212   :  { %v2019_v54 = vpop.f32.mrf.mxu1  ;;  %v7179_v14 = vpop.f32.mrf.mxu0 }
 0x213   :  { %v3909_v51 = vmax.f32 %v3615_v47, %v3762_v45  ;;  %v3763_v12 = vmax.f32 %v2001_v57, %v2019_v54  ;;  %v952_v54 = vsel %vm836_vm0, %v5066_v23, 0 }
 0x214   :  { %v2021_v53 = vpop.f32.mrf.mxu1  ;;  %v7183_v41 = vpop.f32.mrf.mxu0 }
 0x215   :  { %v4074_v9 = vadd.f32 %v6194_v10, %v3909_v51  ;;  %v3910_v18 = vmax.f32 %v3616_v30, %v3763_v12  ;;  %v3811_v55 = vmax.f32 %v2003_v8, %v2021_v53  ;;  %v5656_v12 = vld [vmem:[%s8276_s0 + $0x220] ss:$196 sps:$4 sm:$0xff]  }
 0x216   :  { %v2023_v20 = vpop.f32.mrf.mxu1  ;;  %v7188_v37 = vpop.f32.mrf.mxu0 }
 0x217   :  { %v4075_v17 = vadd.f32 %v6194_v10, %v3910_v18  ;;  %v3958_v49 = vmax.f32 %v3664_v50, %v3811_v55  ;;  %v3812_v63 = vmax.f32 %v2005_v2, %v2023_v20  ;;  %v4221_v60 = vmax.f32 %v4074_v9, 0.0  ;;  %v5663_v55 = vld [vmem:[%s8276_s0 + $0x9c] ss:$196 sps:$4 sm:$0xff]  }
 0x218   :  { %v2027_v57 = vpop.f32.mrf.mxu1  ;;  %v7195_v22 = vpop.f32.mrf.mxu0  ;;  %5220 = vmatmul.mubr.msk.bf16.gmra.mxu1 %vm811_vm1, %v7081_v27  ;;  %5225 = vmatmul.mubr.msk.bf16.gmra.mxu0 %vm811_vm1, %v7088_v46 }
 0x219   :  { %v4222_v29 = vmax.f32 %v4075_v17, 0.0  ;;  %v4123_v34 = vadd.f32 %v6215_v43, %v3958_v49  ;;  %v3959_v25 = vmax.f32 %v3665_v24, %v3812_v63  ;;  %v3860_v56 = vmax.f32 %v2009_v31, %v2027_v57  ;;  %2732 = vmatprep.mubr.bf16.mxu0 %v5721_v1  ;;  %2801 = vmatprep.mubr.bf16.mxu1 %v5721_v1  ;;  %v7244_v49 = vld [vmem:[%s8276_s0 + $0x3b8] sm:$0x33] }
 0x21a   :  { %v2029_v26 = vpop.f32.mrf.mxu1  ;;  %v7204_v6 = vpop.f32.mrf.mxu0  ;;  %v5071_v57 = vcombine.high %v7244_v49, %v7244_v49 }
 0x21b   :  { %v5385_v8 = vpack.c.bf16 %v4222_v29, %v4221_v60  ;;  %v4124_v2 = vadd.f32 %v6215_v43, %v3959_v25  ;;  %v4007_v7 = vmax.f32 %v3713_v36, %v3860_v56  ;;  %v3861_v15 = vmax.f32 %v2011_v21, %v2029_v26  ;;  %v5661_v60 = vld [vmem:[%s8276_s0 + $0x98] ss:$196 sps:$4 sm:$0xff]  }
 0x21c   :  { %v2031_v11 = vpop.f32.mrf.mxu1  ;;  %v2100_v31 = vpop.f32.mrf.mxu0  ;;  %v4270_v19 = vmax.f32 %v4123_v34, 0.0 }
 0x21d   :  { %4852 = vst [vmem:[%s8279_s3 + $0x48] sm:$0xff] %v5385_v8  ;;  %v4271_v48 = vmax.f32 %v4124_v2, 0.0  ;;  %v4172_v3 = vadd.f32 %v6238_v0, %v4007_v7  ;;  %v4008_v47 = vmax.f32 %v3714_v62, %v3861_v15  ;;  %v3617_v15 = vmax.f32 %v7112_v16, %v7169_v58 }
 0x21e   :  { %v2032_v38 = vpop.f32.mrf.mxu1  ;;  %v2101_v45 = vpop.f32.mrf.mxu0 }
 0x21f   :  { %v5410_v28 = vpack.c.bf16 %v4271_v48, %v4270_v19  ;;  %v4173_v21 = vadd.f32 %v6238_v0, %v4008_v47  ;;  %v4319_v53 = vmax.f32 %v4172_v3, 0.0  ;;  %v3618_v48 = vmax.f32 %v7130_v32, %v7179_v14 }
 0x220   :  { %v2104_v30 = vpop.f32.mrf.mxu0  ;;  %v7220_v51 = vpop.f32.mrf.mxu1  ;;  %5226 = vmatmul.mubr.msk.bf16.gmra.mxu0 %vm811_vm1, %v7117_v61  ;;  %5231 = vmatmul.mubr.msk.bf16.vlgmr.msra.gmra.mxu1 %vm811_vm1, %v6988_v13 }
 0x221   :  { %4877 = vst [vmem:[%s8279_s3 + $0x10c] sm:$0xff] %v5410_v28  ;;  %2990 = vmatpush1.bf16.msra.mxu1 %v952_v54  ;;  %2742 = vmatprep.mubr.bf16.mxu0 %v5721_v1  ;;  %v4320_v50 = vmax.f32 %v4173_v21, 0.0  ;;  %v3666_v54 = vmax.f32 %v7136_v5, %v7183_v41 }
 0x222   :  { %v2106_v9 = vpop.f32.mrf.mxu0  ;;  %v7233_v18 = vpop.f32.mrf.mxu1  ;;  %2811 = vmatprep.mubr.bf16.mxu1 %v5721_v1  ;;  %2991 = vmatprep.subr.bf16.mxu1 %v5658_v59 }
 0x223   :  { %v5435_v20 = vpack.c.bf16 %v4320_v50, %v4319_v53  ;;  %v3715_v53 = vmax.f32 %v7153_v39, %v7195_v22 }
 0x224   :  { %v2108_v24 = vpop.f32.mrf.mxu0  ;;  %v7239_v17 = vpop.f32.mrf.mxu1 }
 0x225   :  { %2992 = vmatpush1.bf16.msra.mxu1 %v5656_v12  ;;  %4902 = vst [vmem:[%s8279_s3 + $0x1d0] sm:$0x33] %v5435_v20  ;;  %v5068_v20 = vcombine.low %v7141_v33, %v7141_v33 }
 0x226   :  { %v2110_v63 = vpop.f32.mrf.mxu0  ;;  %v7249_v36 = vpop.f32.mrf.mxu1  ;;  %2993 = vmatprep.subr.bf16.mxu1 %v5663_v55 }
 0x228   :  { %v2114_v29 = vpop.f32.mrf.mxu0  ;;  %v7256_v34 = vpop.f32.mrf.mxu1  ;;  %5227 = vmatmul.mubr.msk.bf16.gmra.mxu0 %vm811_vm1, %v7158_v52  ;;  %5232 = vmatmul.mubr.msk.bf16.gmra.mxu1 %vm811_vm1, %v7029_v35 }
 0x229   :  { %2750 = vmatprep.mubr.bf16.mxu0 %v5721_v1  ;;  %2819 = vmatprep.mubr.bf16.mxu1 %v5721_v1 }
 0x22a   :  { %v2116_v25 = vpop.f32.mrf.mxu0  ;;  %v7264_v56 = vpop.f32.mrf.mxu1  ;;  %2994 = vmatpush1.bf16.msra.mxu1 %v5661_v60 }
 0x22b   :  { %5266 = vmatprep.subr.msk.bf16.mxu1 %vm836_vm0, %v5071_v57  ;;  %v3716_v57 = vmax.f32 %v7166_v40, %v7204_v6  ;;  %v5666_v40 = vld [vmem:[%s8276_s0 + $0x22c] ss:$196 sps:$4 sm:$0xff]  }
 0x22c   :  { %v2118_v26 = vpop.f32.mrf.mxu0  ;;  %v2187_v23 = vpop.f32.mrf.mxu1 }
 0x22e   :  { %v2119_v8 = vpop.f32.mrf.mxu0  ;;  %v2188_v2 = vpop.f32.mrf.mxu1 }
 0x230   :  { %v2122_v7 = vpop.f32.mrf.mxu0  ;;  %v7267_v62 = vpop.f32.mrf.mxu1  ;;  %5228 = vmatmul.mubr.msk.bf16.gmra.mxu0 %vm811_vm1, %v7045_v44  ;;  %5233 = vmatmul.mubr.msk.bf16.gmra.mxu1 %vm811_vm1, %v7052_v42 }
 0x231   :  { %v3764_v11 = vmax.f32 %v2104_v30, %v2122_v7  ;;  %2760 = vmatprep.mubr.bf16.mxu0 %v5721_v1  ;;  %2829 = vmatprep.mubr.bf16.mxu1 %v5721_v1  ;;  %v3667_v30 = vmax.f32 %v7146_v4, %v7188_v37 }
 0x232   :  { %v2124_v31 = vpop.f32.mrf.mxu0  ;;  %v7277_v19 = vpop.f32.mrf.mxu1 }
 0x233   :  { %v3911_v3 = vmax.f32 %v3617_v15, %v3764_v11  ;;  %v3765_v47 = vmax.f32 %v2106_v9, %v2124_v31  ;;  %v958_v31 = vsel %vm836_vm0, %v5068_v20, 0 }
 0x234   :  { %v2126_v38 = vpop.f32.mrf.mxu0  ;;  %v7281_v45 = vpop.f32.mrf.mxu1 }
 0x235   :  { %v4076_v16 = vadd.f32 %v6194_v10, %v3911_v3  ;;  %v3912_v58 = vmax.f32 %v3618_v48, %v3765_v47  ;;  %v3813_v59 = vmax.f32 %v2108_v24, %v2126_v38  ;;  %v5664_v47 = vld [vmem:[%s8276_s0 + $0x228] ss:$196 sps:$4 sm:$0xff]  }
 0x236   :  { %v2128_v28 = vpop.f32.mrf.mxu0  ;;  %v7286_v21 = vpop.f32.mrf.mxu1 }
 0x237   :  { %v4077_v32 = vadd.f32 %v6194_v10, %v3912_v58  ;;  %v3960_v14 = vmax.f32 %v3666_v54, %v3813_v59  ;;  %v3814_v12 = vmax.f32 %v2110_v63, %v2128_v28  ;;  %v4223_v50 = vmax.f32 %v4076_v16, 0.0  ;;  %v5671_v59 = vld [vmem:[%s8276_s0 + $0xa4] ss:$196 sps:$4 sm:$0xff]  }
 0x238   :  { %v2132_v9 = vpop.f32.mrf.mxu0  ;;  %v7293_v5 = vpop.f32.mrf.mxu1  ;;  %5229 = vmatmul.mubr.msk.bf16.gmra.mxu0 %vm811_vm1, %v7081_v27  ;;  %5234 = vmatmul.mubr.msk.bf16.gmra.mxu1 %vm811_vm1, %v7088_v46 }
 0x239   :  { %v4224_v41 = vmax.f32 %v4077_v32, 0.0  ;;  %v4125_v4 = vadd.f32 %v6215_v43, %v3960_v14  ;;  %v3961_v37 = vmax.f32 %v3667_v30, %v3814_v12  ;;  %v3862_v55 = vmax.f32 %v2114_v29, %v2132_v9  ;;  %2837 = vmatprep.mubr.bf16.mxu1 %v5721_v1  ;;  %2906 = vmatprep.mubr.bf16.mxu0 %v5721_v1  ;;  %v7342_v14 = vld [vmem:[%s8276_s0 + $0x3c0] sm:$0x33] }
 0x23a   :  { %v2134_v39 = vpop.f32.mrf.mxu0  ;;  %v7302_v22 = vpop.f32.mrf.mxu1  ;;  %v5073_v9 = vcombine.high %v7342_v14, %v7342_v14 }
 0x23b   :  { %v5386_v24 = vpack.c.bf16 %v4224_v41, %v4223_v50  ;;  %v4126_v63 = vadd.f32 %v6215_v43, %v3961_v37  ;;  %v4009_v60 = vmax.f32 %v3715_v53, %v3862_v55  ;;  %v3863_v26 = vmax.f32 %v2116_v25, %v2134_v39  ;;  %v5669_v50 = vld [vmem:[%s8276_s0 + $0xa0] ss:$196 sps:$4 sm:$0xff]  }
 0x23c   :  { %v2136_v23 = vpop.f32.mrf.mxu0  ;;  %v2205_v29 = vpop.f32.mrf.mxu1  ;;  %v4272_v8 = vmax.f32 %v4125_v4, 0.0 }
 0x23d   :  { %4853 = vst [vmem:[%s8279_s3 + $0x50] sm:$0xff] %v5386_v24  ;;  %v4273_v2 = vmax.f32 %v4126_v63, 0.0  ;;  %v4174_v7 = vadd.f32 %v6238_v0, %v4009_v60  ;;  %v4010_v15 = vmax.f32 %v3716_v57, %v3863_v26  ;;  %v3619_v26 = vmax.f32 %v7220_v51, %v7267_v62 }
 0x23e   :  { %v2137_v33 = vpop.f32.mrf.mxu0  ;;  %v2206_v11 = vpop.f32.mrf.mxu1 }
 0x23f   :  { %v5411_v6 = vpack.c.bf16 %v4273_v2, %v4272_v8  ;;  %v4175_v25 = vadd.f32 %v6238_v0, %v4010_v15  ;;  %v4321_v38 = vmax.f32 %v4174_v7, 0.0  ;;  %v3620_v2 = vmax.f32 %v7233_v18, %v7277_v19 }
 0x240   :  { %v2209_v48 = vpop.f32.mrf.mxu1  ;;  %v7318_v3 = vpop.f32.mrf.mxu0  ;;  %5235 = vmatmul.mubr.msk.bf16.gmra.mxu1 %vm811_vm1, %v7117_v61  ;;  %5240 = vmatmul.mubr.msk.bf16.vlgmr.msra.gmra.mxu0 %vm811_vm1, %v6988_v13 }
 0x241   :  { %4878 = vst [vmem:[%s8279_s3 + $0x114] sm:$0xff] %v5411_v6  ;;  %3095 = vmatpush1.bf16.msra.mxu0 %v958_v31  ;;  %2847 = vmatprep.mubr.bf16.mxu1 %v5721_v1  ;;  %v4322_v54 = vmax.f32 %v4175_v25, 0.0  ;;  %v3668_v31 = vmax.f32 %v7239_v17, %v7281_v45 }
 0x242   :  { %v2211_v16 = vpop.f32.mrf.mxu1  ;;  %v7331_v58 = vpop.f32.mrf.mxu0  ;;  %2916 = vmatprep.mubr.bf16.mxu0 %v5721_v1  ;;  %3096 = vmatprep.subr.bf16.mxu0 %v5666_v40 }
 0x243   :  { %v5436_v28 = vpack.c.bf16 %v4322_v54, %v4321_v38  ;;  %v3717_v38 = vmax.f32 %v7256_v34, %v7293_v5 }
 0x244   :  { %v2213_v30 = vpop.f32.mrf.mxu1  ;;  %v7337_v32 = vpop.f32.mrf.mxu0 }
 0x245   :  { %3097 = vmatpush1.bf16.msra.mxu0 %v5664_v47  ;;  %4903 = vst [vmem:[%s8279_s3 + $0x1d8] sm:$0x33] %v5436_v28  ;;  %v5070_v28 = vcombine.low %v7244_v49, %v7244_v49 }
 0x246   :  { %v2215_v12 = vpop.f32.mrf.mxu1  ;;  %v7347_v53 = vpop.f32.mrf.mxu0  ;;  %3098 = vmatprep.subr.bf16.mxu0 %v5671_v59 }
 0x248   :  { %v2219_v41 = vpop.f32.mrf.mxu1  ;;  %v7354_v4 = vpop.f32.mrf.mxu0  ;;  %5236 = vmatmul.mubr.msk.bf16.gmra.mxu1 %vm811_vm1, %v7158_v52  ;;  %5241 = vmatmul.mubr.msk.bf16.gmra.mxu0 %vm811_vm1, %v7029_v35 }
 0x249   :  { %2855 = vmatprep.mubr.bf16.mxu1 %v5721_v1  ;;  %2924 = vmatprep.mubr.bf16.mxu0 %v5721_v1 }
 0x24a   :  { %v2221_v37 = vpop.f32.mrf.mxu1  ;;  %v7362_v55 = vpop.f32.mrf.mxu0  ;;  %3099 = vmatpush1.bf16.msra.mxu0 %v5669_v50 }
 0x24b   :  { %5275 = vmatprep.subr.msk.bf16.mxu0 %vm836_vm0, %v5073_v9  ;;  %v3718_v9 = vmax.f32 %v7264_v56, %v7302_v22  ;;  %v5674_v56 = vld [vmem:[%s8276_s0 + $0x234] ss:$196 sps:$4 sm:$0xff]  }
 0x24c   :  { %v2223_v39 = vpop.f32.mrf.mxu1  ;;  %v2292_v20 = vpop.f32.mrf.mxu0 }
 0x24e   :  { %v2224_v24 = vpop.f32.mrf.mxu1  ;;  %v2293_v63 = vpop.f32.mrf.mxu0 }
 0x250   :  { %v2227_v60 = vpop.f32.mrf.mxu1  ;;  %v7365_v57 = vpop.f32.mrf.mxu0  ;;  %5237 = vmatmul.mubr.msk.bf16.gmra.mxu1 %vm811_vm1, %v7045_v44  ;;  %5242 = vmatmul.mubr.msk.bf16.gmra.mxu0 %vm811_vm1, %v7052_v42 }
 0x251   :  { %v3766_v23 = vmax.f32 %v2209_v48, %v2227_v60  ;;  %2865 = vmatprep.mubr.bf16.mxu1 %v5721_v1  ;;  %2934 = vmatprep.mubr.bf16.mxu0 %v5721_v1  ;;  %v3669_v48 = vmax.f32 %v7249_v36, %v7286_v21 }
 0x252   :  { %v2229_v29 = vpop.f32.mrf.mxu1  ;;  %v7375_v8 = vpop.f32.mrf.mxu0 }
 0x253   :  { %v3913_v7 = vmax.f32 %v3619_v26, %v3766_v23  ;;  %v3767_v15 = vmax.f32 %v2211_v16, %v2229_v29  ;;  %v964_v29 = vsel %vm836_vm0, %v5070_v28, 0 }
 0x254   :  { %v2231_v33 = vpop.f32.mrf.mxu1  ;;  %v7379_v11 = vpop.f32.mrf.mxu0 }
 0x255   :  { %v4078_v51 = vadd.f32 %v6194_v10, %v3913_v7  ;;  %v3914_v62 = vmax.f32 %v3620_v2, %v3767_v15  ;;  %v3815_v40 = vmax.f32 %v2213_v30, %v2231_v33  ;;  %v5672_v15 = vld [vmem:[%s8276_s0 + $0x230] ss:$196 sps:$4 sm:$0xff]  }
 0x256   :  { %v2233_v6 = vpop.f32.mrf.mxu1  ;;  %v7384_v25 = vpop.f32.mrf.mxu0 }
 0x257   :  { %v4079_v18 = vadd.f32 %v6194_v10, %v3914_v62  ;;  %v3962_v19 = vmax.f32 %v3668_v31, %v3815_v40  ;;  %v3816_v47 = vmax.f32 %v2215_v12, %v2233_v6  ;;  %v4225_v54 = vmax.f32 %v4078_v51, 0.0  ;;  %v5679_v40 = vld [vmem:[%s8276_s0 + $0xac] ss:$196 sps:$4 sm:$0xff]  }
 0x258   :  { %v2237_v16 = vpop.f32.mrf.mxu1  ;;  %v7391_v17 = vpop.f32.mrf.mxu0  ;;  %5238 = vmatmul.mubr.msk.bf16.gmra.mxu1 %vm811_vm1, %v7081_v27  ;;  %5243 = vmatmul.mubr.msk.bf16.gmra.mxu0 %vm811_vm1, %v7088_v46 }
 0x259   :  { %v4226_v45 = vmax.f32 %v4079_v18, 0.0  ;;  %v4127_v36 = vadd.f32 %v6215_v43, %v3962_v19  ;;  %v3963_v21 = vmax.f32 %v3669_v48, %v3816_v47  ;;  %v3864_v59 = vmax.f32 %v2219_v41, %v2237_v16  ;;  %2942 = vmatprep.mubr.bf16.mxu0 %v5721_v1  ;;  %3011 = vmatprep.mubr.bf16.mxu1 %v5721_v1  ;;  %v7440_v19 = vld [vmem:[%s8276_s0 + $0x3c8] sm:$0x33] }
 0x25a   :  { %v2239_v34 = vpop.f32.mrf.mxu1  ;;  %v7400_v5 = vpop.f32.mrf.mxu0  ;;  %v5075_v16 = vcombine.high %v7440_v19, %v7440_v19 }
 0x25b   :  { %v5387_v30 = vpack.c.bf16 %v4226_v45, %v4225_v54  ;;  %v4128_v12 = vadd.f32 %v6215_v43, %v3963_v21  ;;  %v4011_v50 = vmax.f32 %v3717_v38, %v3864_v59  ;;  %v3865_v39 = vmax.f32 %v2221_v37, %v2239_v34  ;;  %v5677_v54 = vld [vmem:[%s8276_s0 + $0xa8] ss:$196 sps:$4 sm:$0xff]  }
 0x25c   :  { %v2241_v20 = vpop.f32.mrf.mxu1  ;;  %v2310_v41 = vpop.f32.mrf.mxu0  ;;  %v4274_v24 = vmax.f32 %v4127_v36, 0.0 }
 0x25d   :  { %4854 = vst [vmem:[%s8279_s3 + $0x58] sm:$0xff] %v5387_v30  ;;  %v4275_v63 = vmax.f32 %v4128_v12, 0.0  ;;  %v4176_v60 = vadd.f32 %v6238_v0, %v4011_v50  ;;  %v4012_v26 = vmax.f32 %v3718_v9, %v3865_v39  ;;  %v3621_v39 = vmax.f32 %v7318_v3, %v7365_v57 }
 0x25e   :  { %v2242_v49 = vpop.f32.mrf.mxu1  ;;  %v2311_v23 = vpop.f32.mrf.mxu0 }
 0x25f   :  { %v5412_v22 = vpack.c.bf16 %v4275_v63, %v4274_v24  ;;  %v4177_v37 = vadd.f32 %v6238_v0, %v4012_v26  ;;  %v4323_v33 = vmax.f32 %v4176_v60, 0.0  ;;  %v3622_v63 = vmax.f32 %v7331_v58, %v7375_v8 }
 0x260   :  { %v2314_v2 = vpop.f32.mrf.mxu0  ;;  %v7416_v7 = vpop.f32.mrf.mxu1  ;;  %5244 = vmatmul.mubr.msk.bf16.gmra.mxu0 %vm811_vm1, %v7117_v61  ;;  %5249 = vmatmul.mubr.msk.bf16.vlgmr.msra.gmra.mxu1 %vm811_vm1, %v6988_v13 }
 0x261   :  { %4879 = vst [vmem:[%s8279_s3 + $0x11c] sm:$0xff] %v5412_v22  ;;  %3200 = vmatpush1.bf16.msra.mxu1 %v964_v29  ;;  %2952 = vmatprep.mubr.bf16.mxu0 %v5721_v1  ;;  %v4324_v31 = vmax.f32 %v4177_v37, 0.0  ;;  %v3670_v29 = vmax.f32 %v7337_v32, %v7379_v11 }
 0x262   :  { %v2316_v51 = vpop.f32.mrf.mxu0  ;;  %v7429_v62 = vpop.f32.mrf.mxu1  ;;  %3021 = vmatprep.mubr.bf16.mxu1 %v5721_v1  ;;  %3201 = vmatprep.subr.bf16.mxu1 %v5674_v56 }
 0x263   :  { %v5437_v6 = vpack.c.bf16 %v4324_v31, %v4323_v33  ;;  %v3719_v33 = vmax.f32 %v7354_v4, %v7391_v17 }
 0x264   :  { %v2318_v48 = vpop.f32.mrf.mxu0  ;;  %v7435_v18 = vpop.f32.mrf.mxu1 }
 0x265   :  { %3202 = vmatpush1.bf16.msra.mxu1 %v5672_v15  ;;  %4904 = vst [vmem:[%s8279_s3 + $0x1e0] sm:$0x33] %v5437_v6  ;;  %v5072_v6 = vcombine.low %v7342_v14, %v7342_v14 }
 0x266   :  { %v2320_v47 = vpop.f32.mrf.mxu0  ;;  %v7445_v38 = vpop.f32.mrf.mxu1  ;;  %3203 = vmatprep.subr.bf16.mxu1 %v5679_v40 }
 0x268   :  { %v2324_v45 = vpop.f32.mrf.mxu0  ;;  %v7452_v36 = vpop.f32.mrf.mxu1  ;;  %5245 = vmatmul.mubr.msk.bf16.gmra.mxu0 %vm811_vm1, %v7158_v52  ;;  %5250 = vmatmul.mubr.msk.bf16.gmra.mxu1 %vm811_vm1, %v7029_v35 }
 0x269   :  { %2960 = vmatprep.mubr.bf16.mxu0 %v5721_v1  ;;  %3029 = vmatprep.mubr.bf16.mxu1 %v5721_v1 }
 0x26a   :  { %v2326_v21 = vpop.f32.mrf.mxu0  ;;  %v7460_v59 = vpop.f32.mrf.mxu1  ;;  %3204 = vmatpush1.bf16.msra.mxu1 %v5677_v54 }
 0x26b   :  { %5284 = vmatprep.subr.msk.bf16.mxu1 %vm836_vm0, %v5075_v16  ;;  %v3720_v16 = vmax.f32 %v7362_v55, %v7400_v5  ;;  %v5682_v55 = vld [vmem:[%s8276_s0 + $0x23c] ss:$196 sps:$4 sm:$0xff]  }
 0x26c   :  { %v2328_v34 = vpop.f32.mrf.mxu0  ;;  %v2397_v28 = vpop.f32.mrf.mxu1 }
 0x26e   :  { %v2329_v30 = vpop.f32.mrf.mxu0  ;;  %v2398_v12 = vpop.f32.mrf.mxu1 }
 0x270   :  { %v2332_v50 = vpop.f32.mrf.mxu0  ;;  %v7463_v9 = vpop.f32.mrf.mxu1  ;;  %5246 = vmatmul.mubr.msk.bf16.gmra.mxu0 %vm811_vm1, %v7045_v44  ;;  %5251 = vmatmul.mubr.msk.bf16.gmra.mxu1 %vm811_vm1, %v7052_v42 }
 0x271   :  { %v3768_v20 = vmax.f32 %v2314_v2, %v2332_v50  ;;  %2970 = vmatprep.mubr.bf16.mxu0 %v5721_v1  ;;  %3039 = vmatprep.mubr.bf16.mxu1 %v5721_v1  ;;  %v3671_v2 = vmax.f32 %v7347_v53, %v7384_v25 }
 0x272   :  { %v2334_v41 = vpop.f32.mrf.mxu0  ;;  %v7473_v24 = vpop.f32.mrf.mxu1 }
 0x273   :  { %v3915_v60 = vmax.f32 %v3621_v39, %v3768_v20  ;;  %v3769_v26 = vmax.f32 %v2316_v51, %v2334_v41  ;;  %v970_v41 = vsel %vm836_vm0, %v5072_v6, 0 }
 0x274   :  { %v2336_v49 = vpop.f32.mrf.mxu0  ;;  %v7477_v23 = vpop.f32.mrf.mxu1 }
 0x275   :  { %v4080_v3 = vadd.f32 %v6194_v10, %v3915_v60  ;;  %v3916_v57 = vmax.f32 %v3622_v63, %v3769_v26  ;;  %v3817_v56 = vmax.f32 %v2318_v48, %v2336_v49  ;;  %v5680_v26 = vld [vmem:[%s8276_s0 + $0x238] ss:$196 sps:$4 sm:$0xff]  }
 0x276   :  { %v2338_v22 = vpop.f32.mrf.mxu0  ;;  %v7482_v37 = vpop.f32.mrf.mxu1 }
 0x277   :  { %v4081_v58 = vadd.f32 %v6194_v10, %v3916_v57  ;;  %v3964_v8 = vmax.f32 %v3670_v29, %v3817_v56  ;;  %v3818_v15 = vmax.f32 %v2320_v47, %v2338_v22  ;;  %v4227_v31 = vmax.f32 %v4080_v3, 0.0 }
 0x278   :  { %v2342_v51 = vpop.f32.mrf.mxu0  ;;  %v7489_v32 = vpop.f32.mrf.mxu1  ;;  %5247 = vmatmul.mubr.msk.bf16.gmra.mxu0 %vm811_vm1, %v7081_v27  ;;  %5252 = vmatmul.mubr.msk.bf16.gmra.mxu1 %vm811_vm1, %v7088_v46 }
 0x279   :  { %v4228_v11 = vmax.f32 %v4081_v58, 0.0  ;;  %v4129_v53 = vadd.f32 %v6215_v43, %v3964_v8  ;;  %v3965_v25 = vmax.f32 %v3671_v2, %v3818_v15  ;;  %v3866_v40 = vmax.f32 %v2324_v45, %v2342_v51  ;;  %3047 = vmatprep.mubr.bf16.mxu1 %v5721_v1  ;;  %3116 = vmatprep.mubr.bf16.mxu0 %v5721_v1  ;;  %v5685_v15 = vld [vmem:[%s8276_s0 + $0xb0] ss:$196 sps:$4 sm:$0xff]  }
 0x27a   :  { %v2344_v4 = vpop.f32.mrf.mxu0  ;;  %v7498_v17 = vpop.f32.mrf.mxu1 }
 0x27b   :  { %v5388_v48 = vpack.c.bf16 %v4228_v11, %v4227_v31  ;;  %v4130_v47 = vadd.f32 %v6215_v43, %v3965_v25  ;;  %v4013_v54 = vmax.f32 %v3719_v33, %v3866_v40  ;;  %v3867_v34 = vmax.f32 %v2326_v21, %v2344_v4  ;;  %v7546_v33 = vld [vmem:[%s8276_s0 + $0x3d0] ss:$0 sps:$4 sm:$0x33]  }
 0x27c   :  { %v2346_v28 = vpop.f32.mrf.mxu0  ;;  %v2415_v45 = vpop.f32.mrf.mxu1  ;;  %v4276_v30 = vmax.f32 %v4129_v53, 0.0 }
 0x27d   :  { %4855 = vst [vmem:[%s8279_s3 + $0x60] sm:$0xff] %v5388_v48  ;;  %v4277_v12 = vmax.f32 %v4130_v47, 0.0  ;;  %v4178_v50 = vadd.f32 %v6238_v0, %v4013_v54  ;;  %v4014_v39 = vmax.f32 %v3720_v16, %v3867_v34  ;;  %v3624_v28 = vmax.f32 %v7429_v62, %v7473_v24 }
 0x27e   :  { %v2347_v14 = vpop.f32.mrf.mxu0  ;;  %v2416_v20 = vpop.f32.mrf.mxu1 }
 0x27f   :  { %v5413_v5 = vpack.c.bf16 %v4277_v12, %v4276_v30  ;;  %v4179_v21 = vadd.f32 %v6238_v0, %v4014_v39  ;;  %v4325_v49 = vmax.f32 %v4178_v50, 0.0  ;;  %v3673_v20 = vmax.f32 %v7445_v38, %v7482_v37 }
 0x280   :  { %v2419_v63 = vpop.f32.mrf.mxu1  ;;  %v7514_v60 = vpop.f32.mrf.mxu0  ;;  %5253 = vmatmul.mubr.msk.bf16.gmra.mxu1 %vm811_vm1, %v7117_v61  ;;  %5258 = vmatmul.mubr.msk.bf16.vlgmr.msra.gmra.mxu0 %vm811_vm1, %v6988_v13  ;;  %v5687_v13 = vld [vmem:[%s8276_s0 + $0xb4] ss:$196 sps:$4 sm:$0xff]  }
 0x281   :  { %4880 = vst [vmem:[%s8279_s3 + $0x124] sm:$0xff] %v5413_v5  ;;  %3305 = vmatpush1.bf16.msra.mxu0 %v970_v41  ;;  %3057 = vmatprep.mubr.bf16.mxu1 %v5721_v1  ;;  %v4326_v29 = vmax.f32 %v4179_v21, 0.0 }
 0x282   :  { %v2421_v3 = vpop.f32.mrf.mxu1  ;;  %v7527_v57 = vpop.f32.mrf.mxu0  ;;  %3126 = vmatprep.mubr.bf16.mxu0 %v5721_v1  ;;  %3306 = vmatprep.subr.bf16.mxu0 %v5682_v55  ;;  %v3721_v55 = vmax.f32 %v7452_v36, %v7489_v32 }
 0x283   :  { %v5438_v56 = vpack.c.bf16 %v4326_v29, %v4325_v49 }
 0x284   :  { %v2423_v22 = vpop.f32.mrf.mxu1  ;;  %v7533_v2 = vpop.f32.mrf.mxu0 }
 0x285   :  { %3307 = vmatpush1.bf16.msra.mxu0 %v5680_v26  ;;  %4905 = vst [vmem:[%s8279_s3 + $0x1e8] sm:$0x33] %v5438_v56  ;;  %v5074_v26 = vcombine.low %v7440_v19, %v7440_v19 }
 0x286   :  { %v2425_v58 = vpop.f32.mrf.mxu1  ;;  %v7538_v8 = vpop.f32.mrf.mxu0  ;;  %3308 = vmatprep.subr.bf16.mxu0 %v5687_v13 }
 0x288   :  { %v2429_v31 = vpop.f32.mrf.mxu1  ;;  %v7548_v51 = vpop.f32.mrf.mxu0  ;;  %5254 = vmatmul.mubr.msk.bf16.gmra.mxu1 %vm811_vm1, %v7158_v52  ;;  %5259 = vmatmul.mubr.msk.bf16.gmra.mxu0 %vm811_vm1, %v7029_v35  ;;  %v3623_v35 = vmax.f32 %v7416_v7, %v7463_v9 }
 0x289   :  { %3065 = vmatprep.mubr.bf16.mxu1 %v5721_v1  ;;  %3134 = vmatprep.mubr.bf16.mxu0 %v5721_v1 }
 0x28a   :  { %v2431_v11 = vpop.f32.mrf.mxu1  ;;  %v7556_v53 = vpop.f32.mrf.mxu0  ;;  %3309 = vmatpush1.bf16.msra.mxu0 %v5685_v15 }
 0x28b   :  { %5490 = vmatprep.subr.msk.bf16.mxu0 %vm836_vm0, %v7546_v33 }
 0x28c   :  { %v2433_v25 = vpop.f32.mrf.mxu1  ;;  %v2502_v40 = vpop.f32.mrf.mxu0 }
 0x28d   :  { %v976_v40 = vsel %vm836_vm0, %v5074_v26, 0 }
 0x28e   :  { %v2434_v4 = vpop.f32.mrf.mxu1  ;;  %v2503_v6 = vpop.f32.mrf.mxu0 }
 0x290   :  { %v2437_v48 = vpop.f32.mrf.mxu1  ;;  %v7560_v47 = vpop.f32.mrf.mxu0  ;;  %5255 = vmatmul.mubr.msk.bf16.gmra.mxu1 %vm811_vm1, %v7045_v44  ;;  %5260 = vmatmul.mubr.msk.bf16.gmra.mxu0 %vm811_vm1, %v7052_v42  ;;  %v3672_v42 = vmax.f32 %v7435_v18, %v7477_v23 }
 0x291   :  { %v3770_v54 = vmax.f32 %v2419_v63, %v2437_v48  ;;  %3075 = vmatprep.mubr.bf16.mxu1 %v5721_v1  ;;  %3144 = vmatprep.mubr.bf16.mxu0 %v5721_v1  ;;  %v7618_v48 = vld [vmem:[%s8277_s1] sm:$0xff]  }
 0x292   :  { %v2439_v16 = vpop.f32.mrf.mxu1  ;;  %v7570_v34 = vpop.f32.mrf.mxu0 }
 0x293   :  { %v3917_v45 = vmax.f32 %v3623_v35, %v3770_v54  ;;  %v3771_v30 = vmax.f32 %v2421_v3, %v2439_v16  ;;  %v5688_v35 = vld [vmem:[%s8276_s0 + $0x240] ss:$196 sps:$4 sm:$0xff]  }
 0x294   :  { %v2441_v44 = vpop.f32.mrf.mxu1  ;;  %v7574_v12 = vpop.f32.mrf.mxu0 }
 0x295   :  { %v4082_v7 = vadd.f32 %v6194_v10, %v3917_v45  ;;  %v3918_v9 = vmax.f32 %v3624_v28, %v3771_v30  ;;  %v3819_v50 = vmax.f32 %v2423_v22, %v2441_v44  ;;  %v5694_v45 = vld [vmem:[%s8276_s0 + $0xbc] ss:$196 sps:$4 sm:$0xff]  }
 0x296   :  { %v2443_v39 = vpop.f32.mrf.mxu1  ;;  %v7579_v14 = vpop.f32.mrf.mxu0 }
 0x297   :  { %v4083_v62 = vadd.f32 %v6194_v10, %v3918_v9  ;;  %v3966_v24 = vmax.f32 %v3672_v42, %v3819_v50  ;;  %v3820_v41 = vmax.f32 %v2425_v58, %v2443_v39  ;;  %v4229_v5 = vmax.f32 %v4082_v7, 0.0  ;;  %v5692_v50 = vld [vmem:[%s8276_s0 + $0xb8] ss:$196 sps:$4 sm:$0xff]  }
 0x298   :  { %v2447_v21 = vpop.f32.mrf.mxu1  ;;  %v7586_v18 = vpop.f32.mrf.mxu0  ;;  %5256 = vmatmul.mubr.msk.bf16.gmra.mxu1 %vm811_vm1, %v7081_v27  ;;  %5261 = vmatmul.mubr.msk.bf16.gmra.mxu0 %vm811_vm1, %v7088_v46  ;;  %v3722_v46 = vmax.f32 %v7460_v59, %v7498_v17  ;;  %v5690_v59 = vld [vmem:[%s8276_s0 + $0x244] ss:$196 sps:$4 sm:$0xff]  }
 0x299   :  { %v4230_v23 = vmax.f32 %v4083_v62, 0.0  ;;  %v4131_v38 = vadd.f32 %v6215_v43, %v3966_v24  ;;  %v3967_v37 = vmax.f32 %v3673_v20, %v3820_v41  ;;  %v3868_v63 = vmax.f32 %v2429_v31, %v2447_v21  ;;  %3152 = vmatprep.mubr.bf16.mxu0 %v5721_v1  ;;  %3221 = vmatprep.mubr.bf16.mxu1 %v5721_v1  ;;  %v7652_v62 = vld [vmem:[%s8277_s1 + $0x8] sm:$0xff]  }
 0x29a   :  { %v2449_v36 = vpop.f32.mrf.mxu1  ;;  %v7595_v32 = vpop.f32.mrf.mxu0 }
 0x29b   :  { %v5389_v49 = vpack.c.bf16 %v4230_v23, %v4229_v5  ;;  %v4132_v27 = vadd.f32 %v6215_v43, %v3967_v37  ;;  %v4015_v29 = vmax.f32 %v3721_v55, %v3868_v63  ;;  %v3869_v3 = vmax.f32 %v2431_v11, %v2449_v36  ;;  %v7665_v37 = vld [vmem:[%s8277_s1 + $0x30] sm:$0xff]  }
 0x29c   :  { %v2451_v13 = vpop.f32.mrf.mxu1  ;;  %v2520_v56 = vpop.f32.mrf.mxu0  ;;  %v4278_v22 = vmax.f32 %v4131_v38, 0.0  ;;  %v7672_v63 = vld [vmem:[%s8277_s1 + $0x10] sm:$0xff]   ;;  %v3625_v36 = vmax.f32 %v7514_v60, %v7560_v47 }
 0x29d   :  { %4856 = vst [vmem:[%s8279_s3 + $0x68] sm:$0xff] %v5389_v49  ;;  %v4279_v58 = vmax.f32 %v4132_v27, 0.0  ;;  %v4180_v15 = vadd.f32 %v6238_v0, %v4015_v29  ;;  %v4016_v31 = vmax.f32 %v3722_v46, %v3869_v3  ;;  %v3626_v29 = vmax.f32 %v7527_v57, %v7570_v34 }
 0x29e   :  { %v2452_v19 = vpop.f32.mrf.mxu1  ;;  %v2521_v25 = vpop.f32.mrf.mxu0 }
 0x29f   :  { %v5414_v17 = vpack.c.bf16 %v4279_v58, %v4278_v22  ;;  %v4181_v11 = vadd.f32 %v6238_v0, %v4016_v31  ;;  %v3674_v22 = vmax.f32 %v7533_v2, %v7574_v12  ;;  %v3675_v19 = vmax.f32 %v7538_v8, %v7579_v14  ;;  %v7701_v12 = vld [vmem:[%s8277_s1 + $0x38] sm:$0xff]  }
 0x2a0   :  { %v2524_v4 = vpop.f32.mrf.mxu0  ;;  %v7611_v6 = vpop.f32.mrf.mxu1  ;;  %5262 = vmatmul.mubr.msk.bf16.gmra.mxu0 %vm811_vm1, %v7117_v61  ;;  %5267 = vmatmul.mubr.msk.bf16.vlgmr.msra.gmra.mxu1 %vm811_vm1, %v7618_v48  ;;  %v4327_v61 = vmax.f32 %v4180_v15, 0.0  ;;  %v7708_v8 = vld [vmem:[%s8277_s1 + $0x18] sm:$0xff]  }
 0x2a1   :  { %4881 = vst [vmem:[%s8279_s3 + $0x12c] sm:$0xff] %v5414_v17  ;;  %3410 = vmatpush1.bf16.msra.mxu1 %v976_v40  ;;  %3162 = vmatprep.mubr.bf16.mxu0 %v5721_v1  ;;  %v4328_v54 = vmax.f32 %v4181_v11, 0.0  ;;  %v3723_v40 = vmax.f32 %v7548_v51, %v7586_v18 }
 0x2a2   :  { %v2526_v16 = vpop.f32.mrf.mxu0  ;;  %v7629_v28 = vpop.f32.mrf.mxu1  ;;  %3231 = vmatprep.mubr.bf16.mxu1 %v5721_v1  ;;  %3411 = vmatprep.subr.bf16.mxu1 %v5690_v59 }
 0x2a3   :  { %v5439_v30 = vpack.c.bf16 %v4328_v54, %v4327_v61 }
 0x2a4   :  { %v2528_v44 = vpop.f32.mrf.mxu0  ;;  %v7635_v42 = vpop.f32.mrf.mxu1 }
 0x2a5   :  { %3412 = vmatpush1.bf16.msra.mxu1 %v5688_v35  ;;  %4906 = vst [vmem:[%s8279_s3 + $0x1f0] sm:$0x33] %v5439_v30 }
 0x2a6   :  { %v2530_v7 = vpop.f32.mrf.mxu0  ;;  %v7640_v9 = vpop.f32.mrf.mxu1  ;;  %3413 = vmatprep.subr.bf16.mxu1 %v5694_v45  ;;  %v3724_v45 = vmax.f32 %v7556_v53, %v7595_v32  ;;  %v5695_v53 = vld [vmem:[%s8276_s0 + $0x248] ss:$196 sps:$4 sm:$0xff]  }
 0x2a8   :  { %v2534_v39 = vpop.f32.mrf.mxu0  ;;  %v7645_v20 = vpop.f32.mrf.mxu1  ;;  %5263 = vmatmul.mubr.msk.bf16.gmra.mxu0 %vm811_vm1, %v7158_v52  ;;  %5268 = vmatmul.mubr.msk.bf16.gmra.mxu1 %vm811_vm1, %v7652_v62 }
 0x2a9   :  { %3170 = vmatprep.mubr.bf16.mxu0 %v5721_v1  ;;  %3239 = vmatprep.mubr.bf16.mxu1 %v5721_v1 }
 0x2aa   :  { %v2536_v24 = vpop.f32.mrf.mxu0  ;;  %v7658_v41 = vpop.f32.mrf.mxu1  ;;  %3414 = vmatpush1.bf16.msra.mxu1 %v5692_v50 }
 0x2ac   :  { %v2538_v55 = vpop.f32.mrf.mxu0  ;;  %v2607_v5 = vpop.f32.mrf.mxu1 }
 0x2ae   :  { %v2539_v21 = vpop.f32.mrf.mxu0  ;;  %v2608_v52 = vpop.f32.mrf.mxu1 }
 0x2b0   :  { %v2542_v23 = vpop.f32.mrf.mxu0  ;;  %v7660_v38 = vpop.f32.mrf.mxu1  ;;  %5264 = vmatmul.mubr.msk.bf16.gmra.mxu0 %vm811_vm1, %v7665_v37  ;;  %5269 = vmatmul.mubr.msk.bf16.gmra.mxu1 %vm811_vm1, %v7672_v63 }
 0x2b1   :  { %v3772_v26 = vmax.f32 %v2524_v4, %v2542_v23  ;;  %3180 = vmatprep.mubr.bf16.mxu0 %v5721_v1  ;;  %3249 = vmatprep.mubr.bf16.mxu1 %v5721_v1  ;;  %v982_v23 = vsel %vm836_vm0, %v7546_v33, 0 }
 0x2b2   :  { %v2544_v49 = vpop.f32.mrf.mxu0  ;;  %v7680_v27 = vpop.f32.mrf.mxu1 }
 0x2b3   :  { %v3919_v46 = vmax.f32 %v3625_v36, %v3772_v26  ;;  %v3773_v3 = vmax.f32 %v2526_v16, %v2544_v49  ;;  %v7735_v49 = vld [vmem:[%s8277_s1 + $0x20] sm:$0xff]  }
 0x2b4   :  { %v2546_v13 = vpop.f32.mrf.mxu0  ;;  %v7684_v56 = vpop.f32.mrf.mxu1 }
 0x2b5   :  { %v4084_v60 = vadd.f32 %v6194_v10, %v3919_v46  ;;  %v3920_v47 = vmax.f32 %v3626_v29, %v3773_v3  ;;  %v3821_v58 = vmax.f32 %v2528_v44, %v2546_v13  ;;  %v5696_v13 = vld [vmem:[%s8276_s0 + $0xc0] ss:$196 sps:$4 sm:$0xff]  }
 0x2b6   :  { %v2548_v15 = vpop.f32.mrf.mxu0  ;;  %v7689_v31 = vpop.f32.mrf.mxu1 }
 0x2b7   :  { %v4085_v57 = vadd.f32 %v6194_v10, %v3920_v47  ;;  %v3968_v34 = vmax.f32 %v3674_v22, %v3821_v58  ;;  %v3822_v25 = vmax.f32 %v2530_v7, %v2548_v15  ;;  %v4231_v59 = vmax.f32 %v4084_v60, 0.0 }
 0x2b8   :  { %v2552_v17 = vpop.f32.mrf.mxu0  ;;  %v7696_v2 = vpop.f32.mrf.mxu1  ;;  %5265 = vmatmul.mubr.msk.bf16.gmra.mxu0 %vm811_vm1, %v7701_v12  ;;  %5270 = vmatmul.mubr.msk.bf16.gmra.mxu1 %vm811_vm1, %v7708_v8 }
 0x2b9   :  { %v4232_v51 = vmax.f32 %v4085_v57, 0.0  ;;  %v4133_v14 = vadd.f32 %v6215_v43, %v3968_v34  ;;  %v3969_v18 = vmax.f32 %v3675_v19, %v3822_v25  ;;  %v3870_v11 = vmax.f32 %v2534_v39, %v2552_v17  ;;  %3257 = vmatprep.mubr.bf16.mxu1 %v5721_v1  ;;  %3326 = vmatprep.mubr.bf16.mxu0 %v5721_v1  ;;  %v7763_v34 = vld [vmem:[%s8277_s1 + $0x28] sm:$0xff]  }
 0x2ba   :  { %v2554_v4 = vpop.f32.mrf.mxu0  ;;  %v7715_v35 = vpop.f32.mrf.mxu1 }
 0x2bb   :  { %v5390_v61 = vpack.c.bf16 %v4232_v51, %v4231_v59  ;;  %v4134_v54 = vadd.f32 %v6215_v43, %v3969_v18  ;;  %v4017_v16 = vmax.f32 %v3723_v40, %v3870_v11  ;;  %v3871_v30 = vmax.f32 %v2536_v24, %v2554_v4 }
 0x2bc   :  { %v2556_v44 = vpop.f32.mrf.mxu0  ;;  %v2625_v7 = vpop.f32.mrf.mxu1  ;;  %v4280_v50 = vmax.f32 %v4133_v14, 0.0  ;;  %v3627_v4 = vmax.f32 %v7611_v6, %v7660_v38 }
 0x2bd   :  { %4857 = vst [vmem:[%s8279_s3 + $0x70] sm:$0xff] %v5390_v61  ;;  %v4281_v39 = vmax.f32 %v4134_v54, 0.0  ;;  %v4182_v55 = vadd.f32 %v6238_v0, %v4017_v16  ;;  %v4018_v5 = vmax.f32 %v3724_v45, %v3871_v30  ;;  %v3628_v45 = vmax.f32 %v7629_v28, %v7680_v27 }
 0x2be   :  { %v2557_v21 = vpop.f32.mrf.mxu0  ;;  %v2626_v52 = vpop.f32.mrf.mxu1 }
 0x2bf   :  { %v5415_v32 = vpack.c.bf16 %v4281_v39, %v4280_v50  ;;  %v4183_v24 = vadd.f32 %v6238_v0, %v4018_v5  ;;  %v4329_v33 = vmax.f32 %v4182_v55, 0.0  ;;  %v3676_v39 = vmax.f32 %v7635_v42, %v7684_v56 }
 0x2c0   :  { %v2629_v36 = vpop.f32.mrf.mxu1  ;;  %v7730_v26 = vpop.f32.mrf.mxu0  ;;  %5271 = vmatmul.mubr.msk.bf16.gmra.mxu1 %vm811_vm1, %v7735_v49  ;;  %5276 = vmatmul.mubr.msk.bf16.vlgmr.msra.gmra.mxu0 %vm811_vm1, %v7618_v48  ;;  %v3677_v52 = vmax.f32 %v7640_v9, %v7689_v31 }
 0x2c1   :  { %4882 = vst [vmem:[%s8279_s3 + $0x134] sm:$0xff] %v5415_v32  ;;  %5463 = vmatpush3.bf16.msra.mxu0 %v982_v23  ;;  %3267 = vmatprep.mubr.bf16.mxu1 %v5721_v1  ;;  %v4330_v29 = vmax.f32 %v4183_v24, 0.0 }
 0x2c2   :  { %v2631_v46 = vpop.f32.mrf.mxu1  ;;  %v7745_v3 = vpop.f32.mrf.mxu0  ;;  %3336 = vmatprep.mubr.bf16.mxu0 %v5721_v1  ;;  %5464 = vmatprep.subr.bf16.mxu0 %v5695_v53 }
 0x2c3   :  { %v5440_v22 = vpack.c.bf16 %v4330_v29, %v4329_v33 }
 0x2c4   :  { %v2633_v60 = vpop.f32.mrf.mxu1  ;;  %v7751_v47 = vpop.f32.mrf.mxu0 }
 0x2c5   :  { %5465 = vmatpush3.bf16.msra.mxu0 %v5695_v53  ;;  %4907 = vst [vmem:[%s8279_s3 + $0x1f8] sm:$0x33] %v5440_v22  ;;  %v3725_v53 = vmax.f32 %v7645_v20, %v7696_v2 }
 0x2c6   :  { %v2635_v58 = vpop.f32.mrf.mxu1  ;;  %v7756_v15 = vpop.f32.mrf.mxu0  ;;  %5466 = vmatprep.subr.bf16.mxu0 %v5696_v13 }
 0x2c8   :  { %v2639_v19 = vpop.f32.mrf.mxu1  ;;  %v7758_v57 = vpop.f32.mrf.mxu0  ;;  %5272 = vmatmul.mubr.msk.bf16.gmra.mxu1 %vm811_vm1, %v7763_v34  ;;  %5277 = vmatmul.mubr.msk.bf16.gmra.mxu0 %vm811_vm1, %v7652_v62 }
 0x2c9   :  { %3275 = vmatprep.mubr.bf16.mxu1 %v5721_v1  ;;  %3344 = vmatprep.mubr.bf16.mxu0 %v5721_v1 }
 0x2ca   :  { %v2641_v25 = vpop.f32.mrf.mxu1  ;;  %v7771_v40 = vpop.f32.mrf.mxu0  ;;  %5467 = vmatpush3.bf16.msra.mxu0 %v5696_v13  ;;  %v3726_v13 = vmax.f32 %v7658_v41, %v7715_v35 }
 0x2cc   :  { %v2643_v59 = vpop.f32.mrf.mxu1  ;;  %v2712_v17 = vpop.f32.mrf.mxu0 }
 0x2ce   :  { %v2644_v51 = vpop.f32.mrf.mxu1  ;;  %v2713_v14 = vpop.f32.mrf.mxu0 }
 0x2d0   :  { %v2647_v18 = vpop.f32.mrf.mxu1  ;;  %v7773_v11 = vpop.f32.mrf.mxu0  ;;  %5273 = vmatmul.mubr.msk.bf16.gmra.mxu1 %vm811_vm1, %v7665_v37  ;;  %5278 = vmatmul.mubr.msk.bf16.gmra.mxu0 %vm811_vm1, %v7672_v63 }
 0x2d1   :  { %v3774_v61 = vmax.f32 %v2629_v36, %v2647_v18  ;;  %3285 = vmatprep.mubr.bf16.mxu1 %v5721_v1  ;;  %3354 = vmatprep.mubr.bf16.mxu0 %v5721_v1 }
 0x2d2   :  { %v2649_v54 = vpop.f32.mrf.mxu1  ;;  %v7783_v16 = vpop.f32.mrf.mxu0 }
 0x2d3   :  { %v3921_v30 = vmax.f32 %v3627_v4, %v3774_v61  ;;  %v3775_v44 = vmax.f32 %v2631_v46, %v2649_v54 }
 0x2d4   :  { %v2651_v7 = vpop.f32.mrf.mxu1  ;;  %v7787_v50 = vpop.f32.mrf.mxu0 }
 0x2d5   :  { %v4086_v6 = vadd.f32 %v6194_v10, %v3921_v30  ;;  %v3922_v38 = vmax.f32 %v3628_v45, %v3775_v44  ;;  %v3823_v55 = vmax.f32 %v2633_v60, %v2651_v7 }
 0x2d6   :  { %v2653_v5 = vpop.f32.mrf.mxu1  ;;  %v7792_v21 = vpop.f32.mrf.mxu0 }
 0x2d7   :  { %v4087_v28 = vadd.f32 %v6194_v10, %v3922_v38  ;;  %v3970_v27 = vmax.f32 %v3676_v39, %v3823_v55  ;;  %v3824_v23 = vmax.f32 %v2635_v58, %v2653_v5  ;;  %v4233_v32 = vmax.f32 %v4086_v6, 0.0 }
 0x2d8   :  { %v2657_v24 = vpop.f32.mrf.mxu1  ;;  %v7799_v42 = vpop.f32.mrf.mxu0  ;;  %5274 = vmatmul.mubr.msk.bf16.gmra.mxu1 %vm811_vm1, %v7701_v12  ;;  %5279 = vmatmul.mubr.msk.bf16.gmra.mxu0 %vm811_vm1, %v7708_v8 }
 0x2d9   :  { %v4234_v56 = vmax.f32 %v4087_v28, 0.0  ;;  %v4135_v9 = vadd.f32 %v6215_v43, %v3970_v27  ;;  %v3971_v31 = vmax.f32 %v3677_v52, %v3824_v23  ;;  %v3872_v36 = vmax.f32 %v2639_v19, %v2657_v24  ;;  %3362 = vmatprep.mubr.bf16.mxu0 %v5721_v1  ;;  %3431 = vmatprep.mubr.bf16.mxu1 %v5721_v1 }
 0x2da   :  { %v2659_v20 = vpop.f32.mrf.mxu1  ;;  %v7808_v2 = vpop.f32.mrf.mxu0 }
 0x2db   :  { %v5391_v33 = vpack.c.bf16 %v4234_v56, %v4233_v32  ;;  %v4136_v29 = vadd.f32 %v6215_v43, %v3971_v31  ;;  %v4019_v46 = vmax.f32 %v3725_v53, %v3872_v36  ;;  %v3873_v22 = vmax.f32 %v2641_v25, %v2659_v20 }
 0x2dc   :  { %v2661_v60 = vpop.f32.mrf.mxu1  ;;  %v2730_v58 = vpop.f32.mrf.mxu0  ;;  %v4282_v19 = vmax.f32 %v4135_v9, 0.0  ;;  %v3629_v9 = vmax.f32 %v7730_v26, %v7773_v11 }
 0x2dd   :  { %4858 = vst [vmem:[%s8279_s3 + $0x78] sm:$0xff] %v5391_v33  ;;  %v4283_v59 = vmax.f32 %v4136_v29, 0.0  ;;  %v4184_v17 = vadd.f32 %v6238_v0, %v4019_v46  ;;  %v4020_v51 = vmax.f32 %v3726_v13, %v3873_v22  ;;  %v3630_v33 = vmax.f32 %v7745_v3, %v7783_v16 }
 0x2de   :  { %v2662_v14 = vpop.f32.mrf.mxu1  ;;  %v2731_v18 = vpop.f32.mrf.mxu0  ;;  %v3678_v60 = vmax.f32 %v7751_v47, %v7787_v50 }
 0x2df   :  { %v5416_v4 = vpack.c.bf16 %v4283_v59, %v4282_v19  ;;  %v4185_v61 = vadd.f32 %v6238_v0, %v4020_v51  ;;  %v4331_v41 = vmax.f32 %v4184_v17, 0.0  ;;  %v3679_v17 = vmax.f32 %v7756_v15, %v7792_v21 }
 0x2e0   :  { %v2734_v54 = vpop.f32.mrf.mxu0  ;;  %v7818_v45 = vpop.f32.mrf.mxu1  ;;  %5280 = vmatmul.mubr.msk.bf16.gmra.mxu0 %vm811_vm1, %v7735_v49  ;;  %5285 = vmatmul.mubr.msk.bf16.vlgmr.msra.gmra.mxu1 %vm811_vm1, %v7618_v48  ;;  %v3727_v14 = vmax.f32 %v7758_v57, %v7799_v42 }
 0x2e1   :  { %4883 = vst [vmem:[%s8279_s3 + $0x13c] sm:$0xff] %v5416_v4  ;;  %3372 = vmatprep.mubr.bf16.mxu0 %v5721_v1  ;;  %3441 = vmatprep.mubr.bf16.mxu1 %v5721_v1  ;;  %v4332_v35 = vmax.f32 %v4185_v61, 0.0 }
 0x2e2   :  { %v2736_v25 = vpop.f32.mrf.mxu0  ;;  %v7829_v30 = vpop.f32.mrf.mxu1 }
 0x2e3   :  { %v5441_v44 = vpack.c.bf16 %v4332_v35, %v4331_v41 }
 0x2e4   :  { %v2738_v7 = vpop.f32.mrf.mxu0  ;;  %v7831_v39 = vpop.f32.mrf.mxu1 }
 0x2e5   :  { %4908 = vst [vmem:[%s8279_s3 + $0x200] sm:$0x33] %v5441_v44 }
 0x2e6   :  { %v2740_v6 = vpop.f32.mrf.mxu0  ;;  %v7836_v38 = vpop.f32.mrf.mxu1 }
 0x2e8   :  { %v2744_v55 = vpop.f32.mrf.mxu0  ;;  %v7838_v5 = vpop.f32.mrf.mxu1  ;;  %5281 = vmatmul.mubr.msk.bf16.gmra.mxu0 %vm811_vm1, %v7763_v34  ;;  %5286 = vmatmul.mubr.msk.bf16.gmra.mxu1 %vm811_vm1, %v7652_v62 }
 0x2e9   :  { %3380 = vmatprep.mubr.bf16.mxu0 %v5721_v1  ;;  %3449 = vmatprep.mubr.bf16.mxu1 %v5721_v1 }
 0x2ea   :  { %v2746_v52 = vpop.f32.mrf.mxu0  ;;  %v7846_v28 = vpop.f32.mrf.mxu1 }
 0x2ec   :  { %v2748_v27 = vpop.f32.mrf.mxu0  ;;  %v2817_v23 = vpop.f32.mrf.mxu1 }
 0x2ee   :  { %v2749_v53 = vpop.f32.mrf.mxu0  ;;  %v2818_v32 = vpop.f32.mrf.mxu1 }
 0x2f0   :  { %v2752_v24 = vpop.f32.mrf.mxu0  ;;  %v7848_v56 = vpop.f32.mrf.mxu1  ;;  %5282 = vmatmul.mubr.msk.bf16.gmra.mxu0 %vm811_vm1, %v7665_v37  ;;  %5287 = vmatmul.mubr.msk.bf16.gmra.mxu1 %vm811_vm1, %v7672_v63 }
 0x2f1   :  { %v3776_v31 = vmax.f32 %v2734_v54, %v2752_v24  ;;  %3390 = vmatprep.mubr.bf16.mxu0 %v5721_v1  ;;  %3459 = vmatprep.mubr.bf16.mxu1 %v5721_v1 }
 0x2f2   :  { %v2754_v36 = vpop.f32.mrf.mxu0  ;;  %v7858_v20 = vpop.f32.mrf.mxu1 }
 0x2f3   :  { %v3923_v29 = vmax.f32 %v3629_v9, %v3776_v31  ;;  %v3777_v46 = vmax.f32 %v2736_v25, %v2754_v36  ;;  %v3728_v25 = vmax.f32 %v7771_v40, %v7808_v2 }
 0x2f4   :  { %v2756_v13 = vpop.f32.mrf.mxu0  ;;  %v7862_v22 = vpop.f32.mrf.mxu1 }
 0x2f5   :  { %v4088_v26 = vadd.f32 %v6194_v10, %v3923_v29  ;;  %v3924_v11 = vmax.f32 %v3630_v33, %v3777_v46  ;;  %v3825_v58 = vmax.f32 %v2738_v7, %v2756_v13 }
 0x2f6   :  { %v2758_v19 = vpop.f32.mrf.mxu0  ;;  %v7867_v59 = vpop.f32.mrf.mxu1 }
 0x2f7   :  { %v4089_v3 = vadd.f32 %v6194_v10, %v3924_v11  ;;  %v3972_v16 = vmax.f32 %v3678_v60, %v3825_v58  ;;  %v3826_v51 = vmax.f32 %v2740_v6, %v2758_v19  ;;  %v4235_v18 = vmax.f32 %v4088_v26, 0.0 }
 0x2f8   :  { %v2762_v4 = vpop.f32.mrf.mxu0  ;;  %v7874_v47 = vpop.f32.mrf.mxu1  ;;  %5283 = vmatmul.mubr.msk.bf16.gmra.mxu0 %vm811_vm1, %v7701_v12  ;;  %5288 = vmatmul.mubr.msk.bf16.gmra.mxu1 %vm811_vm1, %v7708_v8 }
 0x2f9   :  { %v4236_v50 = vmax.f32 %v4089_v3, 0.0  ;;  %v4137_v15 = vadd.f32 %v6215_v43, %v3972_v16  ;;  %v3973_v21 = vmax.f32 %v3679_v17, %v3826_v51  ;;  %v3874_v61 = vmax.f32 %v2744_v55, %v2762_v4  ;;  %3467 = vmatprep.mubr.bf16.mxu1 %v5721_v1  ;;  %5468 = vmatprep.mubr.msk.bf16.mxu0 %vm811_vm1, %v7618_v48 }
 0x2fa   :  { %v2764_v57 = vpop.f32.mrf.mxu0  ;;  %v7884_v42 = vpop.f32.mrf.mxu1 }
 0x2fb   :  { %v5392_v54 = vpack.c.bf16 %v4236_v50, %v4235_v18  ;;  %v4138_v41 = vadd.f32 %v6215_v43, %v3973_v21  ;;  %v4021_v35 = vmax.f32 %v3727_v14, %v3874_v61  ;;  %v3875_v44 = vmax.f32 %v2746_v52, %v2764_v57 }
 0x2fc   :  { %v2766_v7 = vpop.f32.mrf.mxu0  ;;  %v2835_v6 = vpop.f32.mrf.mxu1  ;;  %v4284_v55 = vmax.f32 %v4137_v15, 0.0  ;;  %v3632_v50 = vmax.f32 %v7829_v30, %v7858_v20 }
 0x2fd   :  { %4859 = vst [vmem:[%s8279_s3 + $0x80] sm:$0xff] %v5392_v54  ;;  %v4285_v27 = vmax.f32 %v4138_v41, 0.0  ;;  %v4186_v48 = vadd.f32 %v6238_v0, %v4021_v35  ;;  %v4022_v23 = vmax.f32 %v3728_v25, %v3875_v44  ;;  %v3681_v41 = vmax.f32 %v7836_v38, %v7867_v59 }
 0x2fe   :  { %v2767_v53 = vpop.f32.mrf.mxu0  ;;  %v2836_v32 = vpop.f32.mrf.mxu1  ;;  %v3729_v25 = vmax.f32 %v7838_v5, %v7874_v47 }
 0x2ff   :  { %v5417_v24 = vpack.c.bf16 %v4285_v27, %v4284_v55  ;;  %v4187_v9 = vadd.f32 %v6238_v0, %v4022_v23  ;;  %v4333_v40 = vmax.f32 %v4186_v48, 0.0  ;;  %v3730_v23 = vmax.f32 %v7846_v28, %v7884_v42 }
 0x300   :  { %v2839_v31 = vpop.f32.mrf.mxu1  ;;  %v7894_v36 = vpop.f32.mrf.mxu0  ;;  %5289 = vmatmul.mubr.msk.bf16.gmra.mxu1 %vm811_vm1, %v7735_v49  ;;  %5469 = vmatmul.mubr.msk.bf16.vlgmr.msra.gmra.mxu0 %vm811_vm1, %v7652_v62 }
 0x301   :  { %4884 = vst [vmem:[%s8279_s3 + $0x144] sm:$0xff] %v5417_v24  ;;  %3477 = vmatprep.mubr.bf16.mxu1 %v5721_v1  ;;  %5472 = vmatprep.mubr.msk.bf16.mxu0 %vm811_vm1, %v7672_v63  ;;  %v4334_v2 = vmax.f32 %v4187_v9, 0.0 }
 0x302   :  { %v2841_v52 = vpop.f32.mrf.mxu1  ;;  %v7906_v33 = vpop.f32.mrf.mxu0 }
 0x303   :  { %v5442_v29 = vpack.c.bf16 %v4334_v2, %v4333_v40 }
 0x304   :  { %v2843_v46 = vpop.f32.mrf.mxu1  ;;  %v7908_v13 = vpop.f32.mrf.mxu0 }
 0x305   :  { %4909 = vst [vmem:[%s8279_s3 + $0x208] sm:$0x33] %v5442_v29 }
 0x306   :  { %v2845_v62 = vpop.f32.mrf.mxu1  ;;  %v7913_v60 = vpop.f32.mrf.mxu0 }
 0x308   :  { %v2849_v26 = vpop.f32.mrf.mxu1  ;;  %v7915_v11 = vpop.f32.mrf.mxu0  ;;  %5290 = vmatmul.mubr.msk.bf16.gmra.mxu1 %vm811_vm1, %v7763_v34  ;;  %5473 = vmatmul.mubr.msk.bf16.gmra.mxu0 %vm811_vm1, %v7708_v8  ;;  %v3631_v8 = vmax.f32 %v7818_v45, %v7848_v56 }
 0x309   :  { %3485 = vmatprep.mubr.bf16.mxu1 %v5721_v1  ;;  %5476 = vmatprep.mubr.msk.bf16.mxu0 %vm811_vm1, %v7735_v49 }
 0x30a   :  { %v2851_v63 = vpop.f32.mrf.mxu1  ;;  %v7924_v58 = vpop.f32.mrf.mxu0 }
 0x30c   :  { %v2853_v19 = vpop.f32.mrf.mxu1  ;;  %v2922_v17 = vpop.f32.mrf.mxu0 }
 0x30e   :  { %v2854_v3 = vpop.f32.mrf.mxu1  ;;  %v2923_v16 = vpop.f32.mrf.mxu0 }
 0x310   :  { %v2857_v51 = vpop.f32.mrf.mxu1  ;;  %v7926_v14 = vpop.f32.mrf.mxu0  ;;  %5291 = vmatmul.mubr.msk.bf16.gmra.mxu1 %vm811_vm1, %v7665_v37  ;;  %5477 = vmatmul.mubr.msk.bf16.gmra.mxu0 %vm811_vm1, %v7763_v34  ;;  %v3680_v34 = vmax.f32 %v7831_v39, %v7862_v22 }
 0x311   :  { %v3778_v49 = vmax.f32 %v2839_v31, %v2857_v51  ;;  %3495 = vmatprep.mubr.bf16.mxu1 %v5721_v1  ;;  %5480 = vmatprep.mubr.msk.bf16.mxu0 %vm811_vm1, %v7665_v37 }
 0x312   :  { %v2859_v18 = vpop.f32.mrf.mxu1  ;;  %v7937_v4 = vpop.f32.mrf.mxu0 }
 0x313   :  { %v3925_v15 = vmax.f32 %v3631_v8, %v3778_v49  ;;  %v3779_v21 = vmax.f32 %v2841_v52, %v2859_v18 }
 0x314   :  { %v2861_v61 = vpop.f32.mrf.mxu1  ;;  %v7941_v57 = vpop.f32.mrf.mxu0 }
 0x315   :  { %v4090_v45 = vadd.f32 %v6194_v10, %v3925_v15  ;;  %v3926_v1 = vmax.f32 %v3632_v50, %v3779_v21  ;;  %v3827_v56 = vmax.f32 %v2843_v46, %v2861_v61 }
 0x316   :  { %v2863_v54 = vpop.f32.mrf.mxu1  ;;  %v7946_v37 = vpop.f32.mrf.mxu0 }
 0x317   :  { %v4091_v30 = vadd.f32 %v6194_v10, %v3926_v1  ;;  %v3974_v20 = vmax.f32 %v3680_v34, %v3827_v56  ;;  %v3828_v35 = vmax.f32 %v2845_v62, %v2863_v54  ;;  %v4237_v44 = vmax.f32 %v4090_v45, 0.0 }
 0x318   :  { %v2867_v7 = vpop.f32.mrf.mxu1  ;;  %v7953_v39 = vpop.f32.mrf.mxu0  ;;  %5292 = vmatmul.mubr.msk.bf16.gmra.mxu1 %vm811_vm1, %v7701_v12  ;;  %5481 = vmatmul.mubr.msk.bf16.gmra.mxu0 %vm811_vm1, %v7701_v12  ;;  %v3633_v54 = vmax.f32 %v7894_v36, %v7926_v14 }
 0x319   :  { %v4238_v22 = vmax.f32 %v4091_v30, 0.0  ;;  %v4139_v38 = vadd.f32 %v6215_v43, %v3974_v20  ;;  %v3975_v59 = vmax.f32 %v3681_v41, %v3828_v35  ;;  %v3876_v6 = vmax.f32 %v2849_v26, %v2867_v7 }
 0x31a   :  { %v2869_v55 = vpop.f32.mrf.mxu1  ;;  %v7960_v27 = vpop.f32.mrf.mxu0  ;;  %v3634_v35 = vmax.f32 %v7906_v33, %v7937_v4 }
 0x31b   :  { %v5393_v48 = vpack.c.bf16 %v4238_v22, %v4237_v44  ;;  %v4140_v5 = vadd.f32 %v6215_v43, %v3975_v59  ;;  %v4023_v47 = vmax.f32 %v3729_v25, %v3876_v6  ;;  %v3877_v53 = vmax.f32 %v2851_v63, %v2869_v55 }
 0x31c   :  { %v2871_v32 = vpop.f32.mrf.mxu1  ;;  %v2940_v24 = vpop.f32.mrf.mxu0  ;;  %v4286_v12 = vmax.f32 %v4139_v38, 0.0  ;;  %v3682_v38 = vmax.f32 %v7908_v13, %v7941_v57 }
 0x31d   :  { %4860 = vst [vmem:[%s8279_s3 + $0x88] sm:$0xff] %v5393_v48  ;;  %v4287_v9 = vmax.f32 %v4140_v5, 0.0  ;;  %v4188_v31 = vadd.f32 %v6238_v0, %v4023_v47  ;;  %v4024_v40 = vmax.f32 %v3730_v23, %v3877_v53  ;;  %v3683_v48 = vmax.f32 %v7913_v60, %v7946_v37 }
 0x31e   :  { %v2872_v2 = vpop.f32.mrf.mxu1  ;;  %v2941_v52 = vpop.f32.mrf.mxu0  ;;  %v3731_v47 = vmax.f32 %v7915_v11, %v7953_v39 }
 0x31f   :  { %v5418_v29 = vpack.c.bf16 %v4287_v9, %v4286_v12  ;;  %v4189_v46 = vadd.f32 %v6238_v0, %v4024_v40  ;;  %v4335_v28 = vmax.f32 %v4188_v31, 0.0  ;;  %v3732_v2 = vmax.f32 %v7924_v58, %v7960_v27 }
 0x320   :  { %v2944_v62 = vpop.f32.mrf.mxu0  ;;  %v7970_v26 = vpop.f32.mrf.mxu1 }
 0x321   :  { %4885 = vst [vmem:[%s8279_s3 + $0x14c] sm:$0xff] %v5418_v29  ;;  %v4336_v42 = vmax.f32 %v4189_v46, 0.0 }
 0x322   :  { %v2946_v63 = vpop.f32.mrf.mxu0  ;;  %v7975_v19 = vpop.f32.mrf.mxu1 }
 0x323   :  { %v5443_v17 = vpack.c.bf16 %v4336_v42, %v4335_v28 }
 0x324   :  { %v2948_v3 = vpop.f32.mrf.mxu0  ;;  %v7977_v16 = vpop.f32.mrf.mxu1 }
 0x325   :  { %4910 = vst [vmem:[%s8279_s3 + $0x210] sm:$0x33] %v5443_v17 }
 0x326   :  { %v2950_v51 = vpop.f32.mrf.mxu0  ;;  %v7982_v8 = vpop.f32.mrf.mxu1 }
 0x328   :  { %v2954_v49 = vpop.f32.mrf.mxu0  ;;  %v7984_v18 = vpop.f32.mrf.mxu1 }
 0x32a   :  { %v2956_v50 = vpop.f32.mrf.mxu0  ;;  %v7986_v15 = vpop.f32.mrf.mxu1 }
 0x32c   :  { %v2958_v21 = vpop.f32.mrf.mxu0  ;;  %v3027_v61 = vpop.f32.mrf.mxu1 }
 0x32e   :  { %v2959_v34 = vpop.f32.mrf.mxu0  ;;  %v3028_v45 = vpop.f32.mrf.mxu1 }
 0x330   :  { %v2962_v1 = vpop.f32.mrf.mxu0  ;;  %v7988_v56 = vpop.f32.mrf.mxu1 }
 0x331   :  { %v3780_v41 = vmax.f32 %v2944_v62, %v2962_v1 }
 0x332   :  { %v2964_v30 = vpop.f32.mrf.mxu0  ;;  %v7992_v20 = vpop.f32.mrf.mxu1 }
 0x333   :  { %v3927_v25 = vmax.f32 %v3633_v54, %v3780_v41  ;;  %v3781_v44 = vmax.f32 %v2946_v63, %v2964_v30 }
 0x334   :  { %v2966_v7 = vpop.f32.mrf.mxu0  ;;  %v7996_v22 = vpop.f32.mrf.mxu1 }
 0x335   :  { %v4092_v59 = vadd.f32 %v6194_v10, %v3927_v25  ;;  %v3928_v6 = vmax.f32 %v3634_v35, %v3781_v44  ;;  %v3829_v55 = vmax.f32 %v2948_v3, %v2966_v7 }
 0x336   :  { %v2968_v36 = vpop.f32.mrf.mxu0  ;;  %v8001_v14 = vpop.f32.mrf.mxu1 }
 0x337   :  { %v4093_v33 = vadd.f32 %v6194_v10, %v3928_v6  ;;  %v3976_v4 = vmax.f32 %v3682_v38, %v3829_v55  ;;  %v3830_v5 = vmax.f32 %v2950_v51, %v2968_v36  ;;  %v4239_v23 = vmax.f32 %v4092_v59, 0.0 }
 0x338   :  { %v2972_v53 = vpop.f32.mrf.mxu0  ;;  %v8008_v13 = vpop.f32.mrf.mxu1  ;;  %v3635_v36 = vmax.f32 %v7970_v26, %v7988_v56 }
 0x339   :  { %v4240_v57 = vmax.f32 %v4093_v33, 0.0  ;;  %v4141_v32 = vadd.f32 %v6215_v43, %v3976_v4  ;;  %v3977_v24 = vmax.f32 %v3683_v48, %v3830_v5  ;;  %v3878_v12 = vmax.f32 %v2954_v49, %v2972_v53 }
 0x33a   :  { %v2974_v9 = vpop.f32.mrf.mxu0  ;;  %v8011_v31 = vpop.f32.mrf.mxu1  ;;  %v3636_v5 = vmax.f32 %v7975_v19, %v7992_v20 }
 0x33b   :  { %v5394_v60 = vpack.c.bf16 %v4240_v57, %v4239_v23  ;;  %v4142_v37 = vadd.f32 %v6215_v43, %v3977_v24  ;;  %v4025_v40 = vmax.f32 %v3731_v47, %v3878_v12  ;;  %v3879_v11 = vmax.f32 %v2956_v50, %v2974_v9 }
 0x33c   :  { %v2976_v39 = vpop.f32.mrf.mxu0  ;;  %v3045_v52 = vpop.f32.mrf.mxu1  ;;  %v4288_v29 = vmax.f32 %v4141_v32, 0.0  ;;  %v3684_v32 = vmax.f32 %v7977_v16, %v7996_v22 }
 0x33d   :  { %4861 = vst [vmem:[%s8279_s3 + $0x90] sm:$0xff] %v5394_v60  ;;  %v4289_v46 = vmax.f32 %v4142_v37, 0.0  ;;  %v4190_v62 = vadd.f32 %v6238_v0, %v4025_v40  ;;  %v4026_v28 = vmax.f32 %v3732_v2, %v3879_v11  ;;  %v3685_v60 = vmax.f32 %v7982_v8, %v8001_v14 }
 0x33e   :  { %v2977_v42 = vpop.f32.mrf.mxu0  ;;  %v3046_v63 = vpop.f32.mrf.mxu1  ;;  %v3733_v40 = vmax.f32 %v7984_v18, %v8008_v13 }
 0x33f   :  { %v5419_v17 = vpack.c.bf16 %v4289_v46, %v4288_v29  ;;  %v4191_v3 = vadd.f32 %v6238_v0, %v4026_v28  ;;  %v4337_v58 = vmax.f32 %v4190_v62, 0.0  ;;  %v3734_v42 = vmax.f32 %v7986_v15, %v8011_v31 }
 0x340   :  { %v3049_v51 = vpop.f32.mrf.mxu1  ;;  %v8021_v49 = vpop.f32.mrf.mxu0 }
 0x341   :  { %4886 = vst [vmem:[%s8279_s3 + $0x154] sm:$0xff] %v5419_v17  ;;  %v4338_v27 = vmax.f32 %v4191_v3, 0.0 }
 0x342   :  { %v3051_v50 = vpop.f32.mrf.mxu1  ;;  %v8026_v21 = vpop.f32.mrf.mxu0 }
 0x343   :  { %v5444_v61 = vpack.c.bf16 %v4338_v27, %v4337_v58 }
 0x344   :  { %v3053_v34 = vpop.f32.mrf.mxu1  ;;  %v8028_v45 = vpop.f32.mrf.mxu0 }
 0x345   :  { %4911 = vst [vmem:[%s8279_s3 + $0x218] sm:$0x33] %v5444_v61 }
 0x346   :  { %v3055_v1 = vpop.f32.mrf.mxu1  ;;  %v8033_v54 = vpop.f32.mrf.mxu0 }
 0x348   :  { %v3059_v41 = vpop.f32.mrf.mxu1  ;;  %v8035_v30 = vpop.f32.mrf.mxu0 }
 0x34a   :  { %v3061_v35 = vpop.f32.mrf.mxu1  ;;  %v8037_v25 = vpop.f32.mrf.mxu0 }
 0x34c   :  { %v3063_v44 = vpop.f32.mrf.mxu1  ;;  %v3132_v7 = vpop.f32.mrf.mxu0 }
 0x34e   :  { %v3064_v38 = vpop.f32.mrf.mxu1  ;;  %v3133_v59 = vpop.f32.mrf.mxu0 }
 0x350   :  { %v3067_v6 = vpop.f32.mrf.mxu1  ;;  %v8039_v55 = vpop.f32.mrf.mxu0 }
 0x351   :  { %v3782_v48 = vmax.f32 %v3049_v51, %v3067_v6 }
 0x352   :  { %v3069_v33 = vpop.f32.mrf.mxu1  ;;  %v8043_v4 = vpop.f32.mrf.mxu0 }
 0x353   :  { %v3929_v47 = vmax.f32 %v3635_v36, %v3782_v48  ;;  %v3783_v23 = vmax.f32 %v3051_v50, %v3069_v33 }
 0x354   :  { %v3071_v53 = vpop.f32.mrf.mxu1  ;;  %v8047_v57 = vpop.f32.mrf.mxu0 }
 0x355   :  { %v4094_v24 = vadd.f32 %v6194_v10, %v3929_v47  ;;  %v3930_v12 = vmax.f32 %v3636_v5, %v3783_v23  ;;  %v3831_v9 = vmax.f32 %v3053_v34, %v3071_v53 }
 0x356   :  { %v3073_v26 = vpop.f32.mrf.mxu1  ;;  %v8052_v56 = vpop.f32.mrf.mxu0 }
 0x357   :  { %v4095_v19 = vadd.f32 %v6194_v10, %v3930_v12  ;;  %v3978_v20 = vmax.f32 %v3684_v32, %v3831_v9  ;;  %v3832_v37 = vmax.f32 %v3055_v1, %v3073_v26  ;;  %v4241_v2 = vmax.f32 %v4094_v24, 0.0 }
 0x358   :  { %v3077_v11 = vpop.f32.mrf.mxu1  ;;  %v8059_v16 = vpop.f32.mrf.mxu0  ;;  %v3637_v26 = vmax.f32 %v8021_v49, %v8039_v55 }
 0x359   :  { %v4242_v22 = vmax.f32 %v4095_v19, 0.0  ;;  %v4143_v39 = vadd.f32 %v6215_v43, %v3978_v20  ;;  %v3979_v52 = vmax.f32 %v3685_v60, %v3832_v37  ;;  %v3880_v29 = vmax.f32 %v3059_v41, %v3077_v11 }
 0x35a   :  { %v3079_v46 = vpop.f32.mrf.mxu1  ;;  %v8062_v62 = vpop.f32.mrf.mxu0  ;;  %v3638_v37 = vmax.f32 %v8026_v21, %v8043_v4 }
 0x35b   :  { %v5395_v8 = vpack.c.bf16 %v4242_v22, %v4241_v2  ;;  %v4144_v14 = vadd.f32 %v6215_v43, %v3979_v52  ;;  %v4027_v28 = vmax.f32 %v3733_v40, %v3880_v29  ;;  %v3881_v18 = vmax.f32 %v3061_v35, %v3079_v46 }
 0x35c   :  { %v3081_v13 = vpop.f32.mrf.mxu1  ;;  %v3150_v63 = vpop.f32.mrf.mxu0  ;;  %v4290_v17 = vmax.f32 %v4143_v39, 0.0  ;;  %v3686_v39 = vmax.f32 %v8028_v45, %v8047_v57 }
 0x35d   :  { %4862 = vst [vmem:[%s8279_s3 + $0x98] sm:$0xff] %v5395_v8  ;;  %v4291_v3 = vmax.f32 %v4144_v14, 0.0  ;;  %v4192_v51 = vadd.f32 %v6238_v0, %v4027_v28  ;;  %v4028_v58 = vmax.f32 %v3734_v42, %v3881_v18  ;;  %v3687_v8 = vmax.f32 %v8033_v54, %v8052_v56 }
 0x35e   :  { %v3082_v27 = vpop.f32.mrf.mxu1  ;;  %v3151_v50 = vpop.f32.mrf.mxu0  ;;  %v3735_v28 = vmax.f32 %v8035_v30, %v8059_v16 }
 0x35f   :  { %v5420_v61 = vpack.c.bf16 %v4291_v3, %v4290_v17  ;;  %v4193_v34 = vadd.f32 %v6238_v0, %v4028_v58  ;;  %v4339_v15 = vmax.f32 %v4192_v51, 0.0  ;;  %v3736_v27 = vmax.f32 %v8037_v25, %v8062_v62 }
 0x360   :  { %v3154_v1 = vpop.f32.mrf.mxu0  ;;  %v8072_v41 = vpop.f32.mrf.mxu1 }
 0x361   :  { %4887 = vst [vmem:[%s8279_s3 + $0x15c] sm:$0xff] %v5420_v61  ;;  %v4340_v31 = vmax.f32 %v4193_v34, 0.0 }
 0x362   :  { %v3156_v35 = vpop.f32.mrf.mxu0  ;;  %v8077_v44 = vpop.f32.mrf.mxu1 }
 0x363   :  { %v5445_v7 = vpack.c.bf16 %v4340_v31, %v4339_v15 }
 0x364   :  { %v3158_v38 = vpop.f32.mrf.mxu0  ;;  %v8079_v59 = vpop.f32.mrf.mxu1 }
 0x365   :  { %4912 = vst [vmem:[%s8279_s3 + $0x220] sm:$0x33] %v5445_v7 }
 0x366   :  { %v3160_v6 = vpop.f32.mrf.mxu0  ;;  %v8084_v36 = vpop.f32.mrf.mxu1 }
 0x368   :  { %v3164_v48 = vpop.f32.mrf.mxu0  ;;  %v8086_v33 = vpop.f32.mrf.mxu1 }
 0x36a   :  { %v3166_v5 = vpop.f32.mrf.mxu0  ;;  %v8088_v47 = vpop.f32.mrf.mxu1 }
 0x36c   :  { %v3168_v23 = vpop.f32.mrf.mxu0  ;;  %v3237_v53 = vpop.f32.mrf.mxu1 }
 0x36e   :  { %v3169_v32 = vpop.f32.mrf.mxu0  ;;  %v3238_v24 = vpop.f32.mrf.mxu1 }
 0x370   :  { %v3172_v12 = vpop.f32.mrf.mxu0  ;;  %v8090_v9 = vpop.f32.mrf.mxu1 }
 0x371   :  { %v3784_v60 = vmax.f32 %v3154_v1, %v3172_v12 }
 0x372   :  { %v3174_v19 = vpop.f32.mrf.mxu0  ;;  %v8094_v20 = vpop.f32.mrf.mxu1 }
 0x373   :  { %v3931_v40 = vmax.f32 %v3637_v26, %v3784_v60  ;;  %v3785_v2 = vmax.f32 %v3156_v35, %v3174_v19 }
 0x374   :  { %v3176_v11 = vpop.f32.mrf.mxu0  ;;  %v8098_v22 = vpop.f32.mrf.mxu1 }
 0x375   :  { %v4096_v52 = vadd.f32 %v6194_v10, %v3931_v40  ;;  %v3932_v29 = vmax.f32 %v3638_v37, %v3785_v2  ;;  %v3833_v46 = vmax.f32 %v3158_v38, %v3176_v11 }
 0x376   :  { %v3178_v49 = vpop.f32.mrf.mxu0  ;;  %v8103_v55 = vpop.f32.mrf.mxu1 }
 0x377   :  { %v4097_v21 = vadd.f32 %v6194_v10, %v3932_v29  ;;  %v3980_v4 = vmax.f32 %v3686_v39, %v3833_v46  ;;  %v3834_v14 = vmax.f32 %v3160_v6, %v3178_v49  ;;  %v4243_v42 = vmax.f32 %v4096_v52, 0.0 }
 0x378   :  { %v3182_v18 = vpop.f32.mrf.mxu0  ;;  %v8110_v45 = vpop.f32.mrf.mxu1  ;;  %v3639_v49 = vmax.f32 %v8072_v41, %v8090_v9 }
 0x379   :  { %v4244_v57 = vmax.f32 %v4097_v21, 0.0  ;;  %v4145_v13 = vadd.f32 %v6215_v43, %v3980_v4  ;;  %v3981_v63 = vmax.f32 %v3687_v8, %v3834_v14  ;;  %v3882_v17 = vmax.f32 %v3164_v48, %v3182_v18 }
 0x37a   :  { %v3184_v3 = vpop.f32.mrf.mxu0  ;;  %v8113_v51 = vpop.f32.mrf.mxu1  ;;  %v3640_v14 = vmax.f32 %v8077_v44, %v8094_v20 }
 0x37b   :  { %v5396_v54 = vpack.c.bf16 %v4244_v57, %v4243_v42  ;;  %v4146_v56 = vadd.f32 %v6215_v43, %v3981_v63  ;;  %v4029_v58 = vmax.f32 %v3735_v28, %v3882_v17  ;;  %v3883_v30 = vmax.f32 %v3166_v5, %v3184_v3 }
 0x37c   :  { %v3186_v16 = vpop.f32.mrf.mxu0  ;;  %v3255_v50 = vpop.f32.mrf.mxu1  ;;  %v4292_v61 = vmax.f32 %v4145_v13, 0.0  ;;  %v3688_v13 = vmax.f32 %v8079_v59, %v8098_v22 }
 0x37d   :  { %4863 = vst [vmem:[%s8279_s3 + $0xa0] sm:$0xff] %v5396_v54  ;;  %v4293_v34 = vmax.f32 %v4146_v56, 0.0  ;;  %v4194_v1 = vadd.f32 %v6238_v0, %v4029_v58  ;;  %v4030_v15 = vmax.f32 %v3736_v27, %v3883_v30  ;;  %v3689_v54 = vmax.f32 %v8084_v36, %v8103_v55 }
 0x37e   :  { %v3187_v31 = vpop.f32.mrf.mxu0  ;;  %v3256_v35 = vpop.f32.mrf.mxu1  ;;  %v3737_v58 = vmax.f32 %v8086_v33, %v8110_v45 }
 0x37f   :  { %v5421_v7 = vpack.c.bf16 %v4293_v34, %v4292_v61  ;;  %v4195_v38 = vadd.f32 %v6238_v0, %v4030_v15  ;;  %v4341_v25 = vmax.f32 %v4194_v1, 0.0  ;;  %v3738_v31 = vmax.f32 %v8088_v47, %v8113_v51 }
 0x380   :  { %v3259_v6 = vpop.f32.mrf.mxu1  ;;  %v8123_v48 = vpop.f32.mrf.mxu0 }
 0x381   :  { %4888 = vst [vmem:[%s8279_s3 + $0x164] sm:$0xff] %v5421_v7  ;;  %v4342_v62 = vmax.f32 %v4195_v38, 0.0 }
 0x382   :  { %v3261_v5 = vpop.f32.mrf.mxu1  ;;  %v8128_v23 = vpop.f32.mrf.mxu0 }
 0x383   :  { %v5446_v53 = vpack.c.bf16 %v4342_v62, %v4341_v25 }
 0x384   :  { %v3263_v32 = vpop.f32.mrf.mxu1  ;;  %v8130_v24 = vpop.f32.mrf.mxu0 }
 0x385   :  { %4913 = vst [vmem:[%s8279_s3 + $0x228] sm:$0x33] %v5446_v53 }
 0x386   :  { %v3265_v12 = vpop.f32.mrf.mxu1  ;;  %v8135_v26 = vpop.f32.mrf.mxu0 }
 0x388   :  { %v3269_v60 = vpop.f32.mrf.mxu1  ;;  %v8137_v19 = vpop.f32.mrf.mxu0 }
 0x38a   :  { %v3271_v37 = vpop.f32.mrf.mxu1  ;;  %v8139_v40 = vpop.f32.mrf.mxu0 }
 0x38c   :  { %v3273_v2 = vpop.f32.mrf.mxu1  ;;  %v3342_v11 = vpop.f32.mrf.mxu0 }
 0x38e   :  { %v3274_v39 = vpop.f32.mrf.mxu1  ;;  %v3343_v52 = vpop.f32.mrf.mxu0 }
 0x390   :  { %v3277_v29 = vpop.f32.mrf.mxu1  ;;  %v8141_v46 = vpop.f32.mrf.mxu0 }
 0x391   :  { %v3786_v8 = vmax.f32 %v3259_v6, %v3277_v29 }
 0x392   :  { %v3279_v21 = vpop.f32.mrf.mxu1  ;;  %v8145_v4 = vpop.f32.mrf.mxu0 }
 0x393   :  { %v3933_v28 = vmax.f32 %v3639_v49, %v3786_v8  ;;  %v3787_v42 = vmax.f32 %v3261_v5, %v3279_v21 }
 0x394   :  { %v3281_v18 = vpop.f32.mrf.mxu1  ;;  %v8149_v57 = vpop.f32.mrf.mxu0 }
 0x395   :  { %v4098_v63 = vadd.f32 %v6194_v10, %v3933_v28  ;;  %v3934_v17 = vmax.f32 %v3640_v14, %v3787_v42  ;;  %v3835_v3 = vmax.f32 %v3263_v32, %v3281_v18 }
 0x396   :  { %v3283_v41 = vpop.f32.mrf.mxu1  ;;  %v8154_v9 = vpop.f32.mrf.mxu0 }
 0x397   :  { %v4099_v44 = vadd.f32 %v6194_v10, %v3934_v17  ;;  %v3982_v20 = vmax.f32 %v3688_v13, %v3835_v3  ;;  %v3836_v56 = vmax.f32 %v3265_v12, %v3283_v41  ;;  %v4245_v27 = vmax.f32 %v4098_v63, 0.0 }
 0x398   :  { %v3287_v30 = vpop.f32.mrf.mxu1  ;;  %v8161_v59 = vpop.f32.mrf.mxu0  ;;  %v3641_v41 = vmax.f32 %v8123_v48, %v8141_v46 }
 0x399   :  { %v4246_v22 = vmax.f32 %v4099_v44, 0.0  ;;  %v4147_v16 = vadd.f32 %v6215_v43, %v3982_v20  ;;  %v3983_v50 = vmax.f32 %v3689_v54, %v3836_v56  ;;  %v3884_v61 = vmax.f32 %v3269_v60, %v3287_v30 }
 0x39a   :  { %v3289_v34 = vpop.f32.mrf.mxu1  ;;  %v8164_v1 = vpop.f32.mrf.mxu0  ;;  %v3642_v56 = vmax.f32 %v8128_v23, %v8145_v4 }
 0x39b   :  { %v5397_v36 = vpack.c.bf16 %v4246_v22, %v4245_v27  ;;  %v4148_v55 = vadd.f32 %v6215_v43, %v3983_v50  ;;  %v4031_v15 = vmax.f32 %v3737_v58, %v3884_v61  ;;  %v3885_v33 = vmax.f32 %v3271_v37, %v3289_v34 }
 0x39c   :  { %v3291_v45 = vpop.f32.mrf.mxu1  ;;  %v3360_v35 = vpop.f32.mrf.mxu0  ;;  %v4294_v7 = vmax.f32 %v4147_v16, 0.0  ;;  %v3690_v16 = vmax.f32 %v8130_v24, %v8149_v57 }
 0x39d   :  { %4864 = vst [vmem:[%s8279_s3 + $0xa8] sm:$0xff] %v5397_v36  ;;  %v4295_v38 = vmax.f32 %v4148_v55, 0.0  ;;  %v4196_v6 = vadd.f32 %v6238_v0, %v4031_v15  ;;  %v4032_v25 = vmax.f32 %v3738_v31, %v3885_v33  ;;  %v3691_v36 = vmax.f32 %v8135_v26, %v8154_v9 }
 0x39e   :  { %v3292_v62 = vpop.f32.mrf.mxu1  ;;  %v3361_v5 = vpop.f32.mrf.mxu0  ;;  %v3739_v15 = vmax.f32 %v8137_v19, %v8161_v59 }
 0x39f   :  { %v5422_v53 = vpack.c.bf16 %v4295_v38, %v4294_v7  ;;  %v4197_v32 = vadd.f32 %v6238_v0, %v4032_v25  ;;  %v4343_v47 = vmax.f32 %v4196_v6, 0.0  ;;  %v3740_v62 = vmax.f32 %v8139_v40, %v8164_v1 }
 0x3a0   :  { %v3364_v12 = vpop.f32.mrf.mxu0  ;;  %v8174_v60 = vpop.f32.mrf.mxu1 }
 0x3a1   :  { %4889 = vst [vmem:[%s8279_s3 + $0x16c] sm:$0xff] %v5422_v53  ;;  %v4344_v51 = vmax.f32 %v4197_v32, 0.0 }
 0x3a2   :  { %v3366_v37 = vpop.f32.mrf.mxu0  ;;  %v8179_v2 = vpop.f32.mrf.mxu1 }
 0x3a3   :  { %v5447_v11 = vpack.c.bf16 %v4344_v51, %v4343_v47 }
 0x3a4   :  { %v3368_v39 = vpop.f32.mrf.mxu0  ;;  %v8181_v52 = vpop.f32.mrf.mxu1 }
 0x3a5   :  { %4914 = vst [vmem:[%s8279_s3 + $0x230] sm:$0x33] %v5447_v11 }
 0x3a6   :  { %v3370_v29 = vpop.f32.mrf.mxu0  ;;  %v8186_v49 = vpop.f32.mrf.mxu1 }
 0x3a8   :  { %v3374_v8 = vpop.f32.mrf.mxu0  ;;  %v8188_v21 = vpop.f32.mrf.mxu1 }
 0x3aa   :  { %v3376_v14 = vpop.f32.mrf.mxu0  ;;  %v8190_v28 = vpop.f32.mrf.mxu1 }
 0x3ac   :  { %v3378_v42 = vpop.f32.mrf.mxu0  ;;  %v3447_v18 = vpop.f32.mrf.mxu1 }
 0x3ae   :  { %v3379_v13 = vpop.f32.mrf.mxu0  ;;  %v3448_v63 = vpop.f32.mrf.mxu1 }
 0x3b0   :  { %v3382_v17 = vpop.f32.mrf.mxu0  ;;  %v8192_v3 = vpop.f32.mrf.mxu1 }
 0x3b1   :  { %v3788_v54 = vmax.f32 %v3364_v12, %v3382_v17 }
 0x3b2   :  { %v3384_v44 = vpop.f32.mrf.mxu0  ;;  %v8196_v20 = vpop.f32.mrf.mxu1 }
 0x3b3   :  { %v3935_v58 = vmax.f32 %v3641_v41, %v3788_v54  ;;  %v3789_v27 = vmax.f32 %v3366_v37, %v3384_v44 }
 0x3b4   :  { %v3386_v30 = vpop.f32.mrf.mxu0  ;;  %v8200_v22 = vpop.f32.mrf.mxu1 }
 0x3b5   :  { %v4100_v50 = vadd.f32 %v6194_v10, %v3935_v58  ;;  %v3936_v61 = vmax.f32 %v3642_v56, %v3789_v27  ;;  %v3837_v34 = vmax.f32 %v3368_v39, %v3386_v30 }
 0x3b6   :  { %v3388_v48 = vpop.f32.mrf.mxu0  ;;  %v8205_v46 = vpop.f32.mrf.mxu1 }
 0x3b7   :  { %v4101_v23 = vadd.f32 %v6194_v10, %v3936_v61  ;;  %v3984_v4 = vmax.f32 %v3690_v16, %v3837_v34  ;;  %v3838_v55 = vmax.f32 %v3370_v29, %v3388_v48  ;;  %v4247_v31 = vmax.f32 %v4100_v50, 0.0 }
 0x3b8   :  { %v3392_v33 = vpop.f32.mrf.mxu0  ;;  %v8212_v24 = vpop.f32.mrf.mxu1  ;;  %v3643_v48 = vmax.f32 %v8174_v60, %v8192_v3  ;;  %v3693_v60 = vmax.f32 %v8186_v49, %v8205_v46 }
 0x3b9   :  { %v4248_v57 = vmax.f32 %v4101_v23, 0.0  ;;  %v4149_v45 = vadd.f32 %v6215_v43, %v3984_v4  ;;  %v3985_v35 = vmax.f32 %v3691_v36, %v3838_v55  ;;  %v3886_v7 = vmax.f32 %v3374_v8, %v3392_v33 }
 0x3ba   :  { %v3394_v38 = vpop.f32.mrf.mxu0  ;;  %v8215_v6 = vpop.f32.mrf.mxu1  ;;  %v3644_v55 = vmax.f32 %v8179_v2, %v8196_v20  ;;  %v3741_v20 = vmax.f32 %v8188_v21, %v8212_v24 }
 0x3bb   :  { %v5398_v26 = vpack.c.bf16 %v4248_v57, %v4247_v31  ;;  %v4150_v9 = vadd.f32 %v6215_v43, %v3985_v35  ;;  %v4033_v25 = vmax.f32 %v3739_v15, %v3886_v7  ;;  %v3887_v19 = vmax.f32 %v3376_v14, %v3394_v38 }
 0x3bc   :  { %v3396_v59 = vpop.f32.mrf.mxu0  ;;  %v3465_v5 = vpop.f32.mrf.mxu1  ;;  %v4296_v53 = vmax.f32 %v4149_v45, 0.0  ;;  %v3692_v45 = vmax.f32 %v8181_v52, %v8200_v22  ;;  %v3742_v49 = vmax.f32 %v8190_v28, %v8215_v6 }
 0x3bd   :  { %4865 = vst [vmem:[%s8279_s3 + $0xb0] sm:$0xff] %v5398_v26  ;;  %v4297_v32 = vmax.f32 %v4150_v9, 0.0  ;;  %v4198_v12 = vadd.f32 %v6238_v0, %v4033_v25  ;;  %v4034_v47 = vmax.f32 %v3740_v62, %v3887_v19 }
 0x3be   :  { %v3397_v51 = vpop.f32.mrf.mxu0  ;;  %v3466_v37 = vpop.f32.mrf.mxu1 }
 0x3bf   :  { %v5423_v11 = vpack.c.bf16 %v4297_v32, %v4296_v53  ;;  %v4199_v39 = vadd.f32 %v6238_v0, %v4034_v47  ;;  %v4345_v40 = vmax.f32 %v4198_v12, 0.0 }
 0x3c0   :  { %v3469_v29 = vpop.f32.mrf.mxu1  ;;  %v5470_v8 = vpop.f32.mrf.mxu0 }
 0x3c1   :  { %4890 = vst [vmem:[%s8279_s3 + $0x174] sm:$0xff] %v5423_v11  ;;  %v4346_v1 = vmax.f32 %v4199_v39, 0.0 }
 0x3c2   :  { %v3471_v14 = vpop.f32.mrf.mxu1  ;;  %v8228_v42 = vpop.f32.mrf.mxu0 }
 0x3c3   :  { %v5448_v18 = vpack.c.bf16 %v4346_v1, %v4345_v40 }
 0x3c4   :  { %v3473_v13 = vpop.f32.mrf.mxu1  ;;  %v5471_v63 = vpop.f32.mrf.mxu0 }
 0x3c5   :  { %4915 = vst [vmem:[%s8279_s3 + $0x238] sm:$0x33] %v5448_v18 }
 0x3c6   :  { %v3475_v17 = vpop.f32.mrf.mxu1  ;;  %v8233_v41 = vpop.f32.mrf.mxu0 }
 0x3c8   :  { %v3479_v54 = vpop.f32.mrf.mxu1  ;;  %v5474_v44 = vpop.f32.mrf.mxu0 }
 0x3c9   :  { %v3743_v32 = vmax.f32 %v5470_v8, %v5474_v44 }
 0x3ca   :  { %v3481_v56 = vpop.f32.mrf.mxu1  ;;  %v3553_v58 = vpop.f32.mrf.mxu0 }
 0x3cb   :  { %v3645_v21 = vmax.f32 %v8228_v42, %v3553_v58 }
 0x3cc   :  { %v3483_v27 = vpop.f32.mrf.mxu1  ;;  %v5475_v30 = vpop.f32.mrf.mxu0 }
 0x3ce   :  { %v3484_v16 = vpop.f32.mrf.mxu1  ;;  %v3556_v50 = vpop.f32.mrf.mxu0 }
 0x3cf   :  { %v3694_v42 = vmax.f32 %v8233_v41, %v3556_v50 }
 0x3d0   :  { %v3487_v61 = vpop.f32.mrf.mxu1  ;;  %v5478_v34 = vpop.f32.mrf.mxu0 }
 0x3d1   :  { %v3790_v36 = vmax.f32 %v3469_v29, %v3487_v61 }
 0x3d2   :  { %v3489_v23 = vpop.f32.mrf.mxu1  ;;  %v3568_v4 = vpop.f32.mrf.mxu0 }
 0x3d3   :  { %v3937_v15 = vmax.f32 %v3643_v48, %v3790_v36  ;;  %v3791_v31 = vmax.f32 %v3471_v14, %v3489_v23 }
 0x3d4   :  { %v3491_v33 = vpop.f32.mrf.mxu1  ;;  %v5479_v57 = vpop.f32.mrf.mxu0 }
 0x3d5   :  { %v4102_v35 = vadd.f32 %v6194_v10, %v3937_v15  ;;  %v3938_v7 = vmax.f32 %v3644_v55, %v3791_v31  ;;  %v3839_v38 = vmax.f32 %v3473_v13, %v3491_v33 }
 0x3d6   :  { %v3493_v26 = vpop.f32.mrf.mxu1  ;;  %v3571_v9 = vpop.f32.mrf.mxu0 }
 0x3d7   :  { %v4103_v3 = vadd.f32 %v6194_v10, %v3938_v7  ;;  %v3986_v25 = vmax.f32 %v3692_v45, %v3839_v38  ;;  %v3840_v2 = vmax.f32 %v3475_v17, %v3493_v26  ;;  %v4249_v62 = vmax.f32 %v4102_v35, 0.0 }
 0x3d8   :  { %v3497_v19 = vpop.f32.mrf.mxu1  ;;  %v5482_v59 = vpop.f32.mrf.mxu0 }
 0x3d9   :  { %v4250_v52 = vmax.f32 %v4103_v3, 0.0  ;;  %v4151_v22 = vadd.f32 %v6215_v43, %v3986_v25  ;;  %v3987_v5 = vmax.f32 %v3693_v60, %v3840_v2  ;;  %v3888_v53 = vmax.f32 %v3479_v54, %v3497_v19 }
 0x3da   :  { %v3890_v12 = vmax.f32 %v5478_v34, %v5482_v59  ;;  %v3499_v47 = vpop.f32.mrf.mxu1  ;;  %v3583_v51 = vpop.f32.mrf.mxu0 }
 0x3db   :  { %v5399_v46 = vpack.c.bf16 %v4250_v52, %v4249_v62  ;;  %v4152_v37 = vadd.f32 %v6215_v43, %v3987_v5  ;;  %v4035_v11 = vmax.f32 %v3741_v20, %v3888_v53  ;;  %v3889_v39 = vmax.f32 %v3481_v56, %v3499_v47 }
 0x3dc   :  { %v4037_v24 = vmax.f32 %v3743_v32, %v3890_v12  ;;  %v3792_v29 = vmax.f32 %v3568_v4, %v3583_v51  ;;  %v3501_v40 = vpop.f32.mrf.mxu1  ;;  %v5483_v1 = vpop.f32.mrf.mxu0  ;;  %v4298_v8 = vmax.f32 %v4151_v22, 0.0 }
 0x3dd   :  { %4866 = vst [vmem:[%s8279_s3 + $0xb8] sm:$0xff] %v5399_v46  ;;  %v4299_v14 = vmax.f32 %v4152_v37, 0.0  ;;  %v4200_v18 = vadd.f32 %v6238_v0, %v4035_v11  ;;  %v4036_v6 = vmax.f32 %v3742_v49, %v3889_v39 }
 0x3de   :  { %v4202_v28 = vadd.f32 %v6238_v0, %v4037_v24  ;;  %v3939_v13 = vmax.f32 %v3645_v21, %v3792_v29  ;;  %v3502_v63 = vpop.f32.mrf.mxu1  ;;  %v3586_v17 = vpop.f32.mrf.mxu0 }
 0x3df   :  { %v5424_v54 = vpack.c.bf16 %v4299_v14, %v4298_v8  ;;  %v3841_v44 = vmax.f32 %v3571_v9, %v3586_v17  ;;  %v4201_v58 = vadd.f32 %v6238_v0, %v4036_v6  ;;  %v4347_v16 = vmax.f32 %v4200_v18, 0.0 }
 0x3e0   :  { %v4349_v56 = vmax.f32 %v4202_v28, 0.0  ;;  %v4104_v27 = vadd.f32 %v6194_v10, %v3939_v13 }
 0x3e1   :  { %4891 = vst [vmem:[%s8279_s3 + $0x17c] sm:$0xff] %v5424_v54  ;;  %v3988_v30 = vmax.f32 %v3694_v42, %v3841_v44  ;;  %v4348_v34 = vmax.f32 %v4201_v58, 0.0 }
 0x3e2   :  { %v5450_v61 = vpack.c.bf16 %v4349_v56, %v4349_v56  ;;  %v4251_v48 = vmax.f32 %v4104_v27, 0.0 }
 0x3e3   :  { %v4153_v36 = vadd.f32 %v6215_v43, %v3988_v30  ;;  %v5449_v41 = vpack.c.bf16 %v4348_v34, %v4347_v16 }
 0x3e4   :  { %4917 = vst [vmem:[%s8279_s3 + $0x248] sm:$0x3] %v5450_v61  ;;  %v5400_v50 = vpack.c.bf16 %v4251_v48, %v4251_v48 }
 0x3e5   :  { %v4300_v0 = vmax.f32 %v4153_v36, 0.0  ;;  %4916 = vst [vmem:[%s8279_s3 + $0x240] sm:$0x33] %v5449_v41 }
 0x3e6   :  { %4867 = vst [vmem:[%s8279_s3 + $0xc0] sm:$0xf] %v5400_v50 }
 0x3e7   :  { %v5425_v10 = vpack.c.bf16 %v4300_v0, %v4300_v0 }
 0x3e9   :  { %4892 = vst [vmem:[%s8279_s3 + $0x184] sm:$0xf] %v5425_v10 }

// kernel: my_cnn_forward.3
= control target key start
LH: loop header
LB: loop body
LE: loop exit
PB: predicated region body
PF: predicated region fallthrough
CT: control target
= control target key end

     0   :  { %s4277_s18 = smov 0   ;;  %s5121_s0 = inlined_call_operand.vmem [shape: bf16[32,3920], index: 0, kind: input, shape index: {}]   ;;  %s5122_s1 = inlined_call_operand.vmem [shape: bf16[3920,128], index: 1, kind: input, shape index: {}]   ;;  %s5123_s2 = inlined_call_operand.vmem [shape: f32[1,128], index: 2, kind: input, shape index: {}]   ;;  %s5124_s3 = inlined_call_operand.vmem [shape: bf16[128,10], index: 3, kind: input, shape index: {}]   ;;  %s5125_s4 = inlined_call_operand.vmem [shape: f32[1,10], index: 4, kind: input, shape index: {}]   ;;  %s5126_s5 = inlined_call_operand.vmem [shape: f32[32,10], index: 5, kind: output, shape index: {}]  }
   0x1 LB: > { %s3242_s19 = sadd.s32 4294967295, %s4243_s18   ;;  %p3246_p0 = scmp.ge.s32.totalorder %s4243_s18, 1  ;;  %s4243_s18 = sphi %s4277_s18, %s15_s18  }
   0x2   : > { %p189_p1 = scmp.lt.s32.totalorder %s4243_s18, 3 }
   0x4   : > { %p190_p2 = pnand %p3246_p0, %p189_p1 }
   0x5   : > { %s3247_s25 = sshll.u32 (!%p190_p2), %s3242_s19, 1 }
   0x6   : > { %193 = sbr.rel (%p190_p2) target bundleno = 989 (0x3dd), region = 40  ;;  %p219_p3 = scmp.lt.s32.totalorder (!%p190_p2), %s3247_s25, 3 }
   0xb   : > { %v3930_v0 = vld [vmem:[%s5122_s1 + $0x78] sm:$0xff]   ;;  %v3934_v4 = vld [vmem:[%s5122_s1 + $0x70] sm:$0xff]   ;;  %v3938_v8 = vld [vmem:[%s5122_s1 + $0x68] sm:$0xff]   ;;  %s5128_s25 = smov (!%p219_p3, %s3247_s25), 3  ;;  %vm4246_vm0 = vmmov 0   ;;  %vm2386_vm1 = vcmask 654336  }
   0xc   : > { %v3931_v1 = vld [vmem:[%s5122_s1 + $0x38] sm:$0xff]   ;;  %3540 = vmatprep.subr.bf16.mxu0 %v3930_v0  ;;  %v3935_v5 = vld [vmem:[%s5122_s1 + $0x30] sm:$0xff]   ;;  %v3939_v9 = vld [vmem:[%s5122_s1 + $0x28] sm:$0xff]   ;;  %s3919_s24 = smul.u32 124, %s5128_s25  ;;  %vm3161_vm2 = vcmask 80896  }
   0xd   : > { %v3932_v2 = vld [vmem:[%s5122_s1 + $0xf8] sm:$0xff]   ;;  %3541 = vmatpush3.bf16.msra.mxu0 %v3931_v1  ;;  %v3936_v6 = vld [vmem:[%s5122_s1 + $0xf0] sm:$0xff]   ;;  %v3940_v10 = vld [vmem:[%s5122_s1 + $0xe8] sm:$0xff]  }
   0xe   : > { %v3933_v3 = vld [vmem:[%s5122_s1 + $0xb8] sm:$0xff]   ;;  %3562 = vmatprep.subr.bf16.mxu1 %v3932_v2  ;;  %3542 = vmatprep.subr.bf16.mxu0 %v3934_v4  ;;  %v3937_v7 = vld [vmem:[%s5122_s1 + $0xb0] sm:$0xff]   ;;  %v3941_v11 = vld [vmem:[%s5122_s1 + $0xa8] sm:$0xff]   ;;  %s4380_s10 = scalar_lea.vmem %s5121_s0, %s3919_s24  ;;  %s3250_s24 = sshll.u32 %s5128_s25, 3 }
   0xf   : > { %3563 = vmatpush3.bf16.msra.mxu1 %v3933_v3  ;;  %v3942_v12 = vld [vmem:[%s5122_s1 + $0x60] sm:$0xff]   ;;  %v3946_v16 = vld [vmem:[%s5122_s1 + $0x58] sm:$0xff]   ;;  %v3950_v20 = vld [vmem:[%s5122_s1 + $0x50] sm:$0xff]   ;;  %s229_s28 = scalar_lea.vmem %s5126_s5, %s3250_s24 }
  0x10   : > { %3564 = vmatprep.subr.bf16.mxu1 %v3936_v6  ;;  %v3943_v13 = vld [vmem:[%s5122_s1 + $0x20] sm:$0xff]   ;;  %v3947_v17 = vld [vmem:[%s5122_s1 + $0x18] sm:$0xff]   ;;  %v3951_v21 = vld [vmem:[%s5122_s1 + $0x10] sm:$0xff]  }
  0x11   : > { %3543 = vmatpush3.bf16.msra.mxu0 %v3935_v5  ;;  %v3944_v14 = vld [vmem:[%s5122_s1 + $0xe0] sm:$0xff]   ;;  %v3948_v18 = vld [vmem:[%s5122_s1 + $0xd8] sm:$0xff]   ;;  %v3952_v22 = vld [vmem:[%s5122_s1 + $0xd0] sm:$0xff]  }
  0x12   : > { %3544 = vmatprep.subr.bf16.mxu0 %v3938_v8  ;;  %v3945_v15 = vld [vmem:[%s5122_s1 + $0xa0] sm:$0xff]   ;;  %v3949_v19 = vld [vmem:[%s5122_s1 + $0x98] sm:$0xff]   ;;  %v3953_v23 = vld [vmem:[%s5122_s1 + $0x90] sm:$0xff]  }
  0x13   : > { %3565 = vmatpush3.bf16.msra.mxu1 %v3937_v7  ;;  %v3954_v24 = vld [vmem:[%s5122_s1 + $0x48] sm:$0xff]   ;;  %v3958_v28 = vld [vmem:[%s5122_s1 + $0x40] sm:$0xff]   ;;  %v3965_v34 = vld [vmem:[%s5122_s1 + $0x178] sm:$0xff]  }
  0x14   : > { %3566 = vmatprep.subr.bf16.mxu1 %v3940_v10  ;;  %v3955_v25 = vld [vmem:[%s5122_s1 + $0x8] sm:$0xff]   ;;  %v3959_v29 = vld [vmem:[%s5122_s1] sm:$0xff]   ;;  %v3969_v37 = vld [vmem:[%s5122_s1 + $0x138] sm:$0xff]  }
  0x15   : > { %3545 = vmatpush3.bf16.msra.mxu0 %v3939_v9  ;;  %v3956_v26 = vld [vmem:[%s5122_s1 + $0xc8] sm:$0xff]   ;;  %v3960_v30 = vld [vmem:[%s5122_s1 + $0xc0] sm:$0xff]   ;;  %v3970_v38 = vld [vmem:[%s5122_s1 + $0x1f8] sm:$0xff]  }
  0x16   : > { %3546 = vmatprep.subr.bf16.mxu0 %v3942_v12  ;;  %v3957_v27 = vld [vmem:[%s5122_s1 + $0x88] sm:$0xff]   ;;  %v3961_v31 = vld [vmem:[%s4380_s10] ss:$124 sps:$4 sm:$0xff]   ;;  %v3972_v40 = vld [vmem:[%s5122_s1 + $0x170] sm:$0xff]  }
  0x17   : > { %3567 = vmatpush3.bf16.msra.mxu1 %v3941_v11  ;;  %v3963_v32 = vld [vmem:[%s4380_s10 + $0x4] ss:$124 sps:$4 sm:$0xff]   ;;  %v3968_v36 = vld [vmem:[%s4380_s10 + $0xc] ss:$124 sps:$4 sm:$0xff]   ;;  %v3971_v39 = vld [vmem:[%s5122_s1 + $0x1b8] sm:$0xff]  }
  0x18   : > { %3568 = vmatprep.subr.bf16.mxu1 %v3944_v14  ;;  %v3964_v33 = vld [vmem:[%s5122_s1 + $0x80] sm:$0xff]   ;;  %2422 = vmatprep.mubr.bf16.mxu0 %v3963_v32  ;;  %v3973_v41 = vld [vmem:[%s5122_s1 + $0x130] sm:$0xff]   ;;  %v3976_v44 = vld [vmem:[%s5122_s1 + $0x168] sm:$0xff]  }
  0x19   : > { %3547 = vmatpush3.bf16.msra.mxu0 %v3943_v13  ;;  %v3966_v35 = vld [vmem:[%s4380_s10 + $0x8] ss:$124 sps:$4 sm:$0xff]   ;;  %2463 = vmatprep.mubr.bf16.mxu1 %v3968_v36  ;;  %v3974_v42 = vld [vmem:[%s5122_s1 + $0x1f0] sm:$0xff]   ;;  %v3984_v52 = vld [vmem:[%s5122_s1 + $0x158] sm:$0xff]  }
  0x1a   : > { %3548 = vmatprep.subr.bf16.mxu0 %v3946_v16  ;;  %v3975_v43 = vld [vmem:[%s5122_s1 + $0x1b0] sm:$0xff]   ;;  %v3977_v45 = vld [vmem:[%s5122_s1 + $0x128] sm:$0xff]   ;;  %v3980_v48 = vld [vmem:[%s5122_s1 + $0x160] sm:$0xff]  }
  0x1b   : > { %3569 = vmatpush3.bf16.msra.mxu1 %v3945_v15  ;;  %v3978_v46 = vld [vmem:[%s5122_s1 + $0x1e8] sm:$0xff]   ;;  %v3981_v49 = vld [vmem:[%s5122_s1 + $0x120] sm:$0xff]   ;;  %v3985_v53 = vld [vmem:[%s5122_s1 + $0x118] sm:$0xff]  }
  0x1c   : > { %3570 = vmatprep.subr.bf16.mxu1 %v3948_v18  ;;  %v3979_v47 = vld [vmem:[%s5122_s1 + $0x1a8] sm:$0xff]   ;;  %v3982_v50 = vld [vmem:[%s5122_s1 + $0x1e0] sm:$0xff]   ;;  %v3986_v54 = vld [vmem:[%s5122_s1 + $0x1d8] sm:$0xff]  }
  0x1d   : > { %3549 = vmatpush3.bf16.msra.mxu0 %v3947_v17  ;;  %v3983_v51 = vld [vmem:[%s5122_s1 + $0x1a0] sm:$0xff]   ;;  %v3987_v55 = vld [vmem:[%s5122_s1 + $0x198] sm:$0xff]   ;;  %v3988_v56 = vld [vmem:[%s5122_s1 + $0x150] sm:$0xff]  }
  0x1e   : > { %3550 = vmatprep.subr.bf16.mxu0 %v3950_v20  ;;  %v3989_v57 = vld [vmem:[%s5122_s1 + $0x110] sm:$0xff]   ;;  %v3992_v60 = vld [vmem:[%s5122_s1 + $0x148] sm:$0xff]   ;;  %v3996_v0 = vld [vmem:[%s5122_s1 + $0x140] sm:$0xff]  }
  0x1f   : > { %3571 = vmatpush3.bf16.msra.mxu1 %v3949_v19  ;;  %v3990_v58 = vld [vmem:[%s5122_s1 + $0x1d0] sm:$0xff]   ;;  %v3993_v61 = vld [vmem:[%s5122_s1 + $0x108] sm:$0xff]   ;;  %v3997_v1 = vld [vmem:[%s5122_s1 + $0x100] sm:$0xff]  }
  0x20   : > { %3572 = vmatprep.subr.bf16.mxu1 %v3952_v22  ;;  %v3991_v59 = vld [vmem:[%s5122_s1 + $0x190] sm:$0xff]   ;;  %v3994_v62 = vld [vmem:[%s5122_s1 + $0x1c8] sm:$0xff]   ;;  %v3998_v2 = vld [vmem:[%s5122_s1 + $0x1c0] sm:$0xff]  }
  0x21   : > { %3551 = vmatpush3.bf16.msra.mxu0 %v3951_v21  ;;  %v3995_v63 = vld [vmem:[%s5122_s1 + $0x188] sm:$0xff]   ;;  %v4001_v4 = vld [vmem:[%s4380_s10 + $0x14] ss:$124 sps:$4 sm:$0xff]   ;;  %v4002_v5 = vld [vmem:[%s5122_s1 + $0x180] sm:$0xff]  }
  0x22   : > { %3552 = vmatprep.subr.bf16.mxu0 %v3954_v24  ;;  %v3999_v3 = vld [vmem:[%s4380_s10 + $0x10] ss:$124 sps:$4 sm:$0xff]   ;;  %v4003_v6 = vld [vmem:[%s5122_s1 + $0x278] sm:$0xff]   ;;  %v4018_v20 = vld [vmem:[%s5122_s1 + $0x260] sm:$0xff]  }
  0x23   : > { %3573 = vmatpush3.bf16.msra.mxu1 %v3953_v23  ;;  %v4004_v7 = vld [vmem:[%s4380_s10 + $0x18] ss:$124 sps:$4 sm:$0xff]   ;;  %v4014_v16 = vld [vmem:[%s5122_s1 + $0x268] sm:$0xff]   ;;  %v4019_v21 = vld [vmem:[%s5122_s1 + $0x220] sm:$0xff]  }
  0x24   : > { %3574 = vmatprep.subr.bf16.mxu1 %v3956_v26  ;;  %v4006_v8 = vld [vmem:[%s4380_s10 + $0x1c] ss:$124 sps:$4 sm:$0xff]   ;;  %v4010_v12 = vld [vmem:[%s5122_s1 + $0x270] sm:$0xff]   ;;  %v4015_v17 = vld [vmem:[%s5122_s1 + $0x228] sm:$0xff]  }
  0x25   : > { %3553 = vmatpush3.bf16.msra.mxu0 %v3955_v25  ;;  %v4007_v9 = vld [vmem:[%s5122_s1 + $0x238] sm:$0xff]   ;;  %v4011_v13 = vld [vmem:[%s5122_s1 + $0x230] sm:$0xff]   ;;  %v4016_v18 = vld [vmem:[%s5122_s1 + $0x2e8] sm:$0xff]  }
  0x26   : > { %3554 = vmatprep.subr.bf16.mxu0 %v3958_v28  ;;  %v4008_v10 = vld [vmem:[%s5122_s1 + $0x2f8] sm:$0xff]   ;;  %v4012_v14 = vld [vmem:[%s5122_s1 + $0x2f0] sm:$0xff]   ;;  %v4017_v19 = vld [vmem:[%s5122_s1 + $0x2a8] sm:$0xff]  }
  0x27   : > { %3575 = vmatpush3.bf16.msra.mxu1 %v3957_v27  ;;  %v4009_v11 = vld [vmem:[%s5122_s1 + $0x2b8] sm:$0xff]   ;;  %v4013_v15 = vld [vmem:[%s5122_s1 + $0x2b0] sm:$0xff]   ;;  %v4020_v22 = vld [vmem:[%s5122_s1 + $0x2e0] sm:$0xff]  }
  0x28   : > { %3576 = vmatprep.subr.bf16.mxu1 %v3960_v30  ;;  %v4021_v23 = vld [vmem:[%s5122_s1 + $0x2a0] sm:$0xff]   ;;  %v4022_v24 = vld [vmem:[%s5122_s1 + $0x258] sm:$0xff]   ;;  %v4026_v28 = vld [vmem:[%s5122_s1 + $0x250] sm:$0xff]  }
  0x29   : > { %3555 = vmatpush3.bf16.msra.mxu0 %v3959_v29  ;;  %v4023_v25 = vld [vmem:[%s5122_s1 + $0x218] sm:$0xff]   ;;  %v4027_v29 = vld [vmem:[%s5122_s1 + $0x210] sm:$0xff]   ;;  %v4030_v32 = vld [vmem:[%s5122_s1 + $0x248] sm:$0xff]  }
  0x2a   : > { %3584 = vmatprep.subr.bf16.mxu0 %v3965_v34  ;;  %v4024_v26 = vld [vmem:[%s5122_s1 + $0x2d8] sm:$0xff]   ;;  %v4028_v30 = vld [vmem:[%s5122_s1 + $0x2d0] sm:$0xff]   ;;  %v4032_v34 = vld [vmem:[%s5122_s1 + $0x2c8] sm:$0xff]  }
  0x2b   : > { %3577 = vmatpush3.bf16.msra.mxu1 %v3964_v33  ;;  %v4025_v27 = vld [vmem:[%s5122_s1 + $0x298] sm:$0xff]   ;;  %v4031_v33 = vld [vmem:[%s5122_s1 + $0x208] sm:$0xff]   ;;  %v4034_v36 = vld [vmem:[%s5122_s1 + $0x240] sm:$0xff]  }
  0x2c   : > { %2423 = vmatmul.mubr.bf16.vlgmr.msra.gmra.mxu0 %v3961_v31  ;;  %3606 = vmatprep.subr.bf16.mxu1 %v3970_v38  ;;  %v4029_v31 = vld [vmem:[%s5122_s1 + $0x290] sm:$0xff]   ;;  %v4036_v38 = vld [vmem:[%s5122_s1 + $0x2c0] sm:$0xff]  }
  0x2d   : > { %3585 = vmatpush3.bf16.msra.mxu0 %v3969_v37  ;;  %2504 = vmatprep.mubr.bf16.mxu0 %v4001_v4  ;;  %v4035_v37 = vld [vmem:[%s5122_s1 + $0x200] sm:$0xff]   ;;  %v4068_v4 = vld [vmem:[%s5122_s1 + $0x348] sm:$0xff]  }
  0x2e   : > { %2464 = vmatmul.mubr.bf16.vlgmr.msra.gmra.mxu1 %v3966_v35  ;;  %3586 = vmatprep.subr.bf16.mxu0 %v3972_v40  ;;  %v4033_v35 = vld [vmem:[%s5122_s1 + $0x288] sm:$0xff]   ;;  %v4039_v40 = vld [vmem:[%s4380_s10 + $0x24] ss:$124 sps:$4 sm:$0xff]  }
  0x2f   : > { %3607 = vmatpush3.bf16.msra.mxu1 %v3971_v39  ;;  %2545 = vmatprep.mubr.bf16.mxu1 %v4006_v8  ;;  %v4037_v39 = vld [vmem:[%s4380_s10 + $0x20] ss:$124 sps:$4 sm:$0xff]  }
  0x30   : > { %3608 = vmatprep.subr.bf16.mxu1 %v3974_v42  ;;  %v4041_v42 = vld [vmem:[%s5122_s1 + $0x378] sm:$0xff]   ;;  %v4072_v8 = vld [vmem:[%s5122_s1 + $0x340] sm:$0xff]  }
  0x31   : > { %3587 = vmatpush3.bf16.msra.mxu0 %v3973_v41  ;;  %v4040_v41 = vld [vmem:[%s5122_s1 + $0x280] sm:$0xff]  }
  0x32   : > { %3588 = vmatprep.subr.bf16.mxu0 %v3976_v44  ;;  %v4044_v44 = vld [vmem:[%s4380_s10 + $0x2c] ss:$124 sps:$4 sm:$0xff]  }
  0x33   : > { %3609 = vmatpush3.bf16.msra.mxu1 %v3975_v43  ;;  %v4042_v43 = vld [vmem:[%s4380_s10 + $0x28] ss:$124 sps:$4 sm:$0xff]  }
  0x34   : > { %3610 = vmatprep.subr.bf16.mxu1 %v3978_v46  ;;  %v4046_v46 = vld [vmem:[%s5122_s1 + $0x3f8] sm:$0xff]  }
  0x35   : > { %3589 = vmatpush3.bf16.msra.mxu0 %v3977_v45  ;;  %v4045_v45 = vld [vmem:[%s5122_s1 + $0x338] sm:$0xff]  }
  0x36   : > { %3590 = vmatprep.subr.bf16.mxu0 %v3980_v48  ;;  %v4048_v48 = vld [vmem:[%s5122_s1 + $0x370] sm:$0xff]  }
  0x37   : > { %3611 = vmatpush3.bf16.msra.mxu1 %v3979_v47  ;;  %v4047_v47 = vld [vmem:[%s5122_s1 + $0x3b8] sm:$0xff]  }
  0x38   : > { %3612 = vmatprep.subr.bf16.mxu1 %v3982_v50  ;;  %v4050_v50 = vld [vmem:[%s5122_s1 + $0x3f0] sm:$0xff]  }
  0x39   : > { %3591 = vmatpush3.bf16.msra.mxu0 %v3981_v49  ;;  %v4049_v49 = vld [vmem:[%s5122_s1 + $0x330] sm:$0xff]  }
  0x3a   : > { %3592 = vmatprep.subr.bf16.mxu0 %v3984_v52  ;;  %v4052_v52 = vld [vmem:[%s5122_s1 + $0x368] sm:$0xff]  }
  0x3b   : > { %3613 = vmatpush3.bf16.msra.mxu1 %v3983_v51  ;;  %v4051_v51 = vld [vmem:[%s5122_s1 + $0x3b0] sm:$0xff]  }
  0x3c   : > { %3614 = vmatprep.subr.bf16.mxu1 %v3986_v54  ;;  %v4054_v54 = vld [vmem:[%s5122_s1 + $0x3e8] sm:$0xff]  }
  0x3d   : > { %3593 = vmatpush3.bf16.msra.mxu0 %v3985_v53  ;;  %v4053_v53 = vld [vmem:[%s5122_s1 + $0x328] sm:$0xff]  }
  0x3e   : > { %3594 = vmatprep.subr.bf16.mxu0 %v3988_v56  ;;  %v4056_v56 = vld [vmem:[%s5122_s1 + $0x360] sm:$0xff]  }
  0x3f   : > { %3615 = vmatpush3.bf16.msra.mxu1 %v3987_v55  ;;  %v4055_v55 = vld [vmem:[%s5122_s1 + $0x3a8] sm:$0xff]  }
  0x40   : > { %3616 = vmatprep.subr.bf16.mxu1 %v3990_v58  ;;  %v4058_v58 = vld [vmem:[%s5122_s1 + $0x3e0] sm:$0xff]  }
  0x41   : > { %3595 = vmatpush3.bf16.msra.mxu0 %v3989_v57  ;;  %v4057_v57 = vld [vmem:[%s5122_s1 + $0x320] sm:$0xff]  }
  0x42   : > { %3596 = vmatprep.subr.bf16.mxu0 %v3992_v60  ;;  %v4060_v60 = vld [vmem:[%s5122_s1 + $0x358] sm:$0xff]  }
  0x43   : > { %3617 = vmatpush3.bf16.msra.mxu1 %v3991_v59  ;;  %v4059_v59 = vld [vmem:[%s5122_s1 + $0x3a0] sm:$0xff]  }
  0x44   : > { %3618 = vmatprep.subr.bf16.mxu1 %v3994_v62  ;;  %v4062_v62 = vld [vmem:[%s5122_s1 + $0x3d8] sm:$0xff]  }
  0x45   : > { %3597 = vmatpush3.bf16.msra.mxu0 %v3993_v61  ;;  %v4061_v61 = vld [vmem:[%s5122_s1 + $0x318] sm:$0xff]  }
  0x46   : > { %3598 = vmatprep.subr.bf16.mxu0 %v3996_v0  ;;  %v4064_v0 = vld [vmem:[%s5122_s1 + $0x350] sm:$0xff]  }
  0x47   : > { %3619 = vmatpush3.bf16.msra.mxu1 %v3995_v63  ;;  %v4063_v63 = vld [vmem:[%s5122_s1 + $0x398] sm:$0xff]  }
  0x48   : > { %3620 = vmatprep.subr.bf16.mxu1 %v3998_v2  ;;  %v4066_v2 = vld [vmem:[%s5122_s1 + $0x3d0] sm:$0xff]  }
  0x49   : > { %3599 = vmatpush3.bf16.msra.mxu0 %v3997_v1  ;;  %v4065_v1 = vld [vmem:[%s5122_s1 + $0x310] sm:$0xff]  }
  0x4a   : > { %3628 = vmatprep.subr.bf16.mxu0 %v4003_v6  ;;  %v4070_v6 = vld [vmem:[%s5122_s1 + $0x3c8] sm:$0xff]  }
  0x4b   : > { %3621 = vmatpush3.bf16.msra.mxu1 %v4002_v5  ;;  %v4069_v5 = vld [vmem:[%s5122_s1 + $0x308] sm:$0xff]  }
  0x4c   : > { %2505 = vmatmul.mubr.bf16.vlgmr.msra.gmra.mxu0 %v3999_v3  ;;  %3650 = vmatprep.subr.bf16.mxu1 %v4008_v10  ;;  %v4067_v3 = vld [vmem:[%s5122_s1 + $0x390] sm:$0xff]   ;;  %v4074_v10 = vld [vmem:[%s5122_s1 + $0x3c0] sm:$0xff]  }
  0x4d   : > { %3629 = vmatpush3.bf16.msra.mxu0 %v4007_v9  ;;  %2586 = vmatprep.mubr.bf16.mxu0 %v4039_v40  ;;  %v4073_v9 = vld [vmem:[%s5122_s1 + $0x300] sm:$0xff]   ;;  %v4106_v40 = vld [vmem:[%s5122_s1 + $0x448] sm:$0xff]  }
  0x4e   : > { %2546 = vmatmul.mubr.bf16.vlgmr.msra.gmra.mxu1 %v4004_v7  ;;  %3630 = vmatprep.subr.bf16.mxu0 %v4010_v12  ;;  %v4071_v7 = vld [vmem:[%s5122_s1 + $0x388] sm:$0xff]   ;;  %v4077_v12 = vld [vmem:[%s4380_s10 + $0x34] ss:$124 sps:$4 sm:$0xff]  }
  0x4f   : > { %3651 = vmatpush3.bf16.msra.mxu1 %v4009_v11  ;;  %2627 = vmatprep.mubr.bf16.mxu1 %v4044_v44  ;;  %v4075_v11 = vld [vmem:[%s4380_s10 + $0x30] ss:$124 sps:$4 sm:$0xff]   ;;  %v4110_v44 = vld [vmem:[%s5122_s1 + $0x440] sm:$0xff]  }
  0x50   : > { %3652 = vmatprep.subr.bf16.mxu1 %v4012_v14  ;;  %v4079_v14 = vld [vmem:[%s5122_s1 + $0x478] sm:$0xff]  }
  0x51   : > { %3631 = vmatpush3.bf16.msra.mxu0 %v4011_v13  ;;  %v4078_v13 = vld [vmem:[%s5122_s1 + $0x380] sm:$0xff]  }
  0x52   : > { %3632 = vmatprep.subr.bf16.mxu0 %v4014_v16  ;;  %v4082_v16 = vld [vmem:[%s4380_s10 + $0x3c] ss:$124 sps:$4 sm:$0xff]  }
  0x53   : > { %3653 = vmatpush3.bf16.msra.mxu1 %v4013_v15  ;;  %v4080_v15 = vld [vmem:[%s4380_s10 + $0x38] ss:$124 sps:$4 sm:$0xff]  }
  0x54   : > { %3654 = vmatprep.subr.bf16.mxu1 %v4016_v18  ;;  %v4084_v18 = vld [vmem:[%s5122_s1 + $0x4f8] sm:$0xff]  }
  0x55   : > { %3633 = vmatpush3.bf16.msra.mxu0 %v4015_v17  ;;  %v4083_v17 = vld [vmem:[%s5122_s1 + $0x438] sm:$0xff]  }
  0x56   : > { %3634 = vmatprep.subr.bf16.mxu0 %v4018_v20  ;;  %v4086_v20 = vld [vmem:[%s5122_s1 + $0x470] sm:$0xff]  }
  0x57   : > { %3655 = vmatpush3.bf16.msra.mxu1 %v4017_v19  ;;  %v4085_v19 = vld [vmem:[%s5122_s1 + $0x4b8] sm:$0xff]  }
  0x58   : > { %3656 = vmatprep.subr.bf16.mxu1 %v4020_v22  ;;  %v4088_v22 = vld [vmem:[%s5122_s1 + $0x4f0] sm:$0xff]  }
  0x59   : > { %3635 = vmatpush3.bf16.msra.mxu0 %v4019_v21  ;;  %v4087_v21 = vld [vmem:[%s5122_s1 + $0x430] sm:$0xff]  }
  0x5a   : > { %3636 = vmatprep.subr.bf16.mxu0 %v4022_v24  ;;  %v4090_v24 = vld [vmem:[%s5122_s1 + $0x468] sm:$0xff]  }
  0x5b   : > { %3657 = vmatpush3.bf16.msra.mxu1 %v4021_v23  ;;  %v4089_v23 = vld [vmem:[%s5122_s1 + $0x4b0] sm:$0xff]  }
  0x5c   : > { %3658 = vmatprep.subr.bf16.mxu1 %v4024_v26  ;;  %v4092_v26 = vld [vmem:[%s5122_s1 + $0x4e8] sm:$0xff]  }
  0x5d   : > { %3637 = vmatpush3.bf16.msra.mxu0 %v4023_v25  ;;  %v4091_v25 = vld [vmem:[%s5122_s1 + $0x428] sm:$0xff]  }
  0x5e   : > { %3638 = vmatprep.subr.bf16.mxu0 %v4026_v28  ;;  %v4094_v28 = vld [vmem:[%s5122_s1 + $0x460] sm:$0xff]  }
  0x5f   : > { %3659 = vmatpush3.bf16.msra.mxu1 %v4025_v27  ;;  %v4093_v27 = vld [vmem:[%s5122_s1 + $0x4a8] sm:$0xff]  }
  0x60   : > { %3660 = vmatprep.subr.bf16.mxu1 %v4028_v30  ;;  %v4096_v30 = vld [vmem:[%s5122_s1 + $0x4e0] sm:$0xff]  }
  0x61   : > { %3639 = vmatpush3.bf16.msra.mxu0 %v4027_v29  ;;  %v4095_v29 = vld [vmem:[%s5122_s1 + $0x420] sm:$0xff]  }
  0x62   : > { %3640 = vmatprep.subr.bf16.mxu0 %v4030_v32  ;;  %v4098_v32 = vld [vmem:[%s5122_s1 + $0x458] sm:$0xff]  }
  0x63   : > { %3661 = vmatpush3.bf16.msra.mxu1 %v4029_v31  ;;  %v4097_v31 = vld [vmem:[%s5122_s1 + $0x4a0] sm:$0xff]  }
  0x64   : > { %3662 = vmatprep.subr.bf16.mxu1 %v4032_v34  ;;  %v4100_v34 = vld [vmem:[%s5122_s1 + $0x4d8] sm:$0xff]  }
  0x65   : > { %3641 = vmatpush3.bf16.msra.mxu0 %v4031_v33  ;;  %v4099_v33 = vld [vmem:[%s5122_s1 + $0x418] sm:$0xff]  }
  0x66   : > { %3642 = vmatprep.subr.bf16.mxu0 %v4034_v36  ;;  %v4102_v36 = vld [vmem:[%s5122_s1 + $0x450] sm:$0xff]  }
  0x67   : > { %3663 = vmatpush3.bf16.msra.mxu1 %v4033_v35  ;;  %v4101_v35 = vld [vmem:[%s5122_s1 + $0x498] sm:$0xff]  }
  0x68   : > { %3664 = vmatprep.subr.bf16.mxu1 %v4036_v38  ;;  %v4104_v38 = vld [vmem:[%s5122_s1 + $0x4d0] sm:$0xff]  }
  0x69   : > { %3643 = vmatpush3.bf16.msra.mxu0 %v4035_v37  ;;  %v4103_v37 = vld [vmem:[%s5122_s1 + $0x410] sm:$0xff]  }
  0x6a   : > { %3672 = vmatprep.subr.bf16.mxu0 %v4041_v42  ;;  %v4108_v42 = vld [vmem:[%s5122_s1 + $0x4c8] sm:$0xff]  }
  0x6b   : > { %3665 = vmatpush3.bf16.msra.mxu1 %v4040_v41  ;;  %v4107_v41 = vld [vmem:[%s5122_s1 + $0x408] sm:$0xff]  }
  0x6c   : > { %2587 = vmatmul.mubr.bf16.vlgmr.msra.gmra.mxu0 %v4037_v39  ;;  %3694 = vmatprep.subr.bf16.mxu1 %v4046_v46  ;;  %v4105_v39 = vld [vmem:[%s5122_s1 + $0x490] sm:$0xff]   ;;  %v4112_v46 = vld [vmem:[%s5122_s1 + $0x4c0] sm:$0xff]  }
  0x6d   : > { %3673 = vmatpush3.bf16.msra.mxu0 %v4045_v45  ;;  %2668 = vmatprep.mubr.bf16.mxu0 %v4077_v12  ;;  %v4111_v45 = vld [vmem:[%s5122_s1 + $0x400] sm:$0xff]   ;;  %v4144_v12 = vld [vmem:[%s5122_s1 + $0x548] sm:$0xff]  }
  0x6e   : > { %2628 = vmatmul.mubr.bf16.vlgmr.msra.gmra.mxu1 %v4042_v43  ;;  %3674 = vmatprep.subr.bf16.mxu0 %v4048_v48  ;;  %v4109_v43 = vld [vmem:[%s5122_s1 + $0x488] sm:$0xff]   ;;  %v4115_v48 = vld [vmem:[%s4380_s10 + $0x44] ss:$124 sps:$4 sm:$0xff]  }
  0x6f   : > { %3695 = vmatpush3.bf16.msra.mxu1 %v4047_v47  ;;  %2709 = vmatprep.mubr.bf16.mxu1 %v4082_v16  ;;  %v4113_v47 = vld [vmem:[%s4380_s10 + $0x40] ss:$124 sps:$4 sm:$0xff]  }
  0x70   : > { %3696 = vmatprep.subr.bf16.mxu1 %v4050_v50  ;;  %v4117_v50 = vld [vmem:[%s5122_s1 + $0x578] sm:$0xff]   ;;  %v4148_v16 = vld [vmem:[%s5122_s1 + $0x540] sm:$0xff]  }
  0x71   : > { %3675 = vmatpush3.bf16.msra.mxu0 %v4049_v49  ;;  %v4116_v49 = vld [vmem:[%s5122_s1 + $0x480] sm:$0xff]  }
  0x72   : > { %3676 = vmatprep.subr.bf16.mxu0 %v4052_v52  ;;  %v4120_v52 = vld [vmem:[%s4380_s10 + $0x4c] ss:$124 sps:$4 sm:$0xff]  }
  0x73   : > { %3697 = vmatpush3.bf16.msra.mxu1 %v4051_v51  ;;  %v4118_v51 = vld [vmem:[%s4380_s10 + $0x48] ss:$124 sps:$4 sm:$0xff]  }
  0x74   : > { %3698 = vmatprep.subr.bf16.mxu1 %v4054_v54  ;;  %v4122_v54 = vld [vmem:[%s5122_s1 + $0x5f8] sm:$0xff]  }
  0x75   : > { %3677 = vmatpush3.bf16.msra.mxu0 %v4053_v53  ;;  %v4121_v53 = vld [vmem:[%s5122_s1 + $0x538] sm:$0xff]  }
  0x76   : > { %3678 = vmatprep.subr.bf16.mxu0 %v4056_v56  ;;  %v4124_v56 = vld [vmem:[%s5122_s1 + $0x570] sm:$0xff]  }
  0x77   : > { %3699 = vmatpush3.bf16.msra.mxu1 %v4055_v55  ;;  %v4123_v55 = vld [vmem:[%s5122_s1 + $0x5b8] sm:$0xff]  }
  0x78   : > { %3700 = vmatprep.subr.bf16.mxu1 %v4058_v58  ;;  %v4126_v58 = vld [vmem:[%s5122_s1 + $0x5f0] sm:$0xff]  }
  0x79   : > { %3679 = vmatpush3.bf16.msra.mxu0 %v4057_v57  ;;  %v4125_v57 = vld [vmem:[%s5122_s1 + $0x530] sm:$0xff]  }
  0x7a   : > { %3680 = vmatprep.subr.bf16.mxu0 %v4060_v60  ;;  %v4128_v60 = vld [vmem:[%s5122_s1 + $0x568] sm:$0xff]  }
  0x7b   : > { %3701 = vmatpush3.bf16.msra.mxu1 %v4059_v59  ;;  %v4127_v59 = vld [vmem:[%s5122_s1 + $0x5b0] sm:$0xff]  }
  0x7c   : > { %3702 = vmatprep.subr.bf16.mxu1 %v4062_v62  ;;  %v4130_v62 = vld [vmem:[%s5122_s1 + $0x5e8] sm:$0xff]  }
  0x7d   : > { %3681 = vmatpush3.bf16.msra.mxu0 %v4061_v61  ;;  %v4129_v61 = vld [vmem:[%s5122_s1 + $0x528] sm:$0xff]  }
  0x7e   : > { %3682 = vmatprep.subr.bf16.mxu0 %v4064_v0  ;;  %v4132_v0 = vld [vmem:[%s5122_s1 + $0x560] sm:$0xff]  }
  0x7f   : > { %3703 = vmatpush3.bf16.msra.mxu1 %v4063_v63  ;;  %v4131_v63 = vld [vmem:[%s5122_s1 + $0x5a8] sm:$0xff]  }
  0x80   : > { %3704 = vmatprep.subr.bf16.mxu1 %v4066_v2  ;;  %v4134_v2 = vld [vmem:[%s5122_s1 + $0x5e0] sm:$0xff]  }
  0x81   : > { %3683 = vmatpush3.bf16.msra.mxu0 %v4065_v1  ;;  %v4133_v1 = vld [vmem:[%s5122_s1 + $0x520] sm:$0xff]  }
  0x82   : > { %3684 = vmatprep.subr.bf16.mxu0 %v4068_v4  ;;  %v4136_v4 = vld [vmem:[%s5122_s1 + $0x558] sm:$0xff]  }
  0x83   : > { %3705 = vmatpush3.bf16.msra.mxu1 %v4067_v3  ;;  %v4135_v3 = vld [vmem:[%s5122_s1 + $0x5a0] sm:$0xff]  }
  0x84   : > { %3706 = vmatprep.subr.bf16.mxu1 %v4070_v6  ;;  %v4138_v6 = vld [vmem:[%s5122_s1 + $0x5d8] sm:$0xff]  }
  0x85   : > { %3685 = vmatpush3.bf16.msra.mxu0 %v4069_v5  ;;  %v4137_v5 = vld [vmem:[%s5122_s1 + $0x518] sm:$0xff]  }
  0x86   : > { %3686 = vmatprep.subr.bf16.mxu0 %v4072_v8  ;;  %v4140_v8 = vld [vmem:[%s5122_s1 + $0x550] sm:$0xff]  }
  0x87   : > { %3707 = vmatpush3.bf16.msra.mxu1 %v4071_v7  ;;  %v4139_v7 = vld [vmem:[%s5122_s1 + $0x598] sm:$0xff]  }
  0x88   : > { %3708 = vmatprep.subr.bf16.mxu1 %v4074_v10  ;;  %v4142_v10 = vld [vmem:[%s5122_s1 + $0x5d0] sm:$0xff]  }
  0x89   : > { %3687 = vmatpush3.bf16.msra.mxu0 %v4073_v9  ;;  %v4141_v9 = vld [vmem:[%s5122_s1 + $0x510] sm:$0xff]  }
  0x8a   : > { %3716 = vmatprep.subr.bf16.mxu0 %v4079_v14  ;;  %v4146_v14 = vld [vmem:[%s5122_s1 + $0x5c8] sm:$0xff]  }
  0x8b   : > { %3709 = vmatpush3.bf16.msra.mxu1 %v4078_v13  ;;  %v4145_v13 = vld [vmem:[%s5122_s1 + $0x508] sm:$0xff]  }
  0x8c   : > { %2669 = vmatmul.mubr.bf16.vlgmr.msra.gmra.mxu0 %v4075_v11  ;;  %3738 = vmatprep.subr.bf16.mxu1 %v4084_v18  ;;  %v4143_v11 = vld [vmem:[%s5122_s1 + $0x590] sm:$0xff]   ;;  %v4150_v18 = vld [vmem:[%s5122_s1 + $0x5c0] sm:$0xff]  }
  0x8d   : > { %3717 = vmatpush3.bf16.msra.mxu0 %v4083_v17  ;;  %2750 = vmatprep.mubr.bf16.mxu0 %v4115_v48  ;;  %v4149_v17 = vld [vmem:[%s5122_s1 + $0x500] sm:$0xff]   ;;  %v4182_v48 = vld [vmem:[%s5122_s1 + $0x648] sm:$0xff]  }
  0x8e   : > { %2710 = vmatmul.mubr.bf16.vlgmr.msra.gmra.mxu1 %v4080_v15  ;;  %3718 = vmatprep.subr.bf16.mxu0 %v4086_v20  ;;  %v4147_v15 = vld [vmem:[%s5122_s1 + $0x588] sm:$0xff]   ;;  %v4153_v20 = vld [vmem:[%s4380_s10 + $0x54] ss:$124 sps:$4 sm:$0xff]  }
  0x8f   : > { %3739 = vmatpush3.bf16.msra.mxu1 %v4085_v19  ;;  %2791 = vmatprep.mubr.bf16.mxu1 %v4120_v52  ;;  %v4151_v19 = vld [vmem:[%s4380_s10 + $0x50] ss:$124 sps:$4 sm:$0xff]   ;;  %v4186_v52 = vld [vmem:[%s5122_s1 + $0x640] sm:$0xff]  }
  0x90   : > { %3740 = vmatprep.subr.bf16.mxu1 %v4088_v22  ;;  %v4155_v22 = vld [vmem:[%s5122_s1 + $0x678] sm:$0xff]  }
  0x91   : > { %3719 = vmatpush3.bf16.msra.mxu0 %v4087_v21  ;;  %v4154_v21 = vld [vmem:[%s5122_s1 + $0x580] sm:$0xff]  }
  0x92   : > { %3720 = vmatprep.subr.bf16.mxu0 %v4090_v24  ;;  %v4158_v24 = vld [vmem:[%s4380_s10 + $0x5c] ss:$124 sps:$4 sm:$0xff]  }
  0x93   : > { %3741 = vmatpush3.bf16.msra.mxu1 %v4089_v23  ;;  %v4156_v23 = vld [vmem:[%s4380_s10 + $0x58] ss:$124 sps:$4 sm:$0xff]  }
  0x94   : > { %3742 = vmatprep.subr.bf16.mxu1 %v4092_v26  ;;  %v4160_v26 = vld [vmem:[%s5122_s1 + $0x6f8] sm:$0xff]  }
  0x95   : > { %3721 = vmatpush3.bf16.msra.mxu0 %v4091_v25  ;;  %v4159_v25 = vld [vmem:[%s5122_s1 + $0x638] sm:$0xff]  }
  0x96   : > { %3722 = vmatprep.subr.bf16.mxu0 %v4094_v28  ;;  %v4162_v28 = vld [vmem:[%s5122_s1 + $0x670] sm:$0xff]  }
  0x97   : > { %3743 = vmatpush3.bf16.msra.mxu1 %v4093_v27  ;;  %v4161_v27 = vld [vmem:[%s5122_s1 + $0x6b8] sm:$0xff]  }
  0x98   : > { %3744 = vmatprep.subr.bf16.mxu1 %v4096_v30  ;;  %v4164_v30 = vld [vmem:[%s5122_s1 + $0x6f0] sm:$0xff]  }
  0x99   : > { %3723 = vmatpush3.bf16.msra.mxu0 %v4095_v29  ;;  %v4163_v29 = vld [vmem:[%s5122_s1 + $0x630] sm:$0xff]  }
  0x9a   : > { %3724 = vmatprep.subr.bf16.mxu0 %v4098_v32  ;;  %v4166_v32 = vld [vmem:[%s5122_s1 + $0x668] sm:$0xff]  }
  0x9b   : > { %3745 = vmatpush3.bf16.msra.mxu1 %v4097_v31  ;;  %v4165_v31 = vld [vmem:[%s5122_s1 + $0x6b0] sm:$0xff]  }
  0x9c   : > { %3746 = vmatprep.subr.bf16.mxu1 %v4100_v34  ;;  %v4168_v34 = vld [vmem:[%s5122_s1 + $0x6e8] sm:$0xff]  }
  0x9d   : > { %3725 = vmatpush3.bf16.msra.mxu0 %v4099_v33  ;;  %v4167_v33 = vld [vmem:[%s5122_s1 + $0x628] sm:$0xff]  }
  0x9e   : > { %3726 = vmatprep.subr.bf16.mxu0 %v4102_v36  ;;  %v4170_v36 = vld [vmem:[%s5122_s1 + $0x660] sm:$0xff]  }
  0x9f   : > { %3747 = vmatpush3.bf16.msra.mxu1 %v4101_v35  ;;  %v4169_v35 = vld [vmem:[%s5122_s1 + $0x6a8] sm:$0xff]  }
  0xa0   : > { %3748 = vmatprep.subr.bf16.mxu1 %v4104_v38  ;;  %v4172_v38 = vld [vmem:[%s5122_s1 + $0x6e0] sm:$0xff]  }
  0xa1   : > { %3727 = vmatpush3.bf16.msra.mxu0 %v4103_v37  ;;  %v4171_v37 = vld [vmem:[%s5122_s1 + $0x620] sm:$0xff]  }
  0xa2   : > { %3728 = vmatprep.subr.bf16.mxu0 %v4106_v40  ;;  %v4174_v40 = vld [vmem:[%s5122_s1 + $0x658] sm:$0xff]  }
  0xa3   : > { %3749 = vmatpush3.bf16.msra.mxu1 %v4105_v39  ;;  %v4173_v39 = vld [vmem:[%s5122_s1 + $0x6a0] sm:$0xff]  }
  0xa4   : > { %3750 = vmatprep.subr.bf16.mxu1 %v4108_v42  ;;  %v4176_v42 = vld [vmem:[%s5122_s1 + $0x6d8] sm:$0xff]  }
  0xa5   : > { %3729 = vmatpush3.bf16.msra.mxu0 %v4107_v41  ;;  %v4175_v41 = vld [vmem:[%s5122_s1 + $0x618] sm:$0xff]  }
  0xa6   : > { %3730 = vmatprep.subr.bf16.mxu0 %v4110_v44  ;;  %v4178_v44 = vld [vmem:[%s5122_s1 + $0x650] sm:$0xff]  }
  0xa7   : > { %3751 = vmatpush3.bf16.msra.mxu1 %v4109_v43  ;;  %v4177_v43 = vld [vmem:[%s5122_s1 + $0x698] sm:$0xff]  }
  0xa8   : > { %3752 = vmatprep.subr.bf16.mxu1 %v4112_v46  ;;  %v4180_v46 = vld [vmem:[%s5122_s1 + $0x6d0] sm:$0xff]  }
  0xa9   : > { %3731 = vmatpush3.bf16.msra.mxu0 %v4111_v45  ;;  %v4179_v45 = vld [vmem:[%s5122_s1 + $0x610] sm:$0xff]  }
  0xaa   : > { %3760 = vmatprep.subr.bf16.mxu0 %v4117_v50  ;;  %v4184_v50 = vld [vmem:[%s5122_s1 + $0x6c8] sm:$0xff]  }
  0xab   : > { %3753 = vmatpush3.bf16.msra.mxu1 %v4116_v49  ;;  %v4183_v49 = vld [vmem:[%s5122_s1 + $0x608] sm:$0xff]  }
  0xac   : > { %2751 = vmatmul.mubr.bf16.vlgmr.msra.gmra.mxu0 %v4113_v47  ;;  %3782 = vmatprep.subr.bf16.mxu1 %v4122_v54  ;;  %v4181_v47 = vld [vmem:[%s5122_s1 + $0x690] sm:$0xff]   ;;  %v4188_v54 = vld [vmem:[%s5122_s1 + $0x6c0] sm:$0xff]  }
  0xad   : > { %3761 = vmatpush3.bf16.msra.mxu0 %v4121_v53  ;;  %2832 = vmatprep.mubr.bf16.mxu0 %v4153_v20  ;;  %v4187_v53 = vld [vmem:[%s5122_s1 + $0x600] sm:$0xff]   ;;  %v4217_v20 = vld [vmem:[%s4380_s10 + $0x70] ss:$124 sps:$4 sm:$0xff]  }
  0xae   : > { %2792 = vmatmul.mubr.bf16.vlgmr.msra.gmra.mxu1 %v4118_v51  ;;  %3762 = vmatprep.subr.bf16.mxu0 %v4124_v56  ;;  %v4185_v51 = vld [vmem:[%s5122_s1 + $0x688] sm:$0xff]   ;;  %v4191_v56 = vld [vmem:[%s4380_s10 + $0x64] ss:$124 sps:$4 sm:$0xff]  }
  0xaf   : > { %3783 = vmatpush3.bf16.msra.mxu1 %v4123_v55  ;;  %2873 = vmatprep.mubr.bf16.mxu1 %v4158_v24  ;;  %v4189_v55 = vld [vmem:[%s4380_s10 + $0x60] ss:$124 sps:$4 sm:$0xff]  }
  0xb0   : > { %3784 = vmatprep.subr.bf16.mxu1 %v4126_v58  ;;  %v4193_v58 = vld [vmem:[%s5122_s1 + $0x778] sm:$0xff]   ;;  %v4224_v24 = vld [vmem:[%s5124_s3 + $0x20] sm:$0xff]  }
  0xb1   : > { %3763 = vmatpush3.bf16.msra.mxu0 %v4125_v57  ;;  %v4192_v57 = vld [vmem:[%s5122_s1 + $0x680] sm:$0xff]  }
  0xb2   : > { %3764 = vmatprep.subr.bf16.mxu0 %v4128_v60  ;;  %v4196_v60 = vld [vmem:[%s4380_s10 + $0x6c] ss:$124 sps:$4 sm:$0xff]  }
  0xb3   : > { %3785 = vmatpush3.bf16.msra.mxu1 %v4127_v59  ;;  %v4194_v59 = vld [vmem:[%s4380_s10 + $0x68] ss:$124 sps:$4 sm:$0xff]  }
  0xb4   : > { %3786 = vmatprep.subr.bf16.mxu1 %v4130_v62  ;;  %v4245_v62 = vmov 0.0  }
  0xb5   : > { %3765 = vmatpush3.bf16.msra.mxu0 %v4129_v61  ;;  %v4197_v61 = vld [vmem:[%s5122_s1 + $0x738] sm:$0xff]  }
  0xb6   : > { %3766 = vmatprep.subr.bf16.mxu0 %v4132_v0  ;;  %v4199_v0 = vld [vmem:[%s5122_s1 + $0x730] sm:$0xff]  }
  0xb7   : > { %3787 = vmatpush3.bf16.msra.mxu1 %v4131_v63  ;;  %v4198_v63 = vld [vmem:[%s5122_s1 + $0x770] sm:$0xff]  }
  0xb8   : > { %3788 = vmatprep.subr.bf16.mxu1 %v4134_v2  ;;  %v4201_v2 = vld [vmem:[%s5122_s1 + $0x728] sm:$0xff]  }
  0xb9   : > { %3767 = vmatpush3.bf16.msra.mxu0 %v4133_v1  ;;  %v4200_v1 = vld [vmem:[%s5122_s1 + $0x768] sm:$0xff]  }
  0xba   : > { %3768 = vmatprep.subr.bf16.mxu0 %v4136_v4  ;;  %v4204_v4 = vld [vmem:[%s5122_s1 + $0x7a0] sm:$0xff]  }
  0xbb   : > { %3789 = vmatpush3.bf16.msra.mxu1 %v4135_v3  ;;  %v4202_v3 = vld [vmem:[%s5122_s1 + $0x760] sm:$0xff]  }
  0xbc   : > { %3790 = vmatprep.subr.bf16.mxu1 %v4138_v6  ;;  %v4207_v6 = vld [vmem:[%s5122_s1 + $0x798] sm:$0xff]  }
  0xbd   : > { %3769 = vmatpush3.bf16.msra.mxu0 %v4137_v5  ;;  %v4203_v5 = vld [vmem:[%s5122_s1 + $0x720] sm:$0xff]  }
  0xbe   : > { %3770 = vmatprep.subr.bf16.mxu0 %v4140_v8  ;;  %v4210_v8 = vld [vmem:[%s5122_s1 + $0x790] sm:$0xff]  }
  0xbf   : > { %3791 = vmatpush3.bf16.msra.mxu1 %v4139_v7  ;;  %v4205_v7 = vld [vmem:[%s5122_s1 + $0x758] sm:$0xff]  }
  0xc0   : > { %3792 = vmatprep.subr.bf16.mxu1 %v4142_v10  ;;  %v4208_v10 = vld [vmem:[%s5122_s1 + $0x750] sm:$0xff]  }
  0xc1   : > { %3771 = vmatpush3.bf16.msra.mxu0 %v4141_v9  ;;  %v4206_v9 = vld [vmem:[%s5122_s1 + $0x718] sm:$0xff]  }
  0xc2   : > { %3772 = vmatprep.subr.bf16.mxu0 %v4144_v12  ;;  %v4209_v12 = vld [vmem:[%s5122_s1 + $0x710] sm:$0xff]  }
  0xc3   : > { %3793 = vmatpush3.bf16.msra.mxu1 %v4143_v11  ;;  %v4213_v11 = vld [vmem:[%s5122_s1 + $0x788] sm:$0xff]  }
  0xc4   : > { %3794 = vmatprep.subr.bf16.mxu1 %v4146_v14  ;;  %v4212_v14 = vld [vmem:[%s5122_s1 + $0x708] sm:$0xff]  }
  0xc5   : > { %3773 = vmatpush3.bf16.msra.mxu0 %v4145_v13  ;;  %v4211_v13 = vld [vmem:[%s5122_s1 + $0x748] sm:$0xff]  }
  0xc6   : > { %3774 = vmatprep.subr.bf16.mxu0 %v4148_v16  ;;  %v4214_v16 = vld [vmem:[%s5122_s1 + $0x740] sm:$0xff]  }
  0xc7   : > { %3795 = vmatpush3.bf16.msra.mxu1 %v4147_v15  ;;  %v4216_v15 = vld [vmem:[%s5122_s1 + $0x780] sm:$0xff]  }
  0xc8   : > { %3796 = vmatprep.subr.bf16.mxu1 %v4150_v18  ;;  %v4220_v18 = vld [vmem:[%s4380_s10 + $0x78] ss:$124 sps:$4 sm:$0xff]  }
  0xc9   : > { %3775 = vmatpush3.bf16.msra.mxu0 %v4149_v17  ;;  %v4219_v17 = vld [vmem:[%s4380_s10 + $0x74] ss:$124 sps:$4 sm:$0xff]  }
  0xca   : > { %3804 = vmatprep.subr.bf16.mxu0 %v4155_v22  ;;  %v4222_v22 = vld [vmem:[%s5124_s3 + $0x30] sm:$0xff]  }
  0xcb   : > { %3797 = vmatpush3.bf16.msra.mxu1 %v4154_v21  ;;  %v4221_v21 = vld [vmem:[%s5124_s3 + $0x38] sm:$0xff]  }
  0xcc   : > { %2833 = vmatmul.mubr.bf16.vlgmr.msra.gmra.mxu0 %v4151_v19  ;;  %3826 = vmatprep.subr.bf16.mxu1 %v4160_v26  ;;  %v4215_v19 = vld [vmem:[%s5122_s1 + $0x700] sm:$0xff]   ;;  %v4226_v26 = vld [vmem:[%s5124_s3 + $0x10] sm:$0xff]  }
  0xcd   : > { %3805 = vmatpush3.bf16.msra.mxu0 %v4159_v25  ;;  %2914 = vmatprep.mubr.bf16.mxu0 %v4191_v56  ;;  %v4225_v25 = vld [vmem:[%s5124_s3 + $0x18] sm:$0xff]  }
  0xce   : > { %2874 = vmatmul.mubr.bf16.vlgmr.msra.gmra.mxu1 %v4156_v23  ;;  %3806 = vmatprep.subr.bf16.mxu0 %v4162_v28  ;;  %v4223_v23 = vld [vmem:[%s5124_s3 + $0x28] sm:$0xff]   ;;  %v4228_v28 = vld [vmem:[%s5124_s3] sm:$0xff]  }
  0xcf   : > { %3827 = vmatpush3.bf16.msra.mxu1 %v4161_v27  ;;  %2955 = vmatprep.mubr.bf16.mxu1 %v4196_v60  ;;  %v4227_v27 = vld [vmem:[%s5124_s3 + $0x8] sm:$0xff]  }
  0xd0   : > { %3828 = vmatprep.subr.bf16.mxu1 %v4164_v30 }
  0xd1   : > { %3807 = vmatpush3.bf16.msra.mxu0 %v4163_v29 }
  0xd2   : > { %3808 = vmatprep.subr.bf16.mxu0 %v4166_v32 }
  0xd3   : > { %3829 = vmatpush3.bf16.msra.mxu1 %v4165_v31 }
  0xd4   : > { %3830 = vmatprep.subr.bf16.mxu1 %v4168_v34 }
  0xd5   : > { %3809 = vmatpush3.bf16.msra.mxu0 %v4167_v33 }
  0xd6   : > { %3810 = vmatprep.subr.bf16.mxu0 %v4170_v36 }
  0xd7   : > { %3831 = vmatpush3.bf16.msra.mxu1 %v4169_v35 }
  0xd8   : > { %3832 = vmatprep.subr.bf16.mxu1 %v4172_v38 }
  0xd9   : > { %3811 = vmatpush3.bf16.msra.mxu0 %v4171_v37 }
  0xda   : > { %3812 = vmatprep.subr.bf16.mxu0 %v4174_v40 }
  0xdb   : > { %3833 = vmatpush3.bf16.msra.mxu1 %v4173_v39 }
  0xdc   : > { %3834 = vmatprep.subr.bf16.mxu1 %v4176_v42 }
  0xdd   : > { %3813 = vmatpush3.bf16.msra.mxu0 %v4175_v41 }
  0xde   : > { %3814 = vmatprep.subr.bf16.mxu0 %v4178_v44 }
  0xdf   : > { %3835 = vmatpush3.bf16.msra.mxu1 %v4177_v43 }
  0xe0   : > { %3836 = vmatprep.subr.bf16.mxu1 %v4180_v46 }
  0xe1   : > { %3815 = vmatpush3.bf16.msra.mxu0 %v4179_v45 }
  0xe2   : > { %3816 = vmatprep.subr.bf16.mxu0 %v4182_v48 }
  0xe3   : > { %3837 = vmatpush3.bf16.msra.mxu1 %v4181_v47 }
  0xe4   : > { %3838 = vmatprep.subr.bf16.mxu1 %v4184_v50 }
  0xe5   : > { %3817 = vmatpush3.bf16.msra.mxu0 %v4183_v49 }
  0xe6   : > { %3818 = vmatprep.subr.bf16.mxu0 %v4186_v52 }
  0xe7   : > { %3839 = vmatpush3.bf16.msra.mxu1 %v4185_v51 }
  0xe8   : > { %3840 = vmatprep.subr.bf16.mxu1 %v4188_v54 }
  0xe9   : > { %3819 = vmatpush3.bf16.msra.mxu0 %v4187_v53 }
  0xea   : > { %3848 = vmatprep.subr.bf16.mxu0 %v4193_v58 }
  0xeb   : > { %3841 = vmatpush3.bf16.msra.mxu1 %v4192_v57 }
  0xec   : > { %2915 = vmatmul.mubr.bf16.vlgmr.msra.gmra.mxu0 %v4189_v55  ;;  %3885 = vmatprep.subr.bf16.mxu1 %v4245_v62  ;;  %v3556_v30 = vpop.f32.mrf.mxu0 }
  0xed   : > { %3849 = vmatpush3.bf16.msra.mxu0 %v4197_v61  ;;  %2996 = vmatprep.mubr.bf16.mxu0 %v4219_v17 }
  0xee   : > { %2956 = vmatmul.mubr.bf16.vlgmr.msra.gmra.mxu1 %v4194_v59  ;;  %3850 = vmatprep.subr.bf16.mxu0 %v4198_v63  ;;  %v3578_v29 = vpop.f32.mrf.mxu1  ;;  %v3557_v32 = vpop.f32.mrf.mxu0 }
  0xef   : > { %3895 = vmatprep.mubr.msk.bf16.mxu1 %vm4246_vm0, %v4245_v62  ;;  %3886 = vmatpush3.bf16.msra.mxu1 %v4204_v4 }
  0xf0   : > { %3887 = vmatprep.subr.bf16.mxu1 %v4245_v62  ;;  %v3579_v31 = vpop.f32.mrf.mxu1  ;;  %v3559_v34 = vpop.f32.mrf.mxu0 }
  0xf1   : > { %3851 = vmatpush3.bf16.msra.mxu0 %v4199_v0  ;;  %v3558_v0 = vadd.f32 %v3557_v32, %v3556_v30 }
  0xf2   : > { %3852 = vmatprep.subr.bf16.mxu0 %v4200_v1  ;;  %v3581_v33 = vpop.f32.mrf.mxu1  ;;  %v3560_v37 = vpop.f32.mrf.mxu0  ;;  %v3251_v1 = vld [vmem:[%s5123_s2] ss:$0 sm:$0xff] }
  0xf3   : > { %3888 = vmatpush3.bf16.msra.mxu1 %v4207_v6  ;;  %v2425_v4 = vadd.f32 %v3558_v0, %v3251_v1  ;;  %v3561_v6 = vadd.f32 %v3560_v37, %v3559_v34 }
  0xf4   : > { %3889 = vmatprep.subr.bf16.mxu1 %v4245_v62  ;;  %v3582_v35 = vpop.f32.mrf.mxu1 }
  0xf5   : > { %3853 = vmatpush3.bf16.msra.mxu0 %v4201_v2 }
  0xf6   : > { %3854 = vmatprep.subr.bf16.mxu0 %v4202_v3 }
  0xf7   : > { %3890 = vmatpush3.bf16.msra.mxu1 %v4210_v8 }
  0xf8   : > { %3891 = vmatprep.subr.bf16.mxu1 %v4245_v62 }
  0xf9   : > { %3855 = vmatpush3.bf16.msra.mxu0 %v4203_v5  ;;  %v3580_v5 = vadd.f32 %v3579_v31, %v3578_v29 }
  0xfa   : > { %3856 = vmatprep.subr.bf16.mxu0 %v4205_v7 }
  0xfb   : > { %3892 = vmatpush3.bf16.msra.mxu1 %v4213_v11  ;;  %v2428_v11 = vadd.f32 %v3561_v6, %v3251_v1 }
  0xfc   : > { %3893 = vmatprep.subr.bf16.mxu1 %v4245_v62 }
  0xfd   : > { %3857 = vmatpush3.bf16.msra.mxu0 %v4206_v9 }
  0xfe   : > { %3858 = vmatprep.subr.bf16.mxu0 %v4208_v10  ;;  %v2466_v10 = vadd.f32 %v3580_v5, %v2425_v4 }
  0xff   : > { %3894 = vmatpush3.bf16.msra.mxu1 %v4216_v15 }
 0x100   : > { %3899 = vmatprep.subr.bf16.mxu1 %v4245_v62 }
 0x101   : > { %3859 = vmatpush3.bf16.msra.mxu0 %v4209_v12  ;;  %v3583_v12 = vadd.f32 %v3582_v35, %v3581_v33 }
 0x102   : > { %3860 = vmatprep.subr.bf16.mxu0 %v4211_v13  ;;  %3896 = vmatmul.mubr.msk.bf16.vlgmr.msra.gmra.mxu1 %vm2386_vm1, %v4220_v18 }
 0x103   : > { %3915 = vmatprep.mubr.msk.bf16.mxu1 %vm4246_vm0, %v4245_v62  ;;  %3900 = vmatpush3.bf16.msra.mxu1 %v4221_v21 }
 0x104   : > { %3901 = vmatprep.subr.bf16.mxu1 %v4245_v62 }
 0x105   : > { %3861 = vmatpush3.bf16.msra.mxu0 %v4212_v14 }
 0x106   : > { %3862 = vmatprep.subr.bf16.mxu0 %v4214_v16 }
 0x107   : > { %3902 = vmatpush3.bf16.msra.mxu1 %v4222_v22 }
 0x108   : > { %3903 = vmatprep.subr.bf16.mxu1 %v4245_v62 }
 0x109   : > { %3863 = vmatpush3.bf16.msra.mxu0 %v4215_v19  ;;  %v2469_v19 = vadd.f32 %v3583_v12, %v2428_v11 }
 0x10b   : > { %3904 = vmatpush3.bf16.msra.mxu1 %v4223_v23 }
 0x10c   : > { %2997 = vmatmul.mubr.bf16.vlgmr.msra.gmra.mxu0 %v4217_v20  ;;  %3905 = vmatprep.subr.bf16.mxu1 %v4245_v62  ;;  %v3600_v38 = vpop.f32.mrf.mxu0 }
 0x10e   : > { %v3622_v36 = vpop.f32.mrf.mxu1  ;;  %v3601_v40 = vpop.f32.mrf.mxu0 }
 0x10f   : > { %3906 = vmatpush3.bf16.msra.mxu1 %v4224_v24  ;;  %v3602_v8 = vadd.f32 %v3601_v40, %v3600_v38 }
 0x110   : > { %3907 = vmatprep.subr.bf16.mxu1 %v4245_v62  ;;  %v3623_v39 = vpop.f32.mrf.mxu1  ;;  %v3603_v42 = vpop.f32.mrf.mxu0 }
 0x111   : > { %v2507_v15 = vadd.f32 %v3602_v8, %v2466_v10  ;;  %v3624_v16 = vadd.f32 %v3623_v39, %v3622_v36 }
 0x112   : > { %v3625_v41 = vpop.f32.mrf.mxu1  ;;  %v3604_v45 = vpop.f32.mrf.mxu0 }
 0x113   : > { %3908 = vmatpush3.bf16.msra.mxu1 %v4225_v25  ;;  %v3605_v17 = vadd.f32 %v3604_v45, %v3603_v42  ;;  %v2548_v22 = vadd.f32 %v3624_v16, %v2507_v15 }
 0x114   : > { %3909 = vmatprep.subr.bf16.mxu1 %v4245_v62  ;;  %v3626_v43 = vpop.f32.mrf.mxu1 }
 0x115   : > { %v2510_v23 = vadd.f32 %v3605_v17, %v2469_v19  ;;  %v3627_v24 = vadd.f32 %v3626_v43, %v3625_v41 }
 0x117   : > { %3910 = vmatpush3.bf16.msra.mxu1 %v4226_v26  ;;  %v2551_v30 = vadd.f32 %v3627_v24, %v2510_v23 }
 0x118   : > { %3911 = vmatprep.subr.bf16.mxu1 %v4245_v62 }
 0x11b   : > { %3912 = vmatpush3.bf16.msra.mxu1 %v4227_v27 }
 0x11c   : > { %3913 = vmatprep.subr.bf16.mxu1 %v4245_v62 }
 0x11f   : > { %3914 = vmatpush3.bf16.msra.mxu1 %v4228_v28 }
 0x12c   : > { %v3644_v46 = vpop.f32.mrf.mxu0 }
 0x12e   : > { %v3666_v44 = vpop.f32.mrf.mxu1  ;;  %v3645_v48 = vpop.f32.mrf.mxu0 }
 0x12f   : > { %v3646_v20 = vadd.f32 %v3645_v48, %v3644_v46 }
 0x130   : > { %v3667_v47 = vpop.f32.mrf.mxu1  ;;  %v3647_v50 = vpop.f32.mrf.mxu0 }
 0x131   : > { %v2589_v26 = vadd.f32 %v3646_v20, %v2548_v22  ;;  %v3668_v27 = vadd.f32 %v3667_v47, %v3666_v44 }
 0x132   : > { %v3669_v49 = vpop.f32.mrf.mxu1  ;;  %v3648_v53 = vpop.f32.mrf.mxu0 }
 0x133   : > { %v3649_v28 = vadd.f32 %v3648_v53, %v3647_v50  ;;  %v2630_v33 = vadd.f32 %v3668_v27, %v2589_v26 }
 0x134   : > { %v3670_v51 = vpop.f32.mrf.mxu1 }
 0x135   : > { %v2592_v34 = vadd.f32 %v3649_v28, %v2551_v30  ;;  %v3671_v35 = vadd.f32 %v3670_v51, %v3669_v49 }
 0x137   : > { %v2633_v45 = vadd.f32 %v3671_v35, %v2592_v34 }
 0x14c   : > { %v3688_v54 = vpop.f32.mrf.mxu0 }
 0x14e   : > { %v3710_v52 = vpop.f32.mrf.mxu1  ;;  %v3689_v56 = vpop.f32.mrf.mxu0 }
 0x14f   : > { %v3690_v31 = vadd.f32 %v3689_v56, %v3688_v54 }
 0x150   : > { %v3711_v55 = vpop.f32.mrf.mxu1  ;;  %v3691_v58 = vpop.f32.mrf.mxu0 }
 0x151   : > { %v2671_v37 = vadd.f32 %v3690_v31, %v2630_v33  ;;  %v3712_v38 = vadd.f32 %v3711_v55, %v3710_v52  ;;  %v3529_v31 = vld [vmem:[%s5125_s4] ss:$0 sm:$0xff] }
 0x152   : > { %v3713_v57 = vpop.f32.mrf.mxu1  ;;  %v3692_v61 = vpop.f32.mrf.mxu0 }
 0x153   : > { %v3693_v39 = vadd.f32 %v3692_v61, %v3691_v58  ;;  %v2712_v43 = vadd.f32 %v3712_v38, %v2671_v37 }
 0x154   : > { %v3714_v59 = vpop.f32.mrf.mxu1 }
 0x155   : > { %v2674_v48 = vadd.f32 %v3693_v39, %v2633_v45  ;;  %v3715_v44 = vadd.f32 %v3714_v59, %v3713_v57 }
 0x157   : > { %v2715_v0 = vadd.f32 %v3715_v44, %v2674_v48 }
 0x16c   : > { %v3732_v62 = vpop.f32.mrf.mxu0 }
 0x16e   : > { %v3754_v60 = vpop.f32.mrf.mxu1  ;;  %v3733_v2 = vpop.f32.mrf.mxu0 }
 0x16f   : > { %v3734_v46 = vadd.f32 %v3733_v2, %v3732_v62 }
 0x170   : > { %v3755_v63 = vpop.f32.mrf.mxu1  ;;  %v3735_v7 = vpop.f32.mrf.mxu0 }
 0x171   : > { %v2753_v50 = vadd.f32 %v3734_v46, %v2712_v43  ;;  %v3756_v53 = vadd.f32 %v3755_v63, %v3754_v60 }
 0x172   : > { %v3757_v3 = vpop.f32.mrf.mxu1  ;;  %v3736_v14 = vpop.f32.mrf.mxu0 }
 0x173   : > { %v3737_v54 = vadd.f32 %v3736_v14, %v3735_v7  ;;  %v2794_v51 = vadd.f32 %v3756_v53, %v2753_v50 }
 0x174   : > { %v3758_v9 = vpop.f32.mrf.mxu1 }
 0x175   : > { %v2756_v4 = vadd.f32 %v3737_v54, %v2715_v0  ;;  %v3759_v52 = vadd.f32 %v3758_v9, %v3757_v3 }
 0x177   : > { %v2797_v2 = vadd.f32 %v3759_v52, %v2756_v4 }
 0x18c   : > { %v3776_v18 = vpop.f32.mrf.mxu0 }
 0x18e   : > { %v3798_v13 = vpop.f32.mrf.mxu1  ;;  %v3777_v25 = vpop.f32.mrf.mxu0 }
 0x18f   : > { %v3778_v1 = vadd.f32 %v3777_v25, %v3776_v18 }
 0x190   : > { %v3799_v21 = vpop.f32.mrf.mxu1  ;;  %v3779_v32 = vpop.f32.mrf.mxu0 }
 0x191   : > { %v2835_v58 = vadd.f32 %v3778_v1, %v2794_v51  ;;  %v3800_v61 = vadd.f32 %v3799_v21, %v3798_v13 }
 0x192   : > { %v3801_v29 = vpop.f32.mrf.mxu1  ;;  %v3780_v42 = vpop.f32.mrf.mxu0 }
 0x193   : > { %v3781_v5 = vadd.f32 %v3780_v42, %v3779_v32  ;;  %v2876_v59 = vadd.f32 %v3800_v61, %v2835_v58 }
 0x194   : > { %v3802_v36 = vpop.f32.mrf.mxu1 }
 0x195   : > { %v2838_v10 = vadd.f32 %v3781_v5, %v2797_v2  ;;  %v3803_v60 = vadd.f32 %v3802_v36, %v3801_v29 }
 0x197   : > { %v2879_v16 = vadd.f32 %v3803_v60, %v2838_v10 }
 0x1ac   : > { %v3820_v41 = vpop.f32.mrf.mxu0 }
 0x1ae   : > { %v3842_v40 = vpop.f32.mrf.mxu1  ;;  %v3821_v56 = vpop.f32.mrf.mxu0 }
 0x1af   : > { %v3822_v6 = vadd.f32 %v3821_v56, %v3820_v41 }
 0x1b0   : > { %v3843_v47 = vpop.f32.mrf.mxu1  ;;  %v3823_v55 = vpop.f32.mrf.mxu0 }
 0x1b1   : > { %v2917_v7 = vadd.f32 %v3822_v6, %v2876_v59  ;;  %v3844_v11 = vadd.f32 %v3843_v47, %v3842_v40 }
 0x1b2   : > { %v3845_v49 = vpop.f32.mrf.mxu1  ;;  %v3824_v57 = vpop.f32.mrf.mxu0 }
 0x1b3   : > { %v3825_v12 = vadd.f32 %v3824_v57, %v3823_v55  ;;  %v2958_v17 = vadd.f32 %v3844_v11, %v2917_v7 }
 0x1b4   : > { %v3846_v62 = vpop.f32.mrf.mxu1 }
 0x1b5   : > { %v2920_v13 = vadd.f32 %v3825_v12, %v2879_v16  ;;  %v3847_v18 = vadd.f32 %v3846_v62, %v3845_v49 }
 0x1b7   : > { %v2961_v23 = vadd.f32 %v3847_v18, %v2920_v13 }
 0x1c2   : > { %v3039_v8 = vpop.f32.mrf.mxu1 }
 0x1c4   : > { %v3897_v63 = vpop.f32.mrf.mxu1 }
 0x1c6   : > { %v3042_v14 = vpop.f32.mrf.mxu1 }
 0x1c8   : > { %v3898_v3 = vpop.f32.mrf.mxu1 }
 0x1cc   : > { %v3864_v15 = vpop.f32.mrf.mxu0 }
 0x1ce   : > { %v3865_v9 = vpop.f32.mrf.mxu0 }
 0x1cf   : > { %v3866_v19 = vadd.f32 %v3865_v9, %v3864_v15 }
 0x1d0   : > { %v3867_v20 = vpop.f32.mrf.mxu0 }
 0x1d1   : > { %v2999_v21 = vadd.f32 %v3866_v19, %v2958_v17 }
 0x1d2   : > { %v3868_v22 = vpop.f32.mrf.mxu0 }
 0x1d3   : > { %v3869_v24 = vadd.f32 %v3868_v22, %v3867_v20  ;;  %v3040_v25 = vadd.f32 %v3039_v8, %v2999_v21 }
 0x1d5   : > { %v3002_v26 = vadd.f32 %v3869_v24, %v2961_v23  ;;  %v3046_v28 = vmax.f32 %v3040_v25, 0.0 }
 0x1d7   : > { %v3043_v27 = vadd.f32 %v3042_v14, %v3002_v26 }
 0x1d9   : > { %v3047_v29 = vmax.f32 %v3043_v27, 0.0 }
 0x1db   : > { %v3048_v30 = vpack.c.bf16 %v3047_v29, %v3046_v28 }
 0x1dd   : > { %3916 = vmatmul.mubr.bf16.vlgmr.msra.gmra.mxu1 %v3048_v30 }
 0x29d   : > { %v3154_v32 = vpop.f32.mrf.mxu1 }
 0x29e   : > { %v3155_v33 = vadd.f32 %v3529_v31, %v3154_v32 }
 0x29f   : > { %v3917_v34 = vpop.f32.mrf.mxu1 }
 0x2a0   : > { %v3162_v35 = vsel %vm3161_vm2, %v3155_v33, -inf }
 0x2a1   : > { %3163 = vmax.xlane.f32.xlu0 %v3162_v35  ;;  %v3157_v36 = vpop.f32.mrf.mxu1 }
 0x2a2   : > { %v3158_v37 = vadd.f32 %v3529_v31, %v3157_v36 }
 0x2a3   : > { %v3918_v38 = vpop.f32.mrf.mxu1 }
 0x2a4   : > { %v3165_v39 = vsel %vm3161_vm2, %v3158_v37, -inf }
 0x2a5   : > { %3166 = vmax.xlane.f32.xlu0 %v3165_v39 }
 0x32a   : > { %v3164_v40 = vpop.xlane.xlu0 %3163 }
 0x32b   : > { %v3168_v42 = vsub.f32 %v3155_v33, %v3164_v40 }
 0x32d   : > { %v3170_v45 = vmul.f32 1.442695, %v3168_v42 }
 0x32e   : > { %v3167_v46 = vpop.xlane.xlu0 %3166 }
 0x32f   : > { %4229 = vpow2.f32 %v3170_v45  ;;  %v3169_v41 = vsub.f32 %v3158_v37, %v3167_v46 }
 0x331   : > { %v3172_v43 = vmul.f32 1.442695, %v3169_v41 }
 0x333   : > { %4231 = vpow2.f32 %v3172_v43 }
 0x33c   : > { %v4230_v48 = vpop.eup %4229 }
 0x33d   : > { %v3174_v44 = vsel %vm3161_vm2, %v4230_v48, 0.0 }
 0x33e   : > { %3175 = vadd.xlane.f32.xlu1 %v3174_v44 }
 0x340   : > { %v4232_v47 = vpop.eup %4231 }
 0x341   : > { %v3177_v50 = vsel %vm3161_vm2, %v4232_v47, 0.0 }
 0x342   : > { %3178 = vadd.xlane.f32.xlu1 %v3177_v50 }
 0x3c7   : > { %v3176_v53 = vpop.xlane.xlu1 %3175 }
 0x3c8   : > { %4233 = vrcp.f32 %v3176_v53 }
 0x3cb   : > { %v3179_v54 = vpop.xlane.xlu1 %3178 }
 0x3cc   : > { %4235 = vrcp.f32 %v3179_v54 }
 0x3d5   : > { %v4234_v56 = vpop.eup %4233 }
 0x3d6   : > { %v3182_v0 = vmul.f32 %v4234_v56, %v4230_v48 }
 0x3d8   : > { %3184 = vst.msk [vmem:[%s229_s28] sm:$0xff] %vm3161_vm2, %v3182_v0 }
 0x3d9   : > { %v4236_v1 = vpop.eup %4235 }
 0x3da   : > { %v3183_v49 = vmul.f32 %v4236_v1, %v4232_v47 }
 0x3dc   : > { %3185 = vst.msk [vmem:[%s229_s28 + $0x8] sm:$0xff] %vm3161_vm2, %v3183_v49 }
 0x3dd PF: > { %s15_s18 = sadd.s32 1, %s4243_s18  }
 0x3de   : > { %p12_p4 = scmp.ge.s32.totalorder %s15_s18, 4  }
 0x3e0   :  { %14 = sbr.rel (!%p12_p4) target bundleno = 1 (0x1), region = 70 }

</bundles_post_ra>
